<compile_context>
chip_gen: v5e
topology: v5e:2x2
jax: 0.10.0
libtpu: 0.0.40
codegen_flags: <defaults>
</compile_context>

<pallas_src>
import functools

import jax
import jax.numpy as jnp
from jax import lax
from jax.experimental import pallas as pl
from jax.experimental.pallas import tpu as pltpu

F32 = jnp.float32
BF16 = jnp.bfloat16
VMEM_LIMIT = 48 * 1024 * 1024  # leaves headroom on v7x (64 MiB physical)


def _round_up(x, m):
    return ((x + m - 1) // m) * m


def _row_tile(n):
    for t in (256, 128, 64, 32, 16, 8):
        if n % t == 0:
            return t
    return n


def _vocab_tile(vp):
    for t in (2048, 1024, 512, 256, 128):
        if vp % t == 0:
            return t
    return vp


# --------------------------------------------------------------------------
# Kernel 1: fused multi-layer LSTM, time-chunked grid, mapping folded in.
#   x2d rows are time-major: row (t*Bp + b) = embedded token of batch b at t.
#   hT/cT outputs have constant index maps -> resident across the chunk grid
#   and double as the running recurrent state.
# --------------------------------------------------------------------------
def _make_lstm_kernel(num_layers, chunk, batch_pad, hidden_pad,
                      init_from_features):
    L, C, Bp, Hp = num_layers, chunk, batch_pad, hidden_pad

    def kernel(*refs):
        x_ref, feat_ref, mwT_ref, mb_ref = refs[0:4]
        layer_refs = [(refs[4 + 3 * l], refs[5 + 3 * l], refs[6 + 3 * l])
                      for l in range(L)]
        base = 4 + 3 * L
        h0_ref, c0_ref = refs[base], refs[base + 1]
        y_ref, hT_ref, cT_ref = refs[base + 2], refs[base + 3], refs[base + 4]
        gates_scr, seq_scr = refs[base + 5], refs[base + 6]

        # Initialize the resident recurrent state at the first chunk.
        @pl.when(pl.program_id(0) == 0)
        def _init():
            if init_from_features:
                mapped = (jnp.dot(feat_ref[...], mwT_ref[...],
                                  preferred_element_type=F32) + mb_ref[...])
                for l in range(L):
                    hT_ref[l] = mapped
                    cT_ref[l] = mapped
            else:
                hT_ref[...] = h0_ref[...]
                cT_ref[...] = c0_ref[...]

        for l in range(L):
            w_ihT_ref, w_hhT_ref, b_ref = layer_refs[l]
            # Hoisted input->hidden gates for all timesteps in this chunk:
            # one big bf16 MXU matmul + one f32 bias add.
            xin = x_ref[...] if l == 0 else seq_scr[...]
            gates_scr[...] = (jnp.dot(xin, w_ihT_ref[...],
                                      preferred_element_type=F32)
                              + b_ref[...])
            w_hh = w_hhT_ref[...]                       # (Hp, 4Hp) bf16
            dst = y_ref if l == L - 1 else seq_scr      # bf16

            def step(t, carry):
                h, cs = carry
                row = pl.multiple_of(t * Bp, Bp)        # sublane-aligned
                g = gates_scr[pl.ds(row, Bp), :] + jnp.dot(
                    h.astype(BF16), w_hh, preferred_element_type=F32)
                i_g = jax.nn.sigmoid(g[:, 0 * Hp:1 * Hp])
                f_g = jax.nn.sigmoid(g[:, 1 * Hp:2 * Hp])
                g_g = jnp.tanh(g[:, 2 * Hp:3 * Hp])
                o_g = jax.nn.sigmoid(g[:, 3 * Hp:4 * Hp])
                c_new = f_g * cs + i_g * g_g
                h_new = o_g * jnp.tanh(c_new)
                dst[pl.ds(row, Bp), :] = h_new.astype(BF16)
                return (h_new, c_new)

            h_fin, c_fin = lax.fori_loop(0, C, step,
                                         (hT_ref[l], cT_ref[l]), unroll=True)
            hT_ref[l] = h_fin
            cT_ref[l] = c_fin

    return kernel


def lstm_forward(x2d, feats_bf16, mapping_wT, mapping_b, layer_params,
                 h0, c0, *, seq_len, chunk, init_from_features):
    L = len(layer_params)
    Bp = feats_bf16.shape[0]
    Hp = mapping_wT.shape[1]
    E = x2d.shape[1]
    NC = seq_len // chunk
    C = chunk

    kernel = _make_lstm_kernel(L, C, Bp, Hp, init_from_features)

    inputs = [x2d, feats_bf16, mapping_wT, mapping_b]
    in_specs = [
        pl.BlockSpec((C * Bp, E), lambda c: (c, 0)),
        pl.BlockSpec((Bp, 1024), lambda c: (0, 0)),
        pl.BlockSpec((1024, Hp), lambda c: (0, 0)),
        pl.BlockSpec((1, Hp), lambda c: (0, 0)),
    ]
    for (w_ihT, w_hhT, b) in layer_params:
        inputs += [w_ihT, w_hhT, b]
        in_specs += [
            pl.BlockSpec(w_ihT.shape, lambda c: (0, 0)),
            pl.BlockSpec(w_hhT.shape, lambda c: (0, 0)),
            pl.BlockSpec(b.shape, lambda c: (0, 0)),
        ]
    inputs += [h0, c0]
    in_specs += [pl.BlockSpec((L, Bp, Hp), lambda c: (0, 0, 0))] * 2

    out_shapes = (
        jax.ShapeDtypeStruct((seq_len * Bp, Hp), BF16),   # y (time-major rows)
        jax.ShapeDtypeStruct((L, Bp, Hp), F32),           # h_T
        jax.ShapeDtypeStruct((L, Bp, Hp), F32),           # c_T
    )
    out_specs = (
        pl.BlockSpec((C * Bp, Hp), lambda c: (c, 0)),
        pl.BlockSpec((L, Bp, Hp), lambda c: (0, 0, 0)),
        pl.BlockSpec((L, Bp, Hp), lambda c: (0, 0, 0)),
    )
    return pl.pallas_call(
        kernel,
        out_shape=out_shapes,
        grid_spec=pltpu.PrefetchScalarGridSpec(
            num_scalar_prefetch=0,
            grid=(NC,),
            in_specs=in_specs,
            out_specs=out_specs,
            scratch_shapes=[
                pltpu.VMEM((C * Bp, 4 * Hp), F32),   # per-chunk hoisted gates
                pltpu.VMEM((C * Bp, Hp), BF16),      # per-chunk inter-layer h
            ]),
        compiler_params=pltpu.CompilerParams(
            dimension_semantics=("arbitrary",),
            vmem_limit_bytes=VMEM_LIMIT),
    )(*inputs)


# --------------------------------------------------------------------------
# Kernel 2: vocab-tiled projection + online log-softmax (two passes).
#   Pass A: per row-tile, sweep vocab tiles innermost, keep running max /
#           running sum-exp in VMEM scratch, emit norm = m + log(l).
#   Pass B: recompute the logits tile and write logits - norm.
#   Padded vocab columns carry bias -1e30 -> exp()==0, exact softmax over V.
# --------------------------------------------------------------------------
def _proj_stats_kernel(x_ref, wT_ref, b_ref, norm_ref, m_scr, l_scr):
    j = pl.program_id(1)

    @pl.when(j == 0)
    def _():
        m_scr[...] = jnp.full_like(m_scr, -jnp.inf)
        l_scr[...] = jnp.zeros_like(l_scr)

    logits = (jnp.dot(x_ref[...], wT_ref[...], preferred_element_type=F32)
              + b_ref[...])
    m_prev = m_scr[...]
    m_new = jnp.maximum(m_prev, jnp.max(logits, axis=-1, keepdims=True))
    l_scr[...] = (l_scr[...] * jnp.exp(m_prev - m_new)
                  + jnp.sum(jnp.exp(logits - m_new), axis=-1, keepdims=True))
    m_scr[...] = m_new

    @pl.when(j == pl.num_programs(1) - 1)
    def _():
        norm_ref[...] = m_scr[...] + jnp.log(l_scr[...])


def _proj_write_kernel(x_ref, wT_ref, b_ref, norm_ref, o_ref):
    logits = (jnp.dot(x_ref[...], wT_ref[...], preferred_element_type=F32)
              + b_ref[...])
    o_ref[...] = logits - norm_ref[...]


def proj_logsoftmax(x_bm, wT_pad, b_pad):
    N, Hp = x_bm.shape
    Vp = wT_pad.shape[1]
    rt = _row_tile(N)
    vt = _vocab_tile(Vp)
    grid = (N // rt, Vp // vt)

    norm = pl.pallas_call(
        _proj_stats_kernel,
        out_shape=jax.ShapeDtypeStruct((N, 1), F32),
        grid_spec=pltpu.PrefetchScalarGridSpec(
            num_scalar_prefetch=0,
            grid=grid,
            in_specs=[pl.BlockSpec((rt, Hp), lambda i, j: (i, 0)),
                      pl.BlockSpec((Hp, vt), lambda i, j: (0, j)),
                      pl.BlockSpec((1, vt), lambda i, j: (0, j))],
            out_specs=pl.BlockSpec((rt, 1), lambda i, j: (i, 0)),
            scratch_shapes=[pltpu.VMEM((rt, 1), F32),
                            pltpu.VMEM((rt, 1), F32)]),
        compiler_params=pltpu.CompilerParams(
            dimension_semantics=("parallel", "arbitrary"),
            vmem_limit_bytes=VMEM_LIMIT),
    )(x_bm, wT_pad, b_pad)

    logp = pl.pallas_call(
        _proj_write_kernel,
        out_shape=jax.ShapeDtypeStruct((N, Vp), F32),
        grid_spec=pltpu.PrefetchScalarGridSpec(
            num_scalar_prefetch=0,
            grid=grid,
            in_specs=[pl.BlockSpec((rt, Hp), lambda i, j: (i, 0)),
                      pl.BlockSpec((Hp, vt), lambda i, j: (0, j)),
                      pl.BlockSpec((1, vt), lambda i, j: (0, j)),
                      pl.BlockSpec((rt, 1), lambda i, j: (i, 0))],
            out_specs=pl.BlockSpec((rt, vt), lambda i, j: (i, j))),
        compiler_params=pltpu.CompilerParams(
            dimension_semantics=("parallel", "parallel"),
            vmem_limit_bytes=VMEM_LIMIT),
    )(x_bm, wT_pad, b_pad, norm)
    return logp


# --------------------------------------------------------------------------
# DecoderBase equivalent (parameters built deterministically in-script).
# Hidden size padded to a multiple of 128 and batch padded to a multiple of 8
# with zero weights in the padding (padded state provably stays exactly 0).
# --------------------------------------------------------------------------
class PallasDecoder:
    def __init__(self, embedding_size, hidden_size, num_lstm_layers,
                 vocab_size, num_step=13, seed=0, time_chunk=4):
        self.embedding_size = embedding_size
        self.hidden_size = hidden_size
        self.num_lstm_layers = num_lstm_layers
        self.vocab_size = vocab_size
        self.num_step = num_step
        # Production: size the chunk to the per-chip VMEM budget instead.
        self.max_time_chunk = time_chunk

        H, E, V = hidden_size, embedding_size, vocab_size
        Hp = _round_up(H, 128)
        Vp = _round_up(V, 128)
        self.hidden_pad, self.vocab_pad = Hp, Vp

        key = jax.random.PRNGKey(seed)
        ks = jax.random.split(key, 4 + num_lstm_layers)
        k_emb, k_lw, k_lb, k_map = ks[0], ks[1], ks[2], ks[3]
        klstm = ks[4:]
        inv_h = 1.0 / jnp.sqrt(jnp.float32(H))

        # nn.Embedding(vocab, embedding) ~ N(0,1), stored bf16.
        self.embedding = jax.random.normal(k_emb, (V, E), F32).astype(BF16)

        # nn.Linear(hidden, vocab): pre-transposed, padded, bf16 weight.
        lw = jax.random.uniform(k_lw, (V, H), F32, -inv_h, inv_h)
        lb = jax.random.uniform(k_lb, (V,), F32, -inv_h, inv_h)
        self.linear_wT = (jnp.zeros((Hp, Vp), F32)
                          .at[:H, :V].set(lw.T)).astype(BF16)
        self.linear_b = (jnp.full((1, Vp), -1e30, F32).at[0, :V].set(lb))

        # nn.Linear(1024, hidden): pre-transposed, padded, bf16 weight.
        inv_m = 1.0 / jnp.sqrt(jnp.float32(1024))
        km_w, km_b = jax.random.split(k_map)
        mw = jax.random.uniform(km_w, (H, 1024), F32, -inv_m, inv_m)
        mb = jax.random.uniform(km_b, (H,), F32, -inv_m, inv_m)
        self.mapping_wT = (jnp.zeros((1024, Hp), F32)
                           .at[:, :H].set(mw.T)).astype(BF16)
        self.mapping_b = jnp.zeros((1, Hp), F32).at[0, :H].set(mb)

        # nn.LSTM(embedding, hidden, num_layers), gate order i,f,g,o.
        # Pre-transposed, per-gate padded to Hp, combined bias, bf16 weights.
        self.lstm_params = []
        for l in range(num_lstm_layers):
            in_sz = E if l == 0 else H
            in_pad = E if l == 0 else Hp
            ka, kb, kc, kd = jax.random.split(klstm[l], 4)
            w_ih = jax.random.uniform(ka, (4 * H, in_sz), F32, -inv_h, inv_h)
            w_hh = jax.random.uniform(kb, (4 * H, H), F32, -inv_h, inv_h)
            b_ih = jax.random.uniform(kc, (4 * H,), F32, -inv_h, inv_h)
            b_hh = jax.random.uniform(kd, (4 * H,), F32, -inv_h, inv_h)
            w_ihT = jnp.zeros((in_pad, 4 * Hp), F32)
            w_hhT = jnp.zeros((Hp, 4 * Hp), F32)
            bias = jnp.zeros((1, 4 * Hp), F32)
            for g in range(4):
                w_ihT = w_ihT.at[:in_sz, g * Hp:g * Hp + H].set(
                    w_ih[g * H:(g + 1) * H, :].T)
                w_hhT = w_hhT.at[:H, g * Hp:g * Hp + H].set(
                    w_hh[g * H:(g + 1) * H, :].T)
                bias = bias.at[0, g * Hp:g * Hp + H].set(
                    b_ih[g * H:(g + 1) * H] + b_hh[g * H:(g + 1) * H])
            self.lstm_params.append((w_ihT.astype(BF16), w_hhT.astype(BF16),
                                     bias))

    @staticmethod
    def _pad_batch(B):
        return max(8, _round_up(B, 8))

    def _pick_chunk(self, T):
        best = 1
        for c in range(1, T + 1):
            if T % c == 0 and c <= self.max_time_chunk:
                best = c
        return best

    def apply_lstm(self, features, captions, lstm_hidden=None):
        B, T = captions.shape
        L, Hp, V, Vp = (self.num_lstm_layers, self.hidden_pad,
                        self.vocab_size, self.vocab_pad)
        Bp = self._pad_batch(B)

        cap_p = jnp.zeros((Bp, T), captions.dtype).at[:B].set(captions)
        feat_p = jnp.zeros((Bp, 1024), F32).at[:B].set(features).astype(BF16)

        # Time-major embedding gather (no (B,T,E)->(T,B,E) transpose of the
        # embedded activations; only the tiny int token matrix is transposed).
        x2d = jnp.take(self.embedding, cap_p.T.reshape(T * Bp), axis=0)

        if lstm_hidden is None:
            h0 = jnp.zeros((L, Bp, Hp), F32)
            c0 = h0
            init_from_features = True
        else:
            h0, c0 = lstm_hidden
            init_from_features = False

        chunk = self._pick_chunk(T)
        y, hT, cT = lstm_forward(
            x2d, feat_p, self.mapping_wT, self.mapping_b, self.lstm_params,
            h0, c0, seq_len=T, chunk=chunk,
            init_from_features=init_from_features)          # y: (T*Bp, Hp) bf16

        # Batch-major rows so the final (B,T,V) layout is a free reshape.
        y_bm = y.reshape(T, Bp, Hp).transpose(1, 0, 2).reshape(Bp * T, Hp)
        logp = proj_logsoftmax(y_bm, self.linear_wT, self.linear_b)
        probs = logp.reshape(Bp, T, Vp)[:B, :, :V]
        return probs, (hT, cT)

    def predict(self, features, go_tokens, num_step=1):
        lstm_input = go_tokens
        output_probs = []
        lstm_hidden = None
        for _ in range(num_step):
            probs, lstm_hidden = self.apply_lstm(features, lstm_input,
                                                 lstm_hidden)
            output_probs.append(probs)
            preds = jnp.argmax(probs, axis=2).astype(go_tokens.dtype)
            lstm_input = preds
        return jnp.concatenate(output_probs, axis=1)

    def forward(self, features, captions, use_teacher_forcing=False):
        if use_teacher_forcing:
            probs, _ = self.apply_lstm(features, captions)
        else:
            probs = self.predict(features, captions, num_step=17)
        return probs


# --------------------------------------------------------------------------
# Pure-JAX reference (mirrors the kernel's bf16 matmul / f32 gate math) used
# only for the correctness check in __main__.
# --------------------------------------------------------------------------
def _reference_logprobs(dec, features, captions):
    B, T = captions.shape
    L, Hp, V = dec.num_lstm_layers, dec.hidden_pad, dec.vocab_size
    Bp = dec._pad_batch(B)
    cap_p = jnp.zeros((Bp, T), captions.dtype).at[:B].set(captions)
    feat_p = jnp.zeros((Bp, 1024), F32).at[:B].set(features).astype(BF16)
    x = jnp.take(dec.embedding, cap_p.T.reshape(T * Bp),
                 axis=0).reshape(T, Bp, dec.embedding_size)

    mapped = (jnp.dot(feat_p, dec.mapping_wT, preferred_element_type=F32)
              + dec.mapping_b)
    h = [mapped] * L
    c = [mapped] * L
    ys = []
    for t in range(T):
        inp = x[t]
        for l in range(L):
            w_ihT, w_hhT, b = dec.lstm_params[l]
            g = (jnp.dot(inp, w_ihT, preferred_element_type=F32) + b
                 + jnp.dot(h[l].astype(BF16), w_hhT,
                           preferred_element_type=F32))
            i_g = jax.nn.sigmoid(g[:, 0 * Hp:1 * Hp])
            f_g = jax.nn.sigmoid(g[:, 1 * Hp:2 * Hp])
            g_g = jnp.tanh(g[:, 2 * Hp:3 * Hp])
            o_g = jax.nn.sigmoid(g[:, 3 * Hp:4 * Hp])
            c[l] = f_g * c[l] + i_g * g_g
            h[l] = o_g * jnp.tanh(c[l])
            inp = h[l].astype(BF16)
        ys.append(inp)
    y = jnp.stack(ys, axis=0)                                   # (T,Bp,Hp) bf16
    y_bm = jnp.transpose(y, (1, 0, 2)).reshape(Bp * T, Hp)
    logits = (jnp.dot(y_bm, dec.linear_wT, preferred_element_type=F32)
              + dec.linear_b)
    logp = jax.nn.log_softmax(logits, axis=-1)
    return logp.reshape(Bp, T, -1)[:B, :, :V]


if __name__ == "__main__":
    B, T = 2, 8
    EMB, HID, LAYERS, VOCAB = 32, 32, 2, 300   # Vp=384 -> 3 vocab tiles

    decoder = PallasDecoder(EMB, HID, LAYERS, VOCAB, num_step=13, seed=0,
                            time_chunk=4)      # T=8 -> 2 time chunks

    key = jax.random.PRNGKey(0)
    kf, kc = jax.random.split(key)
    features = jax.random.normal(kf, (B, 1024), F32)
    captions = jax.random.randint(kc, (B, T), 0, VOCAB, jnp.int32)

    run = jax.jit(functools.partial(decoder.forward, use_teacher_forcing=True))
    probs = jax.block_until_ready(run(features, captions))

    assert probs.shape == (B, T, VOCAB)
    # rows are valid log-probability distributions
    assert bool(jnp.allclose(jnp.sum(jnp.exp(probs), axis=-1), 1.0, atol=1e-3))
    # matches a pure-JAX reference of the same (bf16-weight) math
    ref = _reference_logprobs(decoder, features, captions)
    err = float(jnp.max(jnp.abs(probs - ref)))
    assert bool(jnp.allclose(probs, ref, atol=2e-2)), err

    # exercise the hidden-carry greedy-decode path (2 small steps)
    dec_probs = jax.block_until_ready(
        decoder.predict(features, captions[:, :1], num_step=2))
    assert dec_probs.shape == (B, 2, VOCAB)

    print("KERNEL_OK")
</pallas_src>

<mosaic_0001>
module attributes {stable_mosaic.version = 11 : i64} {
  func.func @_proj_write_kernel(%arg0: i32, %arg1: i32, %arg2: memref<64x128xbf16, #tpu.memory_space<vmem>>, %arg3: memref<128x128xbf16, #tpu.memory_space<vmem>>, %arg4: memref<1x128xf32, #tpu.memory_space<vmem>>, %arg5: memref<64x1xf32, #tpu.memory_space<vmem>>, %arg6: memref<64x128xf32, #tpu.memory_space<vmem>>) attributes {dimension_semantics = [#tpu.dimension_semantics<parallel>, #tpu.dimension_semantics<parallel>], iteration_bounds = array<i64: 1, 3>, scalar_prefetch = 0 : i64, scratch_operands = 0 : i64, tpu.core_type = #tpu.core_type<tc>, window_params = [{transform_indices = @transform_0, window_bounds = array<i64: 64, 128>}, {transform_indices = @transform_1, window_bounds = array<i64: 128, 128>}, {transform_indices = @transform_2, window_bounds = array<i64: 1, 128>}, {transform_indices = @transform_3, window_bounds = array<i64: 64, 1>}, {transform_indices = @transform_4, window_bounds = array<i64: 64, 128>}]} {
    %c0 = arith.constant 0 : index
    %c0_0 = arith.constant 0 : index
    %0 = vector.load %arg2[%c0, %c0_0] : memref<64x128xbf16, #tpu.memory_space<vmem>>, vector<64x128xbf16>
    %c0_1 = arith.constant 0 : index
    %c0_2 = arith.constant 0 : index
    %1 = vector.load %arg3[%c0_1, %c0_2] : memref<128x128xbf16, #tpu.memory_space<vmem>>, vector<128x128xbf16>
    %cst = arith.constant dense<0.000000e+00> : vector<64x128xf32>
    %2 = tpu.matmul %0, %1, %cst {dimension_numbers = #tpu.dot_dimension_numbers<[1], [0], [0], [1], [0, 0, 1, 1], [], []>} : vector<64x128xbf16>, vector<128x128xbf16>, vector<64x128xf32> -> vector<64x128xf32>
    %c0_3 = arith.constant 0 : index
    %c0_4 = arith.constant 0 : index
    %3 = vector.load %arg4[%c0_3, %c0_4] : memref<1x128xf32, #tpu.memory_space<vmem>>, vector<1x128xf32>
    %4 = vector.broadcast %3 : vector<1x128xf32> to vector<64x128xf32>
    %5 = arith.addf %2, %4 : vector<64x128xf32>
    %c0_5 = arith.constant 0 : index
    %c0_6 = arith.constant 0 : index
    %6 = vector.load %arg5[%c0_5, %c0_6] : memref<64x1xf32, #tpu.memory_space<vmem>>, vector<64x1xf32>
    %7 = vector.broadcast %6 : vector<64x1xf32> to vector<64x128xf32>
    %8 = arith.subf %5, %7 : vector<64x128xf32>
    %c0_7 = arith.constant 0 : index
    %c0_8 = arith.constant 0 : index
    %9 = vector.load %arg6[%c0_7, %c0_8] : memref<64x128xf32, #tpu.memory_space<vmem>>, vector<64x128xf32>
    tpu.vector_store %arg6[%c0_7, %c0_8], %8 {strides = array<i32>} : memref<64x128xf32, #tpu.memory_space<vmem>>, vector<64x128xf32>,
    return
  }
  func.func @transform_0(%arg0: i32, %arg1: i32) -> (i32, i32) {
    %c0_i32 = arith.constant 0 : i32
    %c0_i32_0 = arith.constant 0 : i32
    return %arg0, %c0_i32 : i32, i32
  }
  func.func @transform_1(%arg0: i32, %arg1: i32) -> (i32, i32) {
    %c0_i32 = arith.constant 0 : i32
    %c0_i32_0 = arith.constant 0 : i32
    return %c0_i32, %arg1 : i32, i32
  }
  func.func @transform_2(%arg0: i32, %arg1: i32) -> (i32, i32) {
    %c0_i32 = arith.constant 0 : i32
    %c0_i32_0 = arith.constant 0 : i32
    return %c0_i32, %arg1 : i32, i32
  }
  func.func @transform_3(%arg0: i32, %arg1: i32) -> (i32, i32) {
    %c0_i32 = arith.constant 0 : i32
    %c0_i32_0 = arith.constant 0 : i32
    return %arg0, %c0_i32 : i32, i32
  }
  func.func @transform_4(%arg0: i32, %arg1: i32) -> (i32, i32) {
    %c0_i32 = arith.constant 0 : i32
    return %arg0, %arg1 : i32, i32
  }
}

module attributes {stable_mosaic.version = 11 : i64} {
  func.func @_proj_stats_kernel(%arg0: i32, %arg1: i32, %arg2: memref<64x128xbf16, #tpu.memory_space<vmem>>, %arg3: memref<128x128xbf16, #tpu.memory_space<vmem>>, %arg4: memref<1x128xf32, #tpu.memory_space<vmem>>, %arg5: memref<64x1xf32, #tpu.memory_space<vmem>>, %arg6: memref<64x1xf32, #tpu.memory_space<vmem>>, %arg7: memref<64x1xf32, #tpu.memory_space<vmem>>) attributes {dimension_semantics = [#tpu.dimension_semantics<parallel>, #tpu.dimension_semantics<arbitrary>], iteration_bounds = array<i64: 1, 3>, scalar_prefetch = 0 : i64, scratch_operands = 2 : i64, tpu.core_type = #tpu.core_type<tc>, window_params = [{transform_indices = @transform_0, window_bounds = array<i64: 64, 128>}, {transform_indices = @transform_1, window_bounds = array<i64: 128, 128>}, {transform_indices = @transform_2, window_bounds = array<i64: 1, 128>}, {transform_indices = @transform_3, window_bounds = array<i64: 64, 1>}]} {
    %c0_i32 = arith.constant 0 : i32
    %0 = arith.cmpi eq, %arg1, %c0_i32 : i32
    %1 = arith.extui %0 : i1 to i32
    %c0_i32_0 = arith.constant 0 : i32
    %2 = arith.cmpi ne, %1, %c0_i32_0 : i32
    scf.if %2 {
      %cst_17 = arith.constant 0xFF800000 : f32
      %28 = vector.broadcast %cst_17 : f32 to vector<64x1xf32>
      %c0_18 = arith.constant 0 : index
      %c0_19 = arith.constant 0 : index
      %29 = vector.load %arg6[%c0_18, %c0_19] : memref<64x1xf32, #tpu.memory_space<vmem>>, vector<64x1xf32>
      tpu.vector_store %arg6[%c0_18, %c0_19], %28 {strides = array<i32>} : memref<64x1xf32, #tpu.memory_space<vmem>>, vector<64x1xf32>,
      %cst_20 = arith.constant 0.000000e+00 : f32
      %30 = vector.broadcast %cst_20 : f32 to vector<64x1xf32>
      %c0_21 = arith.constant 0 : index
      %c0_22 = arith.constant 0 : index
      %31 = vector.load %arg7[%c0_21, %c0_22] : memref<64x1xf32, #tpu.memory_space<vmem>>, vector<64x1xf32>
      tpu.vector_store %arg7[%c0_21, %c0_22], %30 {strides = array<i32>} : memref<64x1xf32, #tpu.memory_space<vmem>>, vector<64x1xf32>,
    } else {
    }
    %c0 = arith.constant 0 : index
    %c0_1 = arith.constant 0 : index
    %3 = vector.load %arg2[%c0, %c0_1] : memref<64x128xbf16, #tpu.memory_space<vmem>>, vector<64x128xbf16>
    %c0_2 = arith.constant 0 : index
    %c0_3 = arith.constant 0 : index
    %4 = vector.load %arg3[%c0_2, %c0_3] : memref<128x128xbf16, #tpu.memory_space<vmem>>, vector<128x128xbf16>
    %cst = arith.constant dense<0.000000e+00> : vector<64x128xf32>
    %5 = tpu.matmul %3, %4, %cst {dimension_numbers = #tpu.dot_dimension_numbers<[1], [0], [0], [1], [0, 0, 1, 1], [], []>} : vector<64x128xbf16>, vector<128x128xbf16>, vector<64x128xf32> -> vector<64x128xf32>
    %c0_4 = arith.constant 0 : index
    %c0_5 = arith.constant 0 : index
    %6 = vector.load %arg4[%c0_4, %c0_5] : memref<1x128xf32, #tpu.memory_space<vmem>>, vector<1x128xf32>
    %7 = vector.broadcast %6 : vector<1x128xf32> to vector<64x128xf32>
    %8 = arith.addf %5, %7 : vector<64x128xf32>
    %c0_6 = arith.constant 0 : index
    %c0_7 = arith.constant 0 : index
    %9 = vector.load %arg6[%c0_6, %c0_7] : memref<64x1xf32, #tpu.memory_space<vmem>>, vector<64x1xf32>
    %cst_8 = arith.constant dense<0xFF800000> : vector<64xf32>
    %10 = vector.multi_reduction <maximumf>, %8, %cst_8 [1] : vector<64x128xf32> to vector<64xf32>
    %11 = vector.shape_cast %10 : vector<64xf32> to vector<64x1xf32>
    %12 = arith.maximumf %9, %11 : vector<64x1xf32>
    %c0_9 = arith.constant 0 : index
    %c0_10 = arith.constant 0 : index
    %13 = vector.load %arg7[%c0_9, %c0_10] : memref<64x1xf32, #tpu.memory_space<vmem>>, vector<64x1xf32>
    %14 = arith.subf %9, %12 : vector<64x1xf32>
    %15 = math.exp %14 : vector<64x1xf32>
    %16 = arith.mulf %13, %15 : vector<64x1xf32>
    %17 = vector.broadcast %12 : vector<64x1xf32> to vector<64x128xf32>
    %18 = arith.subf %8, %17 : vector<64x128xf32>
    %19 = math.exp %18 : vector<64x128xf32>
    %cst_11 = arith.constant dense<0.000000e+00> : vector<64xf32>
    %20 = vector.multi_reduction <add>, %19, %cst_11 [1] : vector<64x128xf32> to vector<64xf32>
    %21 = vector.shape_cast %20 : vector<64xf32> to vector<64x1xf32>
    %22 = arith.addf %16, %21 : vector<64x1xf32>
    %c0_12 = arith.constant 0 : index
    %c0_13 = arith.constant 0 : index
    %23 = vector.load %arg7[%c0_12, %c0_13] : memref<64x1xf32, #tpu.memory_space<vmem>>, vector<64x1xf32>
    tpu.vector_store %arg7[%c0_12, %c0_13], %22 {strides = array<i32>} : memref<64x1xf32, #tpu.memory_space<vmem>>, vector<64x1xf32>,
    %c0_14 = arith.constant 0 : index
    %c0_15 = arith.constant 0 : index
    %24 = vector.load %arg6[%c0_14, %c0_15] : memref<64x1xf32, #tpu.memory_space<vmem>>, vector<64x1xf32>
    tpu.vector_store %arg6[%c0_14, %c0_15], %12 {strides = array<i32>} : memref<64x1xf32, #tpu.memory_space<vmem>>, vector<64x1xf32>,
    %c2_i32 = arith.constant 2 : i32
    %25 = arith.cmpi eq, %arg1, %c2_i32 : i32
    %26 = arith.extui %25 : i1 to i32
    %c0_i32_16 = arith.constant 0 : i32
    %27 = arith.cmpi ne, %26, %c0_i32_16 : i32
    scf.if %27 {
      %c0_17 = arith.constant 0 : index
      %c0_18 = arith.constant 0 : index
      %28 = vector.load %arg6[%c0_17, %c0_18] : memref<64x1xf32, #tpu.memory_space<vmem>>, vector<64x1xf32>
      %c0_19 = arith.constant 0 : index
      %c0_20 = arith.constant 0 : index
      %29 = vector.load %arg7[%c0_19, %c0_20] : memref<64x1xf32, #tpu.memory_space<vmem>>, vector<64x1xf32>
      %30 = math.log %29 : vector<64x1xf32>
      %31 = arith.addf %28, %30 : vector<64x1xf32>
      %c0_21 = arith.constant 0 : index
      %c0_22 = arith.constant 0 : index
      %32 = vector.load %arg5[%c0_21, %c0_22] : memref<64x1xf32, #tpu.memory_space<vmem>>, vector<64x1xf32>
      tpu.vector_store %arg5[%c0_21, %c0_22], %31 {strides = array<i32>} : memref<64x1xf32, #tpu.memory_space<vmem>>, vector<64x1xf32>,
    } else {
    }
    return
  }
  func.func @transform_0(%arg0: i32, %arg1: i32) -> (i32, i32) {
    %c0_i32 = arith.constant 0 : i32
    %c0_i32_0 = arith.constant 0 : i32
    return %arg0, %c0_i32 : i32, i32
  }
  func.func @transform_1(%arg0: i32, %arg1: i32) -> (i32, i32) {
    %c0_i32 = arith.constant 0 : i32
    %c0_i32_0 = arith.constant 0 : i32
    return %c0_i32, %arg1 : i32, i32
  }
  func.func @transform_2(%arg0: i32, %arg1: i32) -> (i32, i32) {
    %c0_i32 = arith.constant 0 : i32
    %c0_i32_0 = arith.constant 0 : i32
    return %c0_i32, %arg1 : i32, i32
  }
  func.func @transform_3(%arg0: i32, %arg1: i32) -> (i32, i32) {
    %c0_i32 = arith.constant 0 : i32
    %c0_i32_0 = arith.constant 0 : i32
    return %arg0, %c0_i32 : i32, i32
  }
}

module attributes {stable_mosaic.version = 11 : i64} {
  func.func @kernel(%arg0: i32, %arg1: memref<32x32xbf16, #tpu.memory_space<vmem>>, %arg2: memref<8x1024xbf16, #tpu.memory_space<vmem>>, %arg3: memref<1024x128xbf16, #tpu.memory_space<vmem>>, %arg4: memref<1x128xf32, #tpu.memory_space<vmem>>, %arg5: memref<32x512xbf16, #tpu.memory_space<vmem>>, %arg6: memref<128x512xbf16, #tpu.memory_space<vmem>>, %arg7: memref<1x512xf32, #tpu.memory_space<vmem>>, %arg8: memref<128x512xbf16, #tpu.memory_space<vmem>>, %arg9: memref<128x512xbf16, #tpu.memory_space<vmem>>, %arg10: memref<1x512xf32, #tpu.memory_space<vmem>>, %arg11: memref<2x8x128xf32, #tpu.memory_space<vmem>>, %arg12: memref<2x8x128xf32, #tpu.memory_space<vmem>>, %arg13: memref<32x128xbf16, #tpu.memory_space<vmem>>, %arg14: memref<2x8x128xf32, #tpu.memory_space<vmem>>, %arg15: memref<2x8x128xf32, #tpu.memory_space<vmem>>, %arg16: memref<32x512xf32, #tpu.memory_space<vmem>>, %arg17: memref<32x128xbf16, #tpu.memory_space<vmem>>) attributes {dimension_semantics = [#tpu.dimension_semantics<arbitrary>], iteration_bounds = array<i64: 2>, scalar_prefetch = 0 : i64, scratch_operands = 2 : i64, tpu.core_type = #tpu.core_type<tc>, window_params = [{transform_indices = @transform_0, window_bounds = array<i64: 32, 32>}, {pipeline_mode = #tpu.pipeline_mode<synchronous>, transform_indices = @transform_1, window_bounds = array<i64: 8, 1024>}, {pipeline_mode = #tpu.pipeline_mode<synchronous>, transform_indices = @transform_2, window_bounds = array<i64: 1024, 128>}, {pipeline_mode = #tpu.pipeline_mode<synchronous>, transform_indices = @transform_3, window_bounds = array<i64: 1, 128>}, {pipeline_mode = #tpu.pipeline_mode<synchronous>, transform_indices = @transform_4, window_bounds = array<i64: 32, 512>}, {pipeline_mode = #tpu.pipeline_mode<synchronous>, transform_indices = @transform_5, window_bounds = array<i64: 128, 512>}, {pipeline_mode = #tpu.pipeline_mode<synchronous>, transform_indices = @transform_6, window_bounds = array<i64: 1, 512>}, {pipeline_mode = #tpu.pipeline_mode<synchronous>, transform_indices = @transform_7, window_bounds = array<i64: 128, 512>}, {pipeline_mode = #tpu.pipeline_mode<synchronous>, transform_indices = @transform_8, window_bounds = array<i64: 128, 512>}, {pipeline_mode = #tpu.pipeline_mode<synchronous>, transform_indices = @transform_9, window_bounds = array<i64: 1, 512>}, {pipeline_mode = #tpu.pipeline_mode<synchronous>, transform_indices = @transform_10, window_bounds = array<i64: 2, 8, 128>}, {pipeline_mode = #tpu.pipeline_mode<synchronous>, transform_indices = @transform_11, window_bounds = array<i64: 2, 8, 128>}, {transform_indices = @transform_12, window_bounds = array<i64: 32, 128>}, {pipeline_mode = #tpu.pipeline_mode<synchronous>, transform_indices = @transform_13, window_bounds = array<i64: 2, 8, 128>}, {pipeline_mode = #tpu.pipeline_mode<synchronous>, transform_indices = @transform_14, window_bounds = array<i64: 2, 8, 128>}]} {
    %c0_i32 = arith.constant 0 : i32
    %0 = arith.cmpi eq, %arg0, %c0_i32 : i32
    %1 = arith.extui %0 : i1 to i32
    %c0_i32_0 = arith.constant 0 : i32
    %2 = arith.cmpi ne, %1, %c0_i32_0 : i32
    scf.if %2 {
      %c0_105 = arith.constant 0 : index
      %c0_106 = arith.constant 0 : index
      %319 = vector.load %arg2[%c0_105, %c0_106] : memref<8x1024xbf16, #tpu.memory_space<vmem>>, vector<8x1024xbf16>
      %c0_107 = arith.constant 0 : index
      %c0_108 = arith.constant 0 : index
      %320 = vector.load %arg3[%c0_107, %c0_108] : memref<1024x128xbf16, #tpu.memory_space<vmem>>, vector<1024x128xbf16>
      %cst_109 = arith.constant dense<0.000000e+00> : vector<8x128xf32>
      %321 = tpu.matmul %319, %320, %cst_109 {dimension_numbers = #tpu.dot_dimension_numbers<[1], [0], [0], [1], [0, 0, 1, 1], [], []>} : vector<8x1024xbf16>, vector<1024x128xbf16>, vector<8x128xf32> -> vector<8x128xf32>
      %c0_110 = arith.constant 0 : index
      %c0_111 = arith.constant 0 : index
      %322 = vector.load %arg4[%c0_110, %c0_111] : memref<1x128xf32, #tpu.memory_space<vmem>>, vector<1x128xf32>
      %323 = vector.broadcast %322 : vector<1x128xf32> to vector<8x128xf32>
      %324 = arith.addf %321, %323 : vector<8x128xf32>
      %c0_112 = arith.constant 0 : index
      %c0_113 = arith.constant 0 : index
      %c0_114 = arith.constant 0 : index
      %325 = vector.load %arg14[%c0_112, %c0_113, %c0_114] : memref<2x8x128xf32, #tpu.memory_space<vmem>>, vector<1x8x128xf32>
      %326 = vector.shape_cast %325 : vector<1x8x128xf32> to vector<8x128xf32>
      %327 = vector.shape_cast %324 : vector<8x128xf32> to vector<1x8x128xf32>
      tpu.vector_store %arg14[%c0_112, %c0_113, %c0_114], %327 {strides = array<i32>} : memref<2x8x128xf32, #tpu.memory_space<vmem>>, vector<1x8x128xf32>,
      %c0_115 = arith.constant 0 : index
      %c0_116 = arith.constant 0 : index
      %c0_117 = arith.constant 0 : index
      %328 = vector.load %arg15[%c0_115, %c0_116, %c0_117] : memref<2x8x128xf32, #tpu.memory_space<vmem>>, vector<1x8x128xf32>
      %329 = vector.shape_cast %328 : vector<1x8x128xf32> to vector<8x128xf32>
      %330 = vector.shape_cast %324 : vector<8x128xf32> to vector<1x8x128xf32>
      tpu.vector_store %arg15[%c0_115, %c0_116, %c0_117], %330 {strides = array<i32>} : memref<2x8x128xf32, #tpu.memory_space<vmem>>, vector<1x8x128xf32>,
      %c1_118 = arith.constant 1 : index
      %c0_119 = arith.constant 0 : index
      %c0_120 = arith.constant 0 : index
      %331 = vector.load %arg14[%c1_118, %c0_119, %c0_120] : memref<2x8x128xf32, #tpu.memory_space<vmem>>, vector<1x8x128xf32>
      %332 = vector.shape_cast %331 : vector<1x8x128xf32> to vector<8x128xf32>
      %333 = vector.shape_cast %324 : vector<8x128xf32> to vector<1x8x128xf32>
      tpu.vector_store %arg14[%c1_118, %c0_119, %c0_120], %333 {strides = array<i32>} : memref<2x8x128xf32, #tpu.memory_space<vmem>>, vector<1x8x128xf32>,
      %c1_121 = arith.constant 1 : index
      %c0_122 = arith.constant 0 : index
      %c0_123 = arith.constant 0 : index
      %334 = vector.load %arg15[%c1_121, %c0_122, %c0_123] : memref<2x8x128xf32, #tpu.memory_space<vmem>>, vector<1x8x128xf32>
      %335 = vector.shape_cast %334 : vector<1x8x128xf32> to vector<8x128xf32>
      %336 = vector.shape_cast %324 : vector<8x128xf32> to vector<1x8x128xf32>
      tpu.vector_store %arg15[%c1_121, %c0_122, %c0_123], %336 {strides = array<i32>} : memref<2x8x128xf32, #tpu.memory_space<vmem>>, vector<1x8x128xf32>,
    } else {
    }
    %c0 = arith.constant 0 : index
    %c0_1 = arith.constant 0 : index
    %3 = vector.load %arg1[%c0, %c0_1] : memref<32x32xbf16, #tpu.memory_space<vmem>>, vector<32x32xbf16>
    %c0_2 = arith.constant 0 : index
    %c0_3 = arith.constant 0 : index
    %4 = vector.load %arg5[%c0_2, %c0_3] : memref<32x512xbf16, #tpu.memory_space<vmem>>, vector<32x512xbf16>
    %cst = arith.constant dense<0.000000e+00> : vector<32x512xf32>
    %5 = tpu.matmul %3, %4, %cst {dimension_numbers = #tpu.dot_dimension_numbers<[1], [0], [0], [1], [0, 0, 1, 1], [], []>} : vector<32x32xbf16>, vector<32x512xbf16>, vector<32x512xf32> -> vector<32x512xf32>
    %c0_4 = arith.constant 0 : index
    %c0_5 = arith.constant 0 : index
    %6 = vector.load %arg7[%c0_4, %c0_5] : memref<1x512xf32, #tpu.memory_space<vmem>>, vector<1x512xf32>
    %7 = vector.broadcast %6 : vector<1x512xf32> to vector<32x512xf32>
    %8 = arith.addf %5, %7 : vector<32x512xf32>
    %c0_6 = arith.constant 0 : index
    %c0_7 = arith.constant 0 : index
    %9 = vector.load %arg16[%c0_6, %c0_7] : memref<32x512xf32, #tpu.memory_space<vmem>>, vector<32x512xf32>
    tpu.vector_store %arg16[%c0_6, %c0_7], %8 {strides = array<i32>} : memref<32x512xf32, #tpu.memory_space<vmem>>, vector<32x512xf32>,
    %c0_8 = arith.constant 0 : index
    %c0_9 = arith.constant 0 : index
    %10 = vector.load %arg6[%c0_8, %c0_9] : memref<128x512xbf16, #tpu.memory_space<vmem>>, vector<128x512xbf16>
    %c0_10 = arith.constant 0 : index
    %c0_11 = arith.constant 0 : index
    %c0_12 = arith.constant 0 : index
    %11 = vector.load %arg14[%c0_10, %c0_11, %c0_12] : memref<2x8x128xf32, #tpu.memory_space<vmem>>, vector<1x8x128xf32>
    %12 = vector.shape_cast %11 : vector<1x8x128xf32> to vector<8x128xf32>
    %c0_13 = arith.constant 0 : index
    %c0_14 = arith.constant 0 : index
    %c0_15 = arith.constant 0 : index
    %13 = vector.load %arg15[%c0_13, %c0_14, %c0_15] : memref<2x8x128xf32, #tpu.memory_space<vmem>>, vector<1x8x128xf32>
    %14 = vector.shape_cast %13 : vector<1x8x128xf32> to vector<8x128xf32>
    %c0_i32_16 = arith.constant 0 : i32
    %c8_i32 = arith.constant 8 : i32
    %15 = arith.muli %c0_i32_16, %c8_i32 : i32
    %16 = tpu.assume_multiple %15, 8 : i32
    %17 = arith.index_cast %16 : i32 to index
    %c0_17 = arith.constant 0 : index
    %18 = vector.load %arg16[%17, %c0_17] : memref<32x512xf32, #tpu.memory_space<vmem>>, vector<8x512xf32>
    %19 = arith.truncf %12 : vector<8x128xf32> to vector<8x128xbf16>
    %cst_18 = arith.constant dense<0.000000e+00> : vector<8x512xf32>
    %20 = tpu.matmul %19, %10, %cst_18 {dimension_numbers = #tpu.dot_dimension_numbers<[1], [0], [0], [1], [0, 0, 1, 1], [], []>} : vector<8x128xbf16>, vector<128x512xbf16>, vector<8x512xf32> -> vector<8x512xf32>
    %21 = arith.addf %18, %20 : vector<8x512xf32>
    %22 = vector.extract_strided_slice %21 {offsets = [0, 0], sizes = [8, 128], strides = [1, 1]} : vector<8x512xf32> to vector<8x128xf32>
    %23 = arith.negf %22 : vector<8x128xf32>
    %24 = math.exp %23 : vector<8x128xf32>
    %cst_19 = arith.constant 1.000000e+00 : f32
    %25 = vector.broadcast %cst_19 : f32 to vector<8x128xf32>
    %26 = arith.addf %25, %24 : vector<8x128xf32>
    %27 = arith.divf %25, %26 : vector<8x128xf32>
    %28 = vector.extract_strided_slice %21 {offsets = [0, 128], sizes = [8, 128], strides = [1, 1]} : vector<8x512xf32> to vector<8x128xf32>
    %29 = arith.negf %28 : vector<8x128xf32>
    %30 = math.exp %29 : vector<8x128xf32>
    %cst_20 = arith.constant 1.000000e+00 : f32
    %31 = vector.broadcast %cst_20 : f32 to vector<8x128xf32>
    %32 = arith.addf %31, %30 : vector<8x128xf32>
    %33 = arith.divf %31, %32 : vector<8x128xf32>
    %34 = vector.extract_strided_slice %21 {offsets = [0, 256], sizes = [8, 128], strides = [1, 1]} : vector<8x512xf32> to vector<8x128xf32>
    %35 = math.tanh %34 : vector<8x128xf32>
    %36 = vector.extract_strided_slice %21 {offsets = [0, 384], sizes = [8, 128], strides = [1, 1]} : vector<8x512xf32> to vector<8x128xf32>
    %37 = arith.negf %36 : vector<8x128xf32>
    %38 = math.exp %37 : vector<8x128xf32>
    %cst_21 = arith.constant 1.000000e+00 : f32
    %39 = vector.broadcast %cst_21 : f32 to vector<8x128xf32>
    %40 = arith.addf %39, %38 : vector<8x128xf32>
    %41 = arith.divf %39, %40 : vector<8x128xf32>
    %42 = arith.mulf %33, %14 : vector<8x128xf32>
    %43 = arith.mulf %27, %35 : vector<8x128xf32>
    %44 = arith.addf %42, %43 : vector<8x128xf32>
    %45 = math.tanh %44 : vector<8x128xf32>
    %46 = arith.mulf %41, %45 : vector<8x128xf32>
    %47 = arith.truncf %46 : vector<8x128xf32> to vector<8x128xbf16>
    %48 = arith.index_cast %16 : i32 to index
    %c0_22 = arith.constant 0 : index
    %49 = vector.load %arg17[%48, %c0_22] : memref<32x128xbf16, #tpu.memory_space<vmem>>, vector<8x128xbf16>
    tpu.vector_store %arg17[%48, %c0_22], %47 {strides = array<i32>} : memref<32x128xbf16, #tpu.memory_space<vmem>>, vector<8x128xbf16>,
    %c1_i32 = arith.constant 1 : i32
    %c8_i32_23 = arith.constant 8 : i32
    %50 = arith.muli %c1_i32, %c8_i32_23 : i32
    %51 = tpu.assume_multiple %50, 8 : i32
    %52 = arith.index_cast %51 : i32 to index
    %c0_24 = arith.constant 0 : index
    %53 = vector.load %arg16[%52, %c0_24] : memref<32x512xf32, #tpu.memory_space<vmem>>, vector<8x512xf32>
    %54 = arith.truncf %46 : vector<8x128xf32> to vector<8x128xbf16>
    %cst_25 = arith.constant dense<0.000000e+00> : vector<8x512xf32>
    %55 = tpu.matmul %54, %10, %cst_25 {dimension_numbers = #tpu.dot_dimension_numbers<[1], [0], [0], [1], [0, 0, 1, 1], [], []>} : vector<8x128xbf16>, vector<128x512xbf16>, vector<8x512xf32> -> vector<8x512xf32>
    %56 = arith.addf %53, %55 : vector<8x512xf32>
    %57 = vector.extract_strided_slice %56 {offsets = [0, 0], sizes = [8, 128], strides = [1, 1]} : vector<8x512xf32> to vector<8x128xf32>
    %58 = arith.negf %57 : vector<8x128xf32>
    %59 = math.exp %58 : vector<8x128xf32>
    %cst_26 = arith.constant 1.000000e+00 : f32
    %60 = vector.broadcast %cst_26 : f32 to vector<8x128xf32>
    %61 = arith.addf %60, %59 : vector<8x128xf32>
    %62 = arith.divf %60, %61 : vector<8x128xf32>
    %63 = vector.extract_strided_slice %56 {offsets = [0, 128], sizes = [8, 128], strides = [1, 1]} : vector<8x512xf32> to vector<8x128xf32>
    %64 = arith.negf %63 : vector<8x128xf32>
    %65 = math.exp %64 : vector<8x128xf32>
    %cst_27 = arith.constant 1.000000e+00 : f32
    %66 = vector.broadcast %cst_27 : f32 to vector<8x128xf32>
    %67 = arith.addf %66, %65 : vector<8x128xf32>
    %68 = arith.divf %66, %67 : vector<8x128xf32>
    %69 = vector.extract_strided_slice %56 {offsets = [0, 256], sizes = [8, 128], strides = [1, 1]} : vector<8x512xf32> to vector<8x128xf32>
    %70 = math.tanh %69 : vector<8x128xf32>
    %71 = vector.extract_strided_slice %56 {offsets = [0, 384], sizes = [8, 128], strides = [1, 1]} : vector<8x512xf32> to vector<8x128xf32>
    %72 = arith.negf %71 : vector<8x128xf32>
    %73 = math.exp %72 : vector<8x128xf32>
    %cst_28 = arith.constant 1.000000e+00 : f32
    %74 = vector.broadcast %cst_28 : f32 to vector<8x128xf32>
    %75 = arith.addf %74, %73 : vector<8x128xf32>
    %76 = arith.divf %74, %75 : vector<8x128xf32>
    %77 = arith.mulf %68, %44 : vector<8x128xf32>
    %78 = arith.mulf %62, %70 : vector<8x128xf32>
    %79 = arith.addf %77, %78 : vector<8x128xf32>
    %80 = math.tanh %79 : vector<8x128xf32>
    %81 = arith.mulf %76, %80 : vector<8x128xf32>
    %82 = arith.truncf %81 : vector<8x128xf32> to vector<8x128xbf16>
    %83 = arith.index_cast %51 : i32 to index
    %c0_29 = arith.constant 0 : index
    %84 = vector.load %arg17[%83, %c0_29] : memref<32x128xbf16, #tpu.memory_space<vmem>>, vector<8x128xbf16>
    tpu.vector_store %arg17[%83, %c0_29], %82 {strides = array<i32>} : memref<32x128xbf16, #tpu.memory_space<vmem>>, vector<8x128xbf16>,
    %c2_i32 = arith.constant 2 : i32
    %c8_i32_30 = arith.constant 8 : i32
    %85 = arith.muli %c2_i32, %c8_i32_30 : i32
    %86 = tpu.assume_multiple %85, 8 : i32
    %87 = arith.index_cast %86 : i32 to index
    %c0_31 = arith.constant 0 : index
    %88 = vector.load %arg16[%87, %c0_31] : memref<32x512xf32, #tpu.memory_space<vmem>>, vector<8x512xf32>
    %89 = arith.truncf %81 : vector<8x128xf32> to vector<8x128xbf16>
    %cst_32 = arith.constant dense<0.000000e+00> : vector<8x512xf32>
    %90 = tpu.matmul %89, %10, %cst_32 {dimension_numbers = #tpu.dot_dimension_numbers<[1], [0], [0], [1], [0, 0, 1, 1], [], []>} : vector<8x128xbf16>, vector<128x512xbf16>, vector<8x512xf32> -> vector<8x512xf32>
    %91 = arith.addf %88, %90 : vector<8x512xf32>
    %92 = vector.extract_strided_slice %91 {offsets = [0, 0], sizes = [8, 128], strides = [1, 1]} : vector<8x512xf32> to vector<8x128xf32>
    %93 = arith.negf %92 : vector<8x128xf32>
    %94 = math.exp %93 : vector<8x128xf32>
    %cst_33 = arith.constant 1.000000e+00 : f32
    %95 = vector.broadcast %cst_33 : f32 to vector<8x128xf32>
    %96 = arith.addf %95, %94 : vector<8x128xf32>
    %97 = arith.divf %95, %96 : vector<8x128xf32>
    %98 = vector.extract_strided_slice %91 {offsets = [0, 128], sizes = [8, 128], strides = [1, 1]} : vector<8x512xf32> to vector<8x128xf32>
    %99 = arith.negf %98 : vector<8x128xf32>
    %100 = math.exp %99 : vector<8x128xf32>
    %cst_34 = arith.constant 1.000000e+00 : f32
    %101 = vector.broadcast %cst_34 : f32 to vector<8x128xf32>
    %102 = arith.addf %101, %100 : vector<8x128xf32>
    %103 = arith.divf %101, %102 : vector<8x128xf32>
    %104 = vector.extract_strided_slice %91 {offsets = [0, 256], sizes = [8, 128], strides = [1, 1]} : vector<8x512xf32> to vector<8x128xf32>
    %105 = math.tanh %104 : vector<8x128xf32>
    %106 = vector.extract_strided_slice %91 {offsets = [0, 384], sizes = [8, 128], strides = [1, 1]} : vector<8x512xf32> to vector<8x128xf32>
    %107 = arith.negf %106 : vector<8x128xf32>
    %108 = math.exp %107 : vector<8x128xf32>
    %cst_35 = arith.constant 1.000000e+00 : f32
    %109 = vector.broadcast %cst_35 : f32 to vector<8x128xf32>
    %110 = arith.addf %109, %108 : vector<8x128xf32>
    %111 = arith.divf %109, %110 : vector<8x128xf32>
    %112 = arith.mulf %103, %79 : vector<8x128xf32>
    %113 = arith.mulf %97, %105 : vector<8x128xf32>
    %114 = arith.addf %112, %113 : vector<8x128xf32>
    %115 = math.tanh %114 : vector<8x128xf32>
    %116 = arith.mulf %111, %115 : vector<8x128xf32>
    %117 = arith.truncf %116 : vector<8x128xf32> to vector<8x128xbf16>
    %118 = arith.index_cast %86 : i32 to index
    %c0_36 = arith.constant 0 : index
    %119 = vector.load %arg17[%118, %c0_36] : memref<32x128xbf16, #tpu.memory_space<vmem>>, vector<8x128xbf16>
    tpu.vector_store %arg17[%118, %c0_36], %117 {strides = array<i32>} : memref<32x128xbf16, #tpu.memory_space<vmem>>, vector<8x128xbf16>,
    %c3_i32 = arith.constant 3 : i32
    %c8_i32_37 = arith.constant 8 : i32
    %120 = arith.muli %c3_i32, %c8_i32_37 : i32
    %121 = tpu.assume_multiple %120, 8 : i32
    %122 = arith.index_cast %121 : i32 to index
    %c0_38 = arith.constant 0 : index
    %123 = vector.load %arg16[%122, %c0_38] : memref<32x512xf32, #tpu.memory_space<vmem>>, vector<8x512xf32>
    %124 = arith.truncf %116 : vector<8x128xf32> to vector<8x128xbf16>
    %cst_39 = arith.constant dense<0.000000e+00> : vector<8x512xf32>
    %125 = tpu.matmul %124, %10, %cst_39 {dimension_numbers = #tpu.dot_dimension_numbers<[1], [0], [0], [1], [0, 0, 1, 1], [], []>} : vector<8x128xbf16>, vector<128x512xbf16>, vector<8x512xf32> -> vector<8x512xf32>
    %126 = arith.addf %123, %125 : vector<8x512xf32>
    %127 = vector.extract_strided_slice %126 {offsets = [0, 0], sizes = [8, 128], strides = [1, 1]} : vector<8x512xf32> to vector<8x128xf32>
    %128 = arith.negf %127 : vector<8x128xf32>
    %129 = math.exp %128 : vector<8x128xf32>
    %cst_40 = arith.constant 1.000000e+00 : f32
    %130 = vector.broadcast %cst_40 : f32 to vector<8x128xf32>
    %131 = arith.addf %130, %129 : vector<8x128xf32>
    %132 = arith.divf %130, %131 : vector<8x128xf32>
    %133 = vector.extract_strided_slice %126 {offsets = [0, 128], sizes = [8, 128], strides = [1, 1]} : vector<8x512xf32> to vector<8x128xf32>
    %134 = arith.negf %133 : vector<8x128xf32>
    %135 = math.exp %134 : vector<8x128xf32>
    %cst_41 = arith.constant 1.000000e+00 : f32
    %136 = vector.broadcast %cst_41 : f32 to vector<8x128xf32>
    %137 = arith.addf %136, %135 : vector<8x128xf32>
    %138 = arith.divf %136, %137 : vector<8x128xf32>
    %139 = vector.extract_strided_slice %126 {offsets = [0, 256], sizes = [8, 128], strides = [1, 1]} : vector<8x512xf32> to vector<8x128xf32>
    %140 = math.tanh %139 : vector<8x128xf32>
    %141 = vector.extract_strided_slice %126 {offsets = [0, 384], sizes = [8, 128], strides = [1, 1]} : vector<8x512xf32> to vector<8x128xf32>
    %142 = arith.negf %141 : vector<8x128xf32>
    %143 = math.exp %142 : vector<8x128xf32>
    %cst_42 = arith.constant 1.000000e+00 : f32
    %144 = vector.broadcast %cst_42 : f32 to vector<8x128xf32>
    %145 = arith.addf %144, %143 : vector<8x128xf32>
    %146 = arith.divf %144, %145 : vector<8x128xf32>
    %147 = arith.mulf %138, %114 : vector<8x128xf32>
    %148 = arith.mulf %132, %140 : vector<8x128xf32>
    %149 = arith.addf %147, %148 : vector<8x128xf32>
    %150 = math.tanh %149 : vector<8x128xf32>
    %151 = arith.mulf %146, %150 : vector<8x128xf32>
    %152 = arith.truncf %151 : vector<8x128xf32> to vector<8x128xbf16>
    %153 = arith.index_cast %121 : i32 to index
    %c0_43 = arith.constant 0 : index
    %154 = vector.load %arg17[%153, %c0_43] : memref<32x128xbf16, #tpu.memory_space<vmem>>, vector<8x128xbf16>
    tpu.vector_store %arg17[%153, %c0_43], %152 {strides = array<i32>} : memref<32x128xbf16, #tpu.memory_space<vmem>>, vector<8x128xbf16>,
    %c4_i32 = arith.constant 4 : i32
    %c0_44 = arith.constant 0 : index
    %c0_45 = arith.constant 0 : index
    %c0_46 = arith.constant 0 : index
    %155 = vector.load %arg14[%c0_44, %c0_45, %c0_46] : memref<2x8x128xf32, #tpu.memory_space<vmem>>, vector<1x8x128xf32>
    %156 = vector.shape_cast %155 : vector<1x8x128xf32> to vector<8x128xf32>
    %157 = vector.shape_cast %151 : vector<8x128xf32> to vector<1x8x128xf32>
    tpu.vector_store %arg14[%c0_44, %c0_45, %c0_46], %157 {strides = array<i32>} : memref<2x8x128xf32, #tpu.memory_space<vmem>>, vector<1x8x128xf32>,
    %c0_47 = arith.constant 0 : index
    %c0_48 = arith.constant 0 : index
    %c0_49 = arith.constant 0 : index
    %158 = vector.load %arg15[%c0_47, %c0_48, %c0_49] : memref<2x8x128xf32, #tpu.memory_space<vmem>>, vector<1x8x128xf32>
    %159 = vector.shape_cast %158 : vector<1x8x128xf32> to vector<8x128xf32>
    %160 = vector.shape_cast %149 : vector<8x128xf32> to vector<1x8x128xf32>
    tpu.vector_store %arg15[%c0_47, %c0_48, %c0_49], %160 {strides = array<i32>} : memref<2x8x128xf32, #tpu.memory_space<vmem>>, vector<1x8x128xf32>,
    %c0_50 = arith.constant 0 : index
    %c0_51 = arith.constant 0 : index
    %161 = vector.load %arg17[%c0_50, %c0_51] : memref<32x128xbf16, #tpu.memory_space<vmem>>, vector<32x128xbf16>
    %c0_52 = arith.constant 0 : index
    %c0_53 = arith.constant 0 : index
    %162 = vector.load %arg8[%c0_52, %c0_53] : memref<128x512xbf16, #tpu.memory_space<vmem>>, vector<128x512xbf16>
    %cst_54 = arith.constant dense<0.000000e+00> : vector<32x512xf32>
    %163 = tpu.matmul %161, %162, %cst_54 {dimension_numbers = #tpu.dot_dimension_numbers<[1], [0], [0], [1], [0, 0, 1, 1], [], []>} : vector<32x128xbf16>, vector<128x512xbf16>, vector<32x512xf32> -> vector<32x512xf32>
    %c0_55 = arith.constant 0 : index
    %c0_56 = arith.constant 0 : index
    %164 = vector.load %arg10[%c0_55, %c0_56] : memref<1x512xf32, #tpu.memory_space<vmem>>, vector<1x512xf32>
    %165 = vector.broadcast %164 : vector<1x512xf32> to vector<32x512xf32>
    %166 = arith.addf %163, %165 : vector<32x512xf32>
    %c0_57 = arith.constant 0 : index
    %c0_58 = arith.constant 0 : index
    %167 = vector.load %arg16[%c0_57, %c0_58] : memref<32x512xf32, #tpu.memory_space<vmem>>, vector<32x512xf32>
    tpu.vector_store %arg16[%c0_57, %c0_58], %166 {strides = array<i32>} : memref<32x512xf32, #tpu.memory_space<vmem>>, vector<32x512xf32>,
    %c0_59 = arith.constant 0 : index
    %c0_60 = arith.constant 0 : index
    %168 = vector.load %arg9[%c0_59, %c0_60] : memref<128x512xbf16, #tpu.memory_space<vmem>>, vector<128x512xbf16>
    %c1 = arith.constant 1 : index
    %c0_61 = arith.constant 0 : index
    %c0_62 = arith.constant 0 : index
    %169 = vector.load %arg14[%c1, %c0_61, %c0_62] : memref<2x8x128xf32, #tpu.memory_space<vmem>>, vector<1x8x128xf32>
    %170 = vector.shape_cast %169 : vector<1x8x128xf32> to vector<8x128xf32>
    %c1_63 = arith.constant 1 : index
    %c0_64 = arith.constant 0 : index
    %c0_65 = arith.constant 0 : index
    %171 = vector.load %arg15[%c1_63, %c0_64, %c0_65] : memref<2x8x128xf32, #tpu.memory_space<vmem>>, vector<1x8x128xf32>
    %172 = vector.shape_cast %171 : vector<1x8x128xf32> to vector<8x128xf32>
    %c0_i32_66 = arith.constant 0 : i32
    %c8_i32_67 = arith.constant 8 : i32
    %173 = arith.muli %c0_i32_66, %c8_i32_67 : i32
    %174 = tpu.assume_multiple %173, 8 : i32
    %175 = arith.index_cast %174 : i32 to index
    %c0_68 = arith.constant 0 : index
    %176 = vector.load %arg16[%175, %c0_68] : memref<32x512xf32, #tpu.memory_space<vmem>>, vector<8x512xf32>
    %177 = arith.truncf %170 : vector<8x128xf32> to vector<8x128xbf16>
    %cst_69 = arith.constant dense<0.000000e+00> : vector<8x512xf32>
    %178 = tpu.matmul %177, %168, %cst_69 {dimension_numbers = #tpu.dot_dimension_numbers<[1], [0], [0], [1], [0, 0, 1, 1], [], []>} : vector<8x128xbf16>, vector<128x512xbf16>, vector<8x512xf32> -> vector<8x512xf32>
    %179 = arith.addf %176, %178 : vector<8x512xf32>
    %180 = vector.extract_strided_slice %179 {offsets = [0, 0], sizes = [8, 128], strides = [1, 1]} : vector<8x512xf32> to vector<8x128xf32>
    %181 = arith.negf %180 : vector<8x128xf32>
    %182 = math.exp %181 : vector<8x128xf32>
    %cst_70 = arith.constant 1.000000e+00 : f32
    %183 = vector.broadcast %cst_70 : f32 to vector<8x128xf32>
    %184 = arith.addf %183, %182 : vector<8x128xf32>
    %185 = arith.divf %183, %184 : vector<8x128xf32>
    %186 = vector.extract_strided_slice %179 {offsets = [0, 128], sizes = [8, 128], strides = [1, 1]} : vector<8x512xf32> to vector<8x128xf32>
    %187 = arith.negf %186 : vector<8x128xf32>
    %188 = math.exp %187 : vector<8x128xf32>
    %cst_71 = arith.constant 1.000000e+00 : f32
    %189 = vector.broadcast %cst_71 : f32 to vector<8x128xf32>
    %190 = arith.addf %189, %188 : vector<8x128xf32>
    %191 = arith.divf %189, %190 : vector<8x128xf32>
    %192 = vector.extract_strided_slice %179 {offsets = [0, 256], sizes = [8, 128], strides = [1, 1]} : vector<8x512xf32> to vector<8x128xf32>
    %193 = math.tanh %192 : vector<8x128xf32>
    %194 = vector.extract_strided_slice %179 {offsets = [0, 384], sizes = [8, 128], strides = [1, 1]} : vector<8x512xf32> to vector<8x128xf32>
    %195 = arith.negf %194 : vector<8x128xf32>
    %196 = math.exp %195 : vector<8x128xf32>
    %cst_72 = arith.constant 1.000000e+00 : f32
    %197 = vector.broadcast %cst_72 : f32 to vector<8x128xf32>
    %198 = arith.addf %197, %196 : vector<8x128xf32>
    %199 = arith.divf %197, %198 : vector<8x128xf32>
    %200 = arith.mulf %191, %172 : vector<8x128xf32>
    %201 = arith.mulf %185, %193 : vector<8x128xf32>
    %202 = arith.addf %200, %201 : vector<8x128xf32>
    %203 = math.tanh %202 : vector<8x128xf32>
    %204 = arith.mulf %199, %203 : vector<8x128xf32>
    %205 = arith.truncf %204 : vector<8x128xf32> to vector<8x128xbf16>
    %206 = arith.index_cast %174 : i32 to index
    %c0_73 = arith.constant 0 : index
    %207 = vector.load %arg13[%206, %c0_73] : memref<32x128xbf16, #tpu.memory_space<vmem>>, vector<8x128xbf16>
    tpu.vector_store %arg13[%206, %c0_73], %205 {strides = array<i32>} : memref<32x128xbf16, #tpu.memory_space<vmem>>, vector<8x128xbf16>,
    %c1_i32_74 = arith.constant 1 : i32
    %c8_i32_75 = arith.constant 8 : i32
    %208 = arith.muli %c1_i32_74, %c8_i32_75 : i32
    %209 = tpu.assume_multiple %208, 8 : i32
    %210 = arith.index_cast %209 : i32 to index
    %c0_76 = arith.constant 0 : index
    %211 = vector.load %arg16[%210, %c0_76] : memref<32x512xf32, #tpu.memory_space<vmem>>, vector<8x512xf32>
    %212 = arith.truncf %204 : vector<8x128xf32> to vector<8x128xbf16>
    %cst_77 = arith.constant dense<0.000000e+00> : vector<8x512xf32>
    %213 = tpu.matmul %212, %168, %cst_77 {dimension_numbers = #tpu.dot_dimension_numbers<[1], [0], [0], [1], [0, 0, 1, 1], [], []>} : vector<8x128xbf16>, vector<128x512xbf16>, vector<8x512xf32> -> vector<8x512xf32>
    %214 = arith.addf %211, %213 : vector<8x512xf32>
    %215 = vector.extract_strided_slice %214 {offsets = [0, 0], sizes = [8, 128], strides = [1, 1]} : vector<8x512xf32> to vector<8x128xf32>
    %216 = arith.negf %215 : vector<8x128xf32>
    %217 = math.exp %216 : vector<8x128xf32>
    %cst_78 = arith.constant 1.000000e+00 : f32
    %218 = vector.broadcast %cst_78 : f32 to vector<8x128xf32>
    %219 = arith.addf %218, %217 : vector<8x128xf32>
    %220 = arith.divf %218, %219 : vector<8x128xf32>
    %221 = vector.extract_strided_slice %214 {offsets = [0, 128], sizes = [8, 128], strides = [1, 1]} : vector<8x512xf32> to vector<8x128xf32>
    %222 = arith.negf %221 : vector<8x128xf32>
    %223 = math.exp %222 : vector<8x128xf32>
    %cst_79 = arith.constant 1.000000e+00 : f32
    %224 = vector.broadcast %cst_79 : f32 to vector<8x128xf32>
    %225 = arith.addf %224, %223 : vector<8x128xf32>
    %226 = arith.divf %224, %225 : vector<8x128xf32>
    %227 = vector.extract_strided_slice %214 {offsets = [0, 256], sizes = [8, 128], strides = [1, 1]} : vector<8x512xf32> to vector<8x128xf32>
    %228 = math.tanh %227 : vector<8x128xf32>
    %229 = vector.extract_strided_slice %214 {offsets = [0, 384], sizes = [8, 128], strides = [1, 1]} : vector<8x512xf32> to vector<8x128xf32>
    %230 = arith.negf %229 : vector<8x128xf32>
    %231 = math.exp %230 : vector<8x128xf32>
    %cst_80 = arith.constant 1.000000e+00 : f32
    %232 = vector.broadcast %cst_80 : f32 to vector<8x128xf32>
    %233 = arith.addf %232, %231 : vector<8x128xf32>
    %234 = arith.divf %232, %233 : vector<8x128xf32>
    %235 = arith.mulf %226, %202 : vector<8x128xf32>
    %236 = arith.mulf %220, %228 : vector<8x128xf32>
    %237 = arith.addf %235, %236 : vector<8x128xf32>
    %238 = math.tanh %237 : vector<8x128xf32>
    %239 = arith.mulf %234, %238 : vector<8x128xf32>
    %240 = arith.truncf %239 : vector<8x128xf32> to vector<8x128xbf16>
    %241 = arith.index_cast %209 : i32 to index
    %c0_81 = arith.constant 0 : index
    %242 = vector.load %arg13[%241, %c0_81] : memref<32x128xbf16, #tpu.memory_space<vmem>>, vector<8x128xbf16>
    tpu.vector_store %arg13[%241, %c0_81], %240 {strides = array<i32>} : memref<32x128xbf16, #tpu.memory_space<vmem>>, vector<8x128xbf16>,
    %c2_i32_82 = arith.constant 2 : i32
    %c8_i32_83 = arith.constant 8 : i32
    %243 = arith.muli %c2_i32_82, %c8_i32_83 : i32
    %244 = tpu.assume_multiple %243, 8 : i32
    %245 = arith.index_cast %244 : i32 to index
    %c0_84 = arith.constant 0 : index
    %246 = vector.load %arg16[%245, %c0_84] : memref<32x512xf32, #tpu.memory_space<vmem>>, vector<8x512xf32>
    %247 = arith.truncf %239 : vector<8x128xf32> to vector<8x128xbf16>
    %cst_85 = arith.constant dense<0.000000e+00> : vector<8x512xf32>
    %248 = tpu.matmul %247, %168, %cst_85 {dimension_numbers = #tpu.dot_dimension_numbers<[1], [0], [0], [1], [0, 0, 1, 1], [], []>} : vector<8x128xbf16>, vector<128x512xbf16>, vector<8x512xf32> -> vector<8x512xf32>
    %249 = arith.addf %246, %248 : vector<8x512xf32>
    %250 = vector.extract_strided_slice %249 {offsets = [0, 0], sizes = [8, 128], strides = [1, 1]} : vector<8x512xf32> to vector<8x128xf32>
    %251 = arith.negf %250 : vector<8x128xf32>
    %252 = math.exp %251 : vector<8x128xf32>
    %cst_86 = arith.constant 1.000000e+00 : f32
    %253 = vector.broadcast %cst_86 : f32 to vector<8x128xf32>
    %254 = arith.addf %253, %252 : vector<8x128xf32>
    %255 = arith.divf %253, %254 : vector<8x128xf32>
    %256 = vector.extract_strided_slice %249 {offsets = [0, 128], sizes = [8, 128], strides = [1, 1]} : vector<8x512xf32> to vector<8x128xf32>
    %257 = arith.negf %256 : vector<8x128xf32>
    %258 = math.exp %257 : vector<8x128xf32>
    %cst_87 = arith.constant 1.000000e+00 : f32
    %259 = vector.broadcast %cst_87 : f32 to vector<8x128xf32>
    %260 = arith.addf %259, %258 : vector<8x128xf32>
    %261 = arith.divf %259, %260 : vector<8x128xf32>
    %262 = vector.extract_strided_slice %249 {offsets = [0, 256], sizes = [8, 128], strides = [1, 1]} : vector<8x512xf32> to vector<8x128xf32>
    %263 = math.tanh %262 : vector<8x128xf32>
    %264 = vector.extract_strided_slice %249 {offsets = [0, 384], sizes = [8, 128], strides = [1, 1]} : vector<8x512xf32> to vector<8x128xf32>
    %265 = arith.negf %264 : vector<8x128xf32>
    %266 = math.exp %265 : vector<8x128xf32>
    %cst_88 = arith.constant 1.000000e+00 : f32
    %267 = vector.broadcast %cst_88 : f32 to vector<8x128xf32>
    %268 = arith.addf %267, %266 : vector<8x128xf32>
    %269 = arith.divf %267, %268 : vector<8x128xf32>
    %270 = arith.mulf %261, %237 : vector<8x128xf32>
    %271 = arith.mulf %255, %263 : vector<8x128xf32>
    %272 = arith.addf %270, %271 : vector<8x128xf32>
    %273 = math.tanh %272 : vector<8x128xf32>
    %274 = arith.mulf %269, %273 : vector<8x128xf32>
    %275 = arith.truncf %274 : vector<8x128xf32> to vector<8x128xbf16>
    %276 = arith.index_cast %244 : i32 to index
    %c0_89 = arith.constant 0 : index
    %277 = vector.load %arg13[%276, %c0_89] : memref<32x128xbf16, #tpu.memory_space<vmem>>, vector<8x128xbf16>
    tpu.vector_store %arg13[%276, %c0_89], %275 {strides = array<i32>} : memref<32x128xbf16, #tpu.memory_space<vmem>>, vector<8x128xbf16>,
    %c3_i32_90 = arith.constant 3 : i32
    %c8_i32_91 = arith.constant 8 : i32
    %278 = arith.muli %c3_i32_90, %c8_i32_91 : i32
    %279 = tpu.assume_multiple %278, 8 : i32
    %280 = arith.index_cast %279 : i32 to index
    %c0_92 = arith.constant 0 : index
    %281 = vector.load %arg16[%280, %c0_92] : memref<32x512xf32, #tpu.memory_space<vmem>>, vector<8x512xf32>
    %282 = arith.truncf %274 : vector<8x128xf32> to vector<8x128xbf16>
    %cst_93 = arith.constant dense<0.000000e+00> : vector<8x512xf32>
    %283 = tpu.matmul %282, %168, %cst_93 {dimension_numbers = #tpu.dot_dimension_numbers<[1], [0], [0], [1], [0, 0, 1, 1], [], []>} : vector<8x128xbf16>, vector<128x512xbf16>, vector<8x512xf32> -> vector<8x512xf32>
    %284 = arith.addf %281, %283 : vector<8x512xf32>
    %285 = vector.extract_strided_slice %284 {offsets = [0, 0], sizes = [8, 128], strides = [1, 1]} : vector<8x512xf32> to vector<8x128xf32>
    %286 = arith.negf %285 : vector<8x128xf32>
    %287 = math.exp %286 : vector<8x128xf32>
    %cst_94 = arith.constant 1.000000e+00 : f32
    %288 = vector.broadcast %cst_94 : f32 to vector<8x128xf32>
    %289 = arith.addf %288, %287 : vector<8x128xf32>
    %290 = arith.divf %288, %289 : vector<8x128xf32>
    %291 = vector.extract_strided_slice %284 {offsets = [0, 128], sizes = [8, 128], strides = [1, 1]} : vector<8x512xf32> to vector<8x128xf32>
    %292 = arith.negf %291 : vector<8x128xf32>
    %293 = math.exp %292 : vector<8x128xf32>
    %cst_95 = arith.constant 1.000000e+00 : f32
    %294 = vector.broadcast %cst_95 : f32 to vector<8x128xf32>
    %295 = arith.addf %294, %293 : vector<8x128xf32>
    %296 = arith.divf %294, %295 : vector<8x128xf32>
    %297 = vector.extract_strided_slice %284 {offsets = [0, 256], sizes = [8, 128], strides = [1, 1]} : vector<8x512xf32> to vector<8x128xf32>
    %298 = math.tanh %297 : vector<8x128xf32>
    %299 = vector.extract_strided_slice %284 {offsets = [0, 384], sizes = [8, 128], strides = [1, 1]} : vector<8x512xf32> to vector<8x128xf32>
    %300 = arith.negf %299 : vector<8x128xf32>
    %301 = math.exp %300 : vector<8x128xf32>
    %cst_96 = arith.constant 1.000000e+00 : f32
    %302 = vector.broadcast %cst_96 : f32 to vector<8x128xf32>
    %303 = arith.addf %302, %301 : vector<8x128xf32>
    %304 = arith.divf %302, %303 : vector<8x128xf32>
    %305 = arith.mulf %296, %272 : vector<8x128xf32>
    %306 = arith.mulf %290, %298 : vector<8x128xf32>
    %307 = arith.addf %305, %306 : vector<8x128xf32>
    %308 = math.tanh %307 : vector<8x128xf32>
    %309 = arith.mulf %304, %308 : vector<8x128xf32>
    %310 = arith.truncf %309 : vector<8x128xf32> to vector<8x128xbf16>
    %311 = arith.index_cast %279 : i32 to index
    %c0_97 = arith.constant 0 : index
    %312 = vector.load %arg13[%311, %c0_97] : memref<32x128xbf16, #tpu.memory_space<vmem>>, vector<8x128xbf16>
    tpu.vector_store %arg13[%311, %c0_97], %310 {strides = array<i32>} : memref<32x128xbf16, #tpu.memory_space<vmem>>, vector<8x128xbf16>,
    %c4_i32_98 = arith.constant 4 : i32
    %c1_99 = arith.constant 1 : index
    %c0_100 = arith.constant 0 : index
    %c0_101 = arith.constant 0 : index
    %313 = vector.load %arg14[%c1_99, %c0_100, %c0_101] : memref<2x8x128xf32, #tpu.memory_space<vmem>>, vector<1x8x128xf32>
    %314 = vector.shape_cast %313 : vector<1x8x128xf32> to vector<8x128xf32>
    %315 = vector.shape_cast %309 : vector<8x128xf32> to vector<1x8x128xf32>
    tpu.vector_store %arg14[%c1_99, %c0_100, %c0_101], %315 {strides = array<i32>} : memref<2x8x128xf32, #tpu.memory_space<vmem>>, vector<1x8x128xf32>,
    %c1_102 = arith.constant 1 : index
    %c0_103 = arith.constant 0 : index
    %c0_104 = arith.constant 0 : index
    %316 = vector.load %arg15[%c1_102, %c0_103, %c0_104] : memref<2x8x128xf32, #tpu.memory_space<vmem>>, vector<1x8x128xf32>
    %317 = vector.shape_cast %316 : vector<1x8x128xf32> to vector<8x128xf32>
    %318 = vector.shape_cast %307 : vector<8x128xf32> to vector<1x8x128xf32>
    tpu.vector_store %arg15[%c1_102, %c0_103, %c0_104], %318 {strides = array<i32>} : memref<2x8x128xf32, #tpu.memory_space<vmem>>, vector<1x8x128xf32>,
    return
  }
  func.func @transform_0(%arg0: i32) -> (i32, i32) {
    %c0_i32 = arith.constant 0 : i32
    %c0_i32_0 = arith.constant 0 : i32
    return %arg0, %c0_i32 : i32, i32
  }
  func.func @transform_1(%arg0: i32) -> (i32, i32) {
    %c0_i32 = arith.constant 0 : i32
    %c0_i32_0 = arith.constant 0 : i32
    %c0_i32_1 = arith.constant 0 : i32
    return %c0_i32, %c0_i32_0 : i32, i32
  }
  func.func @transform_2(%arg0: i32) -> (i32, i32) {
    %c0_i32 = arith.constant 0 : i32
    %c0_i32_0 = arith.constant 0 : i32
    %c0_i32_1 = arith.constant 0 : i32
    return %c0_i32, %c0_i32_0 : i32, i32
  }
  func.func @transform_3(%arg0: i32) -> (i32, i32) {
    %c0_i32 = arith.constant 0 : i32
    %c0_i32_0 = arith.constant 0 : i32
    %c0_i32_1 = arith.constant 0 : i32
    return %c0_i32, %c0_i32_0 : i32, i32
  }
  func.func @transform_4(%arg0: i32) -> (i32, i32) {
    %c0_i32 = arith.constant 0 : i32
    %c0_i32_0 = arith.constant 0 : i32
    %c0_i32_1 = arith.constant 0 : i32
    return %c0_i32, %c0_i32_0 : i32, i32
  }
  func.func @transform_5(%arg0: i32) -> (i32, i32) {
    %c0_i32 = arith.constant 0 : i32
    %c0_i32_0 = arith.constant 0 : i32
    %c0_i32_1 = arith.constant 0 : i32
    return %c0_i32, %c0_i32_0 : i32, i32
  }
  func.func @transform_6(%arg0: i32) -> (i32, i32) {
    %c0_i32 = arith.constant 0 : i32
    %c0_i32_0 = arith.constant 0 : i32
    %c0_i32_1 = arith.constant 0 : i32
    return %c0_i32, %c0_i32_0 : i32, i32
  }
  func.func @transform_7(%arg0: i32) -> (i32, i32) {
    %c0_i32 = arith.constant 0 : i32
    %c0_i32_0 = arith.constant 0 : i32
    %c0_i32_1 = arith.constant 0 : i32
    return %c0_i32, %c0_i32_0 : i32, i32
  }
  func.func @transform_8(%arg0: i32) -> (i32, i32) {
    %c0_i32 = arith.constant 0 : i32
    %c0_i32_0 = arith.constant 0 : i32
    %c0_i32_1 = arith.constant 0 : i32
    return %c0_i32, %c0_i32_0 : i32, i32
  }
  func.func @transform_9(%arg0: i32) -> (i32, i32) {
    %c0_i32 = arith.constant 0 : i32
    %c0_i32_0 = arith.constant 0 : i32
    %c0_i32_1 = arith.constant 0 : i32
    return %c0_i32, %c0_i32_0 : i32, i32
  }
  func.func @transform_10(%arg0: i32) -> (i32, i32, i32) {
    %c0_i32 = arith.constant 0 : i32
    %c0_i32_0 = arith.constant 0 : i32
    %c0_i32_1 = arith.constant 0 : i32
    %c0_i32_2 = arith.constant 0 : i32
    return %c0_i32, %c0_i32_0, %c0_i32_1 : i32, i32, i32
  }
  func.func @transform_11(%arg0: i32) -> (i32, i32, i32) {
    %c0_i32 = arith.constant 0 : i32
    %c0_i32_0 = arith.constant 0 : i32
    %c0_i32_1 = arith.constant 0 : i32
    %c0_i32_2 = arith.constant 0 : i32
    return %c0_i32, %c0_i32_0, %c0_i32_1 : i32, i32, i32
  }
  func.func @transform_12(%arg0: i32) -> (i32, i32) {
    %c0_i32 = arith.constant 0 : i32
    %c0_i32_0 = arith.constant 0 : i32
    return %arg0, %c0_i32 : i32, i32
  }
  func.func @transform_13(%arg0: i32) -> (i32, i32, i32) {
    %c0_i32 = arith.constant 0 : i32
    %c0_i32_0 = arith.constant 0 : i32
    %c0_i32_1 = arith.constant 0 : i32
    %c0_i32_2 = arith.constant 0 : i32
    return %c0_i32, %c0_i32_0, %c0_i32_1 : i32, i32, i32
  }
  func.func @transform_14(%arg0: i32) -> (i32, i32, i32) {
    %c0_i32 = arith.constant 0 : i32
    %c0_i32_0 = arith.constant 0 : i32
    %c0_i32_1 = arith.constant 0 : i32
    %c0_i32_2 = arith.constant 0 : i32
    return %c0_i32, %c0_i32_0, %c0_i32_1 : i32, i32, i32
  }
}

</mosaic_0001>

<bundles_post_ra>
// kernel: forward.5
= control target key start
LH: loop header
LB: loop body
LE: loop exit
PB: predicated region body
PF: predicated region fallthrough
CT: control target
= control target key end

     0   :  { %s950_s15 = smov 0   ;;  %s952_s16 = smov 0   ;;  %s1121_s0 = inlined_call_operand.vmem [shape: bf16[64,128], index: 0, kind: input, shape index: {}]   ;;  %s1122_s1 = inlined_call_operand.vmem [shape: bf16[128,384], index: 1, kind: input, shape index: {}]   ;;  %s1123_s2 = inlined_call_operand.vmem [shape: f32[1,384], index: 2, kind: input, shape index: {}]   ;;  %s1124_s3 = inlined_call_operand.vmem [shape: f32[64,1], index: 3, kind: input, shape index: {}]   ;;  %s1125_s4 = inlined_call_operand.vmem [shape: f32[64,384], index: 4, kind: output, shape index: {}]  }
   0x1   :  { %s954_s17 = smov 0   ;;  %s956_s18 = smov 0  }
   0x2   :  { %s958_s19 = smov 0  }
   0x3 LB: > { %s23_s20 = sadd.s32 1, %s918_s18  ;;  %s740_s21 = sadd.s32 4294967295, %s922_s19   ;;  %s922_s19 = sphi %s958_s19, %s14_s19   ;;  %s918_s18 = sphi %s956_s18, %s1130_s18   ;;  %s914_s17 = sphi %s954_s17, %s1129_s17   ;;  %s910_s16 = sphi %s952_s16, %s1128_s16   ;;  %s906_s15 = sphi %s950_s15, %s1127_s15  }
   0x4   : > { %p24_p0 = scmp.ge.s32.totalorder %s23_s20, 3  ;;  %p66_p1 = scmp.ne.s32.totalorder %s910_s16, %s906_s15 }
   0x5   : > { %p67_p2 = scmp.eq.s32.totalorder %s922_s19, 0  ;;  %p150_p4 = scmp.eq.s32.totalorder %s740_s21, 2 }
   0x6   : > { %s1132_s20 = smov (%p24_p0, %s23_s20), 0  ;;  %s59_s23 = sadd.s32 1, %s910_s16 }
   0x7   : > { %p68_p3 = por %p67_p2, %p66_p1  ;;  %s56_s22 = ssub.s32 %s918_s18, %s1132_s20 }
   0x8   : > { %p57_p5 = scmp.eq.s32.totalorder %s56_s22, 0  ;;  %p985_p6 = por %p150_p4, %p66_p1 }
   0x9   : > { %p745_p7 = scmp.ge.s32.totalorder %s922_s19, 3 }
   0xa   : > { %s990_s25 = scalar_select %p57_p5, %s910_s16, %s59_s23  }
   0xb   : > { %190 = sbr.rel (%p745_p7) target bundleno = 36 (0x24), region = 24 }
  0x10   : > { %193 = sbr.rel (!%p68_p3) target bundleno = 36 (0x24), region = 28  ;;  %s195_s26 = sand.u32 (%p68_p3), 1, %s910_s16  }
  0x11   : > { %s747_s27 = sshll.u32 (%p68_p3), %s918_s18, 2  ;;  %s746_s28 = sshll.u32 (%p68_p3), %s195_s26, 6 }
  0x12   : > { %s998_s5 = scalar_lea.vmem (%p68_p3), %s1122_s1, %s747_s27  ;;  %s197_s6 = scalar_lea.vmem (%p68_p3), [#allocation2], %s746_s28 }
  0x13   : > { %v216_v0 = vld [vmem:[%s998_s5] sm:$0xf] (%p68_p3)  ;;  %v218_v1 = vld [vmem:[%s998_s5 + $0xc] sm:$0xf] (%p68_p3)  ;;  %v220_v2 = vld [vmem:[%s998_s5 + $0x18] sm:$0xf] (%p68_p3) }
  0x14   : > { %217 = vst [vmem:[%s197_s6] sm:$0xf] (%p68_p3), %v216_v0  ;;  %v222_v3 = vld [vmem:[%s998_s5 + $0x24] sm:$0xf] (%p68_p3)  ;;  %v224_v4 = vld [vmem:[%s998_s5 + $0x30] sm:$0xf] (%p68_p3) }
  0x15   : > { %219 = vst [vmem:[%s197_s6 + $0x4] sm:$0xf] %v218_v1  ;;  %v226_v5 = vld [vmem:[%s998_s5 + $0x3c] sm:$0xf]  ;;  %v228_v6 = vld [vmem:[%s998_s5 + $0x48] sm:$0xf] }
  0x16   : > { %221 = vst [vmem:[%s197_s6 + $0x8] sm:$0xf] %v220_v2  ;;  %v230_v7 = vld [vmem:[%s998_s5 + $0x54] sm:$0xf]  ;;  %v232_v8 = vld [vmem:[%s998_s5 + $0x60] sm:$0xf] }
  0x17   : > { %223 = vst [vmem:[%s197_s6 + $0xc] sm:$0xf] %v222_v3  ;;  %v234_v9 = vld [vmem:[%s998_s5 + $0x6c] sm:$0xf]  ;;  %v236_v10 = vld [vmem:[%s998_s5 + $0x78] sm:$0xf] }
  0x18   : > { %225 = vst [vmem:[%s197_s6 + $0x10] sm:$0xf] %v224_v4  ;;  %v238_v11 = vld [vmem:[%s998_s5 + $0x84] sm:$0xf]  ;;  %v240_v12 = vld [vmem:[%s998_s5 + $0x90] sm:$0xf] }
  0x19   : > { %227 = vst [vmem:[%s197_s6 + $0x14] sm:$0xf] %v226_v5  ;;  %v242_v13 = vld [vmem:[%s998_s5 + $0x9c] sm:$0xf]  ;;  %v244_v14 = vld [vmem:[%s998_s5 + $0xa8] sm:$0xf] }
  0x1a   : > { %229 = vst [vmem:[%s197_s6 + $0x18] sm:$0xf] %v228_v6  ;;  %v246_v15 = vld [vmem:[%s998_s5 + $0xb4] sm:$0xf] }
  0x1b   : > { %231 = vst [vmem:[%s197_s6 + $0x1c] sm:$0xf] %v230_v7 }
  0x1c   : > { %233 = vst [vmem:[%s197_s6 + $0x20] sm:$0xf] %v232_v8 }
  0x1d   : > { %235 = vst [vmem:[%s197_s6 + $0x24] sm:$0xf] %v234_v9 }
  0x1e   : > { %237 = vst [vmem:[%s197_s6 + $0x28] sm:$0xf] %v236_v10 }
  0x1f   : > { %239 = vst [vmem:[%s197_s6 + $0x2c] sm:$0xf] %v238_v11 }
  0x20   : > { %241 = vst [vmem:[%s197_s6 + $0x30] sm:$0xf] %v240_v12 }
  0x21   : > { %243 = vst [vmem:[%s197_s6 + $0x34] sm:$0xf] %v242_v13 }
  0x22   : > { %245 = vst [vmem:[%s197_s6 + $0x38] sm:$0xf] %v244_v14 }
  0x23   : > { %247 = vst [vmem:[%s197_s6 + $0x3c] sm:$0xf] %v246_v15 }
  0x24 PF: > { %p748_p8 = scmp.ge.s32.totalorder %s922_s19, 1  ;;  %p308_p9 = scmp.lt.s32.totalorder %s922_s19, 4 }
  0x26   : > { %p309_p10 = pnand %p748_p8, %p308_p9 }
  0x27   : > { %s315_s7 = sand.u32 (!%p309_p10), 1, %s906_s15   ;;  %p358_p11 = scmp.lt.s32.totalorder (!%p309_p10), %s914_s17, 2 }
  0x28   : > { %312 = sbr.rel (%p309_p10) target bundleno = 234 (0xea), region = 73  ;;  %s1025_s12 = sshll.u32 (!%p309_p10), %s315_s7, 6 }
  0x29   : > { %s1028_s13 = scalar_lea.vmem (!%p309_p10), [#allocation2], %s1025_s12  ;;  %s1082_s5 = scalar_lea.vmem (!%p309_p10), [#allocation3], %s1025_s12 }
  0x2d   : > { %v499_v16 = vld [vmem:[%s1124_s3 + $0x10] sm:$0xff]  ;;  %v497_v17 = vld [vmem:[%s1124_s3] sm:$0xff]  ;;  %v924_v18 = vmov 0   ;;  %v814_v19 = vld [vmem:[%s1028_s13 + $0x38] sm:$0xff]  ;;  %s1034_s14 = scalar_select %p358_p11, %s914_s17, 2 }
  0x2e   : > { %881 = vset.pattern.permute.xlu1 %v924_v18  ;;  %880 = vset.pattern.permute.xlu0 %v924_v18  ;;  %v813_v20 = vld [vmem:[%s1028_s13 + $0x30] sm:$0xff]  ;;  %v500_v21 = vld [vmem:[%s1124_s3 + $0x18] sm:$0xff]  ;;  %v498_v22 = vld [vmem:[%s1124_s3 + $0x8] sm:$0xff]  ;;  %s800_s12 = sshll.u32 (%p985_p6), %s914_s17, 3 }
  0x2f   : > { %517 = vperm.xlu1 %881, %v499_v16   ;;  %507 = vperm.xlu0 %880, %v497_v17   ;;  %v812_v23 = vld [vmem:[%s1028_s13 + $0x28] sm:$0xff]  ;;  %v501_v24 = vld [vmem:[%s1124_s3 + $0x20] sm:$0xff]  ;;  %s360_s30 = scalar_lea.vmem %s1123_s2, %s1034_s14  ;;  %v504_v26 = vld [vmem:[%s1124_s3 + $0x38] sm:$0xff]  ;;  %s572_s6 = scalar_lea.vmem (%p985_p6), %s1125_s4, %s800_s12 }
  0x30   : > { %882 = vset.pattern.permute.xlu2 %v924_v18  ;;  %468 = vmatpush.bf16.msra.mxu0 %v814_v19  ;;  %v811_v25 = vld [vmem:[%s1028_s13 + $0x20] sm:$0xff]  ;;  %v503_v27 = vld [vmem:[%s1124_s3 + $0x30] sm:$0xff]  ;;  %v810_v28 = vld [vmem:[%s1028_s13 + $0x18] sm:$0xff] }
  0x31   : > { %815 = vmatpush.bf16.msra.mxu1 %v814_v19  ;;  %816 = vmatpush.bf16.msra.mxu2 %v814_v19  ;;  %v502_v29 = vld [vmem:[%s1124_s3 + $0x28] sm:$0xff]  ;;  %v809_v30 = vld [vmem:[%s1028_s13 + $0x10] sm:$0xff]  ;;  %v807_v32 = vld [vmem:[%s1028_s13] sm:$0xff] }
  0x32   : > { %817 = vmatpush.bf16.msra.mxu3 %v814_v19  ;;  %527 = vperm.xlu2 %882, %v501_v24   ;;  %v808_v31 = vld [vmem:[%s1028_s13 + $0x8] sm:$0xff]  ;;  %v803_v33 = vld [vmem:[%s1121_s0] sm:$0xff]  ;;  %v805_v35 = vld [vmem:[%s1121_s0 + $0x10] sm:$0xff] }
  0x33   : > { %v804_v34 = vld [vmem:[%s1121_s0 + $0x8] sm:$0xff]  ;;  %v806_v36 = vld [vmem:[%s1121_s0 + $0x18] sm:$0xff]  ;;  %v883_v39 = vld [vmem:[%s360_s30] ss:$0 sm:$0xff] }
  0x34   : > { %469 = vmatpush.bf16.msra.mxu0 %v813_v20 }
  0x35   : > { %818 = vmatpush.bf16.msra.mxu1 %v813_v20  ;;  %819 = vmatpush.bf16.msra.mxu2 %v813_v20 }
  0x36   : > { %820 = vmatpush.bf16.msra.mxu3 %v813_v20 }
  0x37   : > { %522 = vperm.xlu1 %881, %v500_v21   ;;  %512 = vperm.xlu0 %880, %v498_v22  }
  0x38   : > { %470 = vmatpush.bf16.msra.mxu0 %v812_v23 }
  0x39   : > { %821 = vmatpush.bf16.msra.mxu1 %v812_v23  ;;  %822 = vmatpush.bf16.msra.mxu2 %v812_v23 }
  0x3a   : > { %823 = vmatpush.bf16.msra.mxu3 %v812_v23  ;;  %532 = vperm.xlu2 %882, %v502_v29  }
  0x3c   : > { %471 = vmatpush.bf16.msra.mxu0 %v811_v25 }
  0x3d   : > { %824 = vmatpush.bf16.msra.mxu1 %v811_v25  ;;  %825 = vmatpush.bf16.msra.mxu2 %v811_v25 }
  0x3e   : > { %826 = vmatpush.bf16.msra.mxu3 %v811_v25 }
  0x3f   : > { %542 = vperm.xlu1 %881, %v504_v26   ;;  %537 = vperm.xlu0 %880, %v503_v27  }
  0x40   : > { %472 = vmatpush.bf16.msra.mxu0 %v810_v28 }
  0x41   : > { %827 = vmatpush.bf16.msra.mxu1 %v810_v28  ;;  %828 = vmatpush.bf16.msra.mxu2 %v810_v28 }
  0x42   : > { %829 = vmatpush.bf16.msra.mxu3 %v810_v28 }
  0x44   : > { %473 = vmatpush.bf16.msra.mxu0 %v809_v30 }
  0x45   : > { %830 = vmatpush.bf16.msra.mxu1 %v809_v30  ;;  %831 = vmatpush.bf16.msra.mxu2 %v809_v30 }
  0x46   : > { %832 = vmatpush.bf16.msra.mxu3 %v809_v30 }
  0x48   : > { %474 = vmatpush.bf16.msra.mxu0 %v808_v31 }
  0x49   : > { %833 = vmatpush.bf16.msra.mxu1 %v808_v31  ;;  %834 = vmatpush.bf16.msra.mxu2 %v808_v31 }
  0x4a   : > { %835 = vmatpush.bf16.msra.mxu3 %v808_v31 }
  0x4c   : > { %475 = vmatpush.bf16.msra.mxu0 %v807_v32 }
  0x4d   : > { %836 = vmatpush.bf16.msra.mxu1 %v807_v32  ;;  %837 = vmatpush.bf16.msra.mxu2 %v807_v32 }
  0x4e   : > { %838 = vmatpush.bf16.msra.mxu3 %v807_v32 }
  0x4f   : > { %476 = vmatmul.bf16.vlgmr.msra.gmra.mxu0 %v803_v33 }
  0x50   : > { %481 = vmatmul.bf16.vlgmr.msra.gmra.mxu1 %v804_v34  ;;  %486 = vmatmul.bf16.vlgmr.msra.gmra.mxu2 %v805_v35 }
  0x51   : > { %491 = vmatmul.bf16.vlgmr.msra.gmra.mxu3 %v806_v36 }
  0x8c   : > { %v528_v48 = vpop.permute.xlu2 %527 }
  0x94   : > { %v533_v3 = vpop.permute.xlu2 %532 }
  0xa1   : > { %v508_v37 = vpop.permute.xlu0 %507  ;;  %v518_v38 = vpop.permute.xlu1 %517 }
  0xa9   : > { %v513_v40 = vpop.permute.xlu0 %512  ;;  %v523_v47 = vpop.permute.xlu1 %522 }
  0xb1   : > { %v538_v55 = vpop.permute.xlu0 %537  ;;  %v543_v2 = vpop.permute.xlu1 %542 }
  0xcc   : > { %v477_v41 = vpop.f32.mrf.mxu0 }
  0xcd   : > { %v482_v42 = vpop.f32.mrf.mxu1  ;;  %v478_v43 = vadd.f32 %v883_v39, %v477_v41 }
  0xce   : > { %v483_v44 = vadd.f32 %v883_v39, %v482_v42 }
  0xcf   : > { %v545_v45 = vsub.f32 %v478_v43, %v508_v37 }
  0xd0   : > { %v547_v46 = vsub.f32 %v483_v44, %v518_v38 }
  0xd1   : > { %553 = vst [vmem:[%s1082_s5] sm:$0xff] %v545_v45 }
  0xd2   : > { %555 = vst [vmem:[%s1082_s5 + $0x10] sm:$0xff] %v547_v46 }
  0xd3   : > { %v487_v49 = vpop.f32.mrf.mxu2 }
  0xd4   : > { %v492_v50 = vpop.f32.mrf.mxu3  ;;  %v488_v51 = vadd.f32 %v883_v39, %v487_v49  ;;  %v479_v53 = vpop.f32.mrf.mxu0 }
  0xd5   : > { %v493_v52 = vadd.f32 %v883_v39, %v492_v50  ;;  %v484_v54 = vpop.f32.mrf.mxu1  ;;  %v480_v56 = vadd.f32 %v883_v39, %v479_v53 }
  0xd6   : > { %v485_v57 = vadd.f32 %v883_v39, %v484_v54  ;;  %v549_v58 = vsub.f32 %v488_v51, %v528_v48 }
  0xd7   : > { %v551_v59 = vsub.f32 %v493_v52, %v538_v55  ;;  %v546_v60 = vsub.f32 %v480_v56, %v513_v40 }
  0xd8   : > { %v548_v61 = vsub.f32 %v485_v57, %v523_v47  ;;  %557 = vst [vmem:[%s1082_s5 + $0x20] sm:$0xff] %v549_v58  ;;  %v615_v6 = vld [vmem:[%s1082_s5] sm:$0xff] (%p985_p6) }
  0xd9   : > { %559 = vst [vmem:[%s1082_s5 + $0x30] sm:$0xff] %v551_v59  ;;  %v619_v8 = vld [vmem:[%s1082_s5 + $0x10] sm:$0xff] (%p985_p6) }
  0xda   : > { %554 = vst [vmem:[%s1082_s5 + $0x8] sm:$0xff] %v546_v60 }
  0xdb   : > { %556 = vst [vmem:[%s1082_s5 + $0x18] sm:$0xff] %v548_v61  ;;  %v489_v62 = vpop.f32.mrf.mxu2 }
  0xdc   : > { %v494_v63 = vpop.f32.mrf.mxu3  ;;  %v490_v0 = vadd.f32 %v883_v39, %v489_v62  ;;  %616 = vst [vmem:[%s572_s6] sm:$0xff] (%p985_p6), %v615_v6 }
  0xdd   : > { %v495_v1 = vadd.f32 %v883_v39, %v494_v63  ;;  %567 = sbr.rel (!%p985_p6) target bundleno = 234 (0xea), region = 81  ;;  %620 = vst [vmem:[%s572_s6 + $0x30] sm:$0xff] (%p985_p6), %v619_v8 }
  0xde   : > { %v550_v4 = vsub.f32 %v490_v0, %v533_v3 }
  0xdf   : > { %v552_v5 = vsub.f32 %v495_v1, %v543_v2  ;;  %v623_v10 = vld [vmem:[%s1082_s5 + $0x20] sm:$0xff] (%p985_p6) }
  0xe0   : > { %558 = vst [vmem:[%s1082_s5 + $0x28] sm:$0xff] %v550_v4  ;;  %v627_v12 = vld [vmem:[%s1082_s5 + $0x30] sm:$0xff] (%p985_p6) }
  0xe1   : > { %560 = vst [vmem:[%s1082_s5 + $0x38] sm:$0xff] %v552_v5  ;;  %v617_v7 = vld [vmem:[%s1082_s5 + $0x8] sm:$0xff] (%p985_p6) }
  0xe2   : > { %v621_v9 = vld [vmem:[%s1082_s5 + $0x18] sm:$0xff]  ;;  %618 = vst [vmem:[%s572_s6 + $0x18] sm:$0xff] %v617_v7 }
  0xe3   : > { %622 = vst [vmem:[%s572_s6 + $0x48] sm:$0xff] %v621_v9 }
  0xe4   : > { %624 = vst [vmem:[%s572_s6 + $0x60] sm:$0xff] %v623_v10 }
  0xe5   : > { %628 = vst [vmem:[%s572_s6 + $0x90] sm:$0xff] %v627_v12 }
  0xe7   : > { %v625_v11 = vld [vmem:[%s1082_s5 + $0x28] sm:$0xff] }
  0xe8   : > { %v629_v13 = vld [vmem:[%s1082_s5 + $0x38] sm:$0xff]  ;;  %626 = vst [vmem:[%s572_s6 + $0x78] sm:$0xff] %v625_v11 }
  0xe9   : > { %630 = vst [vmem:[%s572_s6 + $0xa8] sm:$0xff] %v629_v13 }
  0xea PF: > { %s14_s19 = sadd.s32 1, %s922_s19   ;;  %s1127_s15 = smov %s910_s16 }
  0xeb   : > { %p11_p12 = scmp.ge.s32.totalorder %s14_s19, 5   ;;  %s1128_s16 = smov %s990_s25 }
  0xec   : > { %s1129_s17 = smov %s918_s18  ;;  %s1130_s18 = smov %s1132_s20 }
  0xed   :  { %13 = sbr.rel (!%p11_p12) target bundleno = 3 (0x3), region = 159 }

// kernel: forward.4
= control target key start
LH: loop header
LB: loop body
LE: loop exit
PB: predicated region body
PF: predicated region fallthrough
CT: control target
= control target key end

     0   :  { %s1050_s12 = smov 0   ;;  %s1052_s13 = smov 0   ;;  %s1358_s0 = inlined_call_operand.vmem [shape: bf16[64,128], index: 0, kind: input, shape index: {}]   ;;  %s1359_s1 = inlined_call_operand.vmem [shape: bf16[128,384], index: 1, kind: input, shape index: {}]   ;;  %s1360_s2 = inlined_call_operand.vmem [shape: f32[1,384], index: 2, kind: input, shape index: {}]   ;;  %s1361_s3 = inlined_call_operand.vmem [shape: f32[64,1], index: 3, kind: output, shape index: {}]  }
   0x1   :  { %s1054_s14 = smov 0   ;;  %s1056_s15 = smov 0  }
   0x2   :  { %s1058_s16 = smov 0  }
   0x3 LB: > { %s22_s17 = sadd.s32 1, %s1021_s15  ;;  %p65_p1 = scmp.ne.s32.totalorder %s1013_s13, %s1009_s12  ;;  %s1025_s16 = sphi %s1058_s16, %s13_s16   ;;  %s1021_s15 = sphi %s1056_s15, %s1365_s15   ;;  %s1017_s14 = sphi %s1054_s14, %s1364_s14   ;;  %s1013_s13 = sphi %s1052_s13, %s1363_s13   ;;  %s1009_s12 = sphi %s1050_s12, %s1362_s12  }
   0x4   : > { %p23_p0 = scmp.ge.s32.totalorder %s22_s17, 3  ;;  %p66_p2 = scmp.eq.s32.totalorder %s1025_s16, 0 }
   0x5   : > { %s58_s19 = sadd.s32 1, %s1013_s13  ;;  %p797_p5 = scmp.ge.s32.totalorder %s1025_s16, 3 }
   0x6   : > { %s1367_s17 = smov (%p23_p0, %s22_s17), 0  ;;  %p67_p3 = por %p66_p2, %p65_p1 }
   0x7   : > { %s55_s18 = ssub.s32 %s1021_s15, %s1367_s17  ;;  %152 = sbr.rel (%p797_p5) target bundleno = 32 (0x20), region = 20 }
   0x8   : > { %p56_p4 = scmp.eq.s32.totalorder %s55_s18, 0 }
   0xa   : > { %s1085_s20 = scalar_select %p56_p4, %s1013_s13, %s58_s19  }
   0xc   : > { %155 = sbr.rel (!%p67_p3) target bundleno = 32 (0x20), region = 24  ;;  %s157_s21 = sand.u32 (%p67_p3), 1, %s1013_s13  }
   0xd   : > { %s799_s22 = sshll.u32 (%p67_p3), %s1021_s15, 2  ;;  %s798_s23 = sshll.u32 (%p67_p3), %s157_s21, 6 }
   0xe   : > { %s1093_s26 = scalar_lea.vmem (%p67_p3), %s1359_s1, %s799_s22  ;;  %s159_s27 = scalar_lea.vmem (%p67_p3), [#allocation4], %s798_s23 }
   0xf   : > { %v178_v0 = vld [vmem:[%s1093_s26] sm:$0xf] (%p67_p3)  ;;  %v180_v1 = vld [vmem:[%s1093_s26 + $0xc] sm:$0xf] (%p67_p3)  ;;  %v182_v2 = vld [vmem:[%s1093_s26 + $0x18] sm:$0xf] (%p67_p3) }
  0x10   : > { %179 = vst [vmem:[%s159_s27] sm:$0xf] (%p67_p3), %v178_v0  ;;  %v184_v3 = vld [vmem:[%s1093_s26 + $0x24] sm:$0xf] (%p67_p3)  ;;  %v186_v4 = vld [vmem:[%s1093_s26 + $0x30] sm:$0xf] (%p67_p3) }
  0x11   : > { %181 = vst [vmem:[%s159_s27 + $0x4] sm:$0xf] %v180_v1  ;;  %v188_v5 = vld [vmem:[%s1093_s26 + $0x3c] sm:$0xf]  ;;  %v190_v6 = vld [vmem:[%s1093_s26 + $0x48] sm:$0xf] }
  0x12   : > { %183 = vst [vmem:[%s159_s27 + $0x8] sm:$0xf] %v182_v2  ;;  %v192_v7 = vld [vmem:[%s1093_s26 + $0x54] sm:$0xf]  ;;  %v194_v8 = vld [vmem:[%s1093_s26 + $0x60] sm:$0xf] }
  0x13   : > { %185 = vst [vmem:[%s159_s27 + $0xc] sm:$0xf] %v184_v3  ;;  %v196_v9 = vld [vmem:[%s1093_s26 + $0x6c] sm:$0xf]  ;;  %v198_v10 = vld [vmem:[%s1093_s26 + $0x78] sm:$0xf] }
  0x14   : > { %187 = vst [vmem:[%s159_s27 + $0x10] sm:$0xf] %v186_v4  ;;  %v200_v11 = vld [vmem:[%s1093_s26 + $0x84] sm:$0xf]  ;;  %v202_v12 = vld [vmem:[%s1093_s26 + $0x90] sm:$0xf] }
  0x15   : > { %189 = vst [vmem:[%s159_s27 + $0x14] sm:$0xf] %v188_v5  ;;  %v204_v13 = vld [vmem:[%s1093_s26 + $0x9c] sm:$0xf]  ;;  %v206_v14 = vld [vmem:[%s1093_s26 + $0xa8] sm:$0xf] }
  0x16   : > { %191 = vst [vmem:[%s159_s27 + $0x18] sm:$0xf] %v190_v6  ;;  %v208_v15 = vld [vmem:[%s1093_s26 + $0xb4] sm:$0xf] }
  0x17   : > { %193 = vst [vmem:[%s159_s27 + $0x1c] sm:$0xf] %v192_v7 }
  0x18   : > { %195 = vst [vmem:[%s159_s27 + $0x20] sm:$0xf] %v194_v8 }
  0x19   : > { %197 = vst [vmem:[%s159_s27 + $0x24] sm:$0xf] %v196_v9 }
  0x1a   : > { %199 = vst [vmem:[%s159_s27 + $0x28] sm:$0xf] %v198_v10 }
  0x1b   : > { %201 = vst [vmem:[%s159_s27 + $0x2c] sm:$0xf] %v200_v11 }
  0x1c   : > { %203 = vst [vmem:[%s159_s27 + $0x30] sm:$0xf] %v202_v12 }
  0x1d   : > { %205 = vst [vmem:[%s159_s27 + $0x34] sm:$0xf] %v204_v13 }
  0x1e   : > { %207 = vst [vmem:[%s159_s27 + $0x38] sm:$0xf] %v206_v14 }
  0x1f   : > { %209 = vst [vmem:[%s159_s27 + $0x3c] sm:$0xf] %v208_v15 }
  0x20 PF: > { %p800_p6 = scmp.ge.s32.totalorder %s1025_s16, 1  ;;  %p270_p7 = scmp.lt.s32.totalorder %s1025_s16, 4 }
  0x22   : > { %p271_p8 = pnand %p800_p6, %p270_p7 }
  0x23   : > { %s277_s28 = sand.u32 (!%p271_p8), 1, %s1009_s12   ;;  %p314_p9 = scmp.lt.s32.totalorder (!%p271_p8), %s1017_s14, 2 }
  0x24   : > { %274 = sbr.rel (%p271_p8) target bundleno = 639 (0x27f), region = 69  ;;  %s801_s29 = sshll.u32 (!%p271_p8), %s277_s28, 6 }
  0x25   : > { %s1122_s7 = scalar_lea.vmem (!%p271_p8), [#allocation4], %s801_s29  ;;  %p802_p10 = scmp.ne.s32.totalorder (!%p271_p8), %s1017_s14, 0 }
  0x29   : > { %s1116_s30 = scalar_select %p314_p9, %s1017_s14, 2 }
  0x2a   : > { %326 = sbr.rel (%p802_p10) target bundleno = 64 (0x40), region = 77 }
  0x2b   : > { %s316_s6 = scalar_lea.vmem %s1360_s2, %s1116_s30 }
  0x2f   : > { %vm327_vm0 = vcmask 7168   ;;  %v1027_v16 = vmov -inf   ;;  %v1028_v17 = vmov 0.0  }
  0x30   : > { %328 = vst.msk [vmem:[#allocation2] sm:$0xff] %vm327_vm0, %v1027_v16 }
  0x31   : > { %329 = vst.msk [vmem:[#allocation2 + $0x8] sm:$0xff] %vm327_vm0, %v1027_v16 }
  0x32   : > { %330 = vst.msk [vmem:[#allocation2 + $0x10] sm:$0xff] %vm327_vm0, %v1027_v16 }
  0x33   : > { %331 = vst.msk [vmem:[#allocation2 + $0x18] sm:$0xff] %vm327_vm0, %v1027_v16 }
  0x34   : > { %332 = vst.msk [vmem:[#allocation2 + $0x20] sm:$0xff] %vm327_vm0, %v1027_v16 }
  0x35   : > { %333 = vst.msk [vmem:[#allocation2 + $0x28] sm:$0xff] %vm327_vm0, %v1027_v16 }
  0x36   : > { %334 = vst.msk [vmem:[#allocation2 + $0x30] sm:$0xff] %vm327_vm0, %v1027_v16 }
  0x37   : > { %335 = vst.msk [vmem:[#allocation2 + $0x38] sm:$0xff] %vm327_vm0, %v1027_v16 }
  0x38   : > { %336 = vst.msk [vmem:[#allocation3] sm:$0xff] %vm327_vm0, %v1028_v17 }
  0x39   : > { %337 = vst.msk [vmem:[#allocation3 + $0x8] sm:$0xff] %vm327_vm0, %v1028_v17 }
  0x3a   : > { %338 = vst.msk [vmem:[#allocation3 + $0x10] sm:$0xff] %vm327_vm0, %v1028_v17 }
  0x3b   : > { %339 = vst.msk [vmem:[#allocation3 + $0x18] sm:$0xff] %vm327_vm0, %v1028_v17 }
  0x3c   : > { %340 = vst.msk [vmem:[#allocation3 + $0x20] sm:$0xff] %vm327_vm0, %v1028_v17 }
  0x3d   : > { %341 = vst.msk [vmem:[#allocation3 + $0x28] sm:$0xff] %vm327_vm0, %v1028_v17 }
  0x3e   : > { %342 = vst.msk [vmem:[#allocation3 + $0x30] sm:$0xff] %vm327_vm0, %v1028_v17 }
  0x3f   : > { %343 = vst.msk [vmem:[#allocation3 + $0x38] sm:$0xff] %vm327_vm0, %v1028_v17 }
  0x40 PF: > { %v867_v18 = vld [vmem:[%s1122_s7 + $0x38] sm:$0xff]  ;;  %v866_v19 = vld [vmem:[%s1122_s7 + $0x30] sm:$0xff]  ;;  %v865_v20 = vld [vmem:[%s1122_s7 + $0x28] sm:$0xff]  ;;  %v1029_v47 = vmov 0   ;;  %vm633_vm1 = vcmask 7168   ;;  %p851_p11 = scmp.ne.s32.totalorder %s1017_s14, 2 }
  0x41   : > { %444 = vmatpush.bf16.msra.mxu0 %v867_v18  ;;  %868 = vmatpush.bf16.msra.mxu1 %v867_v18  ;;  %v864_v21 = vld [vmem:[%s1122_s7 + $0x20] sm:$0xff]  ;;  %v863_v22 = vld [vmem:[%s1122_s7 + $0x18] sm:$0xff]  ;;  %v862_v23 = vld [vmem:[%s1122_s7 + $0x10] sm:$0xff] }
  0x42   : > { %869 = vmatpush.bf16.msra.mxu2 %v867_v18  ;;  %870 = vmatpush.bf16.msra.mxu3 %v867_v18  ;;  %v861_v24 = vld [vmem:[%s1122_s7 + $0x8] sm:$0xff]  ;;  %v860_v25 = vld [vmem:[%s1122_s7] sm:$0xff]  ;;  %v858_v28 = vld [vmem:[%s1358_s0 + $0x10] sm:$0xff] }
  0x43   : > { %v856_v26 = vld [vmem:[%s1358_s0] sm:$0xff]  ;;  %v857_v27 = vld [vmem:[%s1358_s0 + $0x8] sm:$0xff]  ;;  %v859_v29 = vld [vmem:[%s1358_s0 + $0x18] sm:$0xff]  ;;  %936 = vset.pattern.permute.xlu1 %v1029_v47  ;;  %935 = vset.pattern.permute.xlu2 %v1029_v47 }
  0x44   : > { %v938_v30 = vld [vmem:[%s316_s6] ss:$0 sm:$0xff]  ;;  %937 = vset.pattern.permute.xlu0 %v1029_v47  ;;  %v1190_v48 = vld [vmem:[#allocation2 + $0x10] sm:$0xff]  ;;  %v1212_v57 = vld [vmem:[#allocation2 + $0x18] sm:$0xff] }
  0x45   : > { %445 = vmatpush.bf16.msra.mxu0 %v866_v19  ;;  %871 = vmatpush.bf16.msra.mxu1 %v866_v19  ;;  %v1192_v49 = vld [vmem:[#allocation2] sm:$0xff]  ;;  %v1214_v58 = vld [vmem:[#allocation2 + $0x30] sm:$0xff]  ;;  %v1238_v4 = vld [vmem:[#allocation2 + $0x28] sm:$0xff] }
  0x46   : > { %872 = vmatpush.bf16.msra.mxu2 %v866_v19  ;;  %873 = vmatpush.bf16.msra.mxu3 %v866_v19  ;;  %v1210_v56 = vld [vmem:[#allocation2 + $0x20] sm:$0xff]  ;;  %v1240_v5 = vld [vmem:[#allocation2 + $0x38] sm:$0xff]  ;;  %v1242_v6 = vld [vmem:[#allocation2 + $0x8] sm:$0xff] }
  0x49   : > { %446 = vmatpush.bf16.msra.mxu0 %v865_v20  ;;  %874 = vmatpush.bf16.msra.mxu1 %v865_v20 }
  0x4a   : > { %875 = vmatpush.bf16.msra.mxu2 %v865_v20  ;;  %876 = vmatpush.bf16.msra.mxu3 %v865_v20 }
  0x4d   : > { %447 = vmatpush.bf16.msra.mxu0 %v864_v21  ;;  %877 = vmatpush.bf16.msra.mxu1 %v864_v21 }
  0x4e   : > { %878 = vmatpush.bf16.msra.mxu2 %v864_v21  ;;  %879 = vmatpush.bf16.msra.mxu3 %v864_v21 }
  0x51   : > { %448 = vmatpush.bf16.msra.mxu0 %v863_v22  ;;  %880 = vmatpush.bf16.msra.mxu1 %v863_v22 }
  0x52   : > { %881 = vmatpush.bf16.msra.mxu2 %v863_v22  ;;  %882 = vmatpush.bf16.msra.mxu3 %v863_v22 }
  0x55   : > { %449 = vmatpush.bf16.msra.mxu0 %v862_v23  ;;  %883 = vmatpush.bf16.msra.mxu1 %v862_v23 }
  0x56   : > { %884 = vmatpush.bf16.msra.mxu2 %v862_v23  ;;  %885 = vmatpush.bf16.msra.mxu3 %v862_v23 }
  0x59   : > { %450 = vmatpush.bf16.msra.mxu0 %v861_v24  ;;  %886 = vmatpush.bf16.msra.mxu1 %v861_v24 }
  0x5a   : > { %887 = vmatpush.bf16.msra.mxu2 %v861_v24  ;;  %888 = vmatpush.bf16.msra.mxu3 %v861_v24 }
  0x5d   : > { %451 = vmatpush.bf16.msra.mxu0 %v860_v25  ;;  %889 = vmatpush.bf16.msra.mxu1 %v860_v25 }
  0x5e   : > { %890 = vmatpush.bf16.msra.mxu2 %v860_v25  ;;  %891 = vmatpush.bf16.msra.mxu3 %v860_v25 }
  0x60   : > { %452 = vmatmul.bf16.vlgmr.msra.gmra.mxu0 %v856_v26  ;;  %457 = vmatmul.bf16.vlgmr.msra.gmra.mxu1 %v857_v27 }
  0x61   : > { %462 = vmatmul.bf16.vlgmr.msra.gmra.mxu2 %v858_v28  ;;  %467 = vmatmul.bf16.vlgmr.msra.gmra.mxu3 %v859_v29 }
  0xdd   : > { %v453_v31 = vpop.f32.mrf.mxu0  ;;  %v458_v32 = vpop.f32.mrf.mxu1 }
  0xde   : > { %v1166_v33 = vadd.f32 %v938_v30, %v453_v31  ;;  %v1168_v34 = vadd.f32 %v938_v30, %v458_v32 }
  0xe0   : > { %485 = vmax.xlane.f32.xlu1 %v1168_v34  ;;  %481 = vmax.xlane.f32.xlu0 %v1166_v33 }
  0xe4   : > { %v463_v35 = vpop.f32.mrf.mxu2  ;;  %v468_v36 = vpop.f32.mrf.mxu3 }
  0xe5   : > { %v1172_v37 = vadd.f32 %v938_v30, %v463_v35  ;;  %v1174_v38 = vadd.f32 %v938_v30, %v468_v36  ;;  %v460_v39 = vpop.f32.mrf.mxu1  ;;  %v455_v41 = vpop.f32.mrf.mxu0 }
  0xe6   : > { %v1176_v40 = vadd.f32 %v938_v30, %v460_v39  ;;  %v1183_v45 = vadd.f32 %v938_v30, %v455_v41 }
  0xe7   : > { %489 = vmax.xlane.f32.xlu2 %v1172_v37 }
  0xe8   : > { %487 = vmax.xlane.f32.xlu1 %v1176_v40  ;;  %493 = vmax.xlane.f32.xlu0 %v1174_v38 }
  0xec   : > { %v465_v42 = vpop.f32.mrf.mxu2  ;;  %v470_v43 = vpop.f32.mrf.mxu3 }
  0xed   : > { %v1181_v44 = vadd.f32 %v938_v30, %v465_v42  ;;  %v1185_v46 = vadd.f32 %v938_v30, %v470_v43 }
  0xef   : > { %491 = vmax.xlane.f32.xlu2 %v1181_v44 }
  0xf0   : > { %495 = vmax.xlane.f32.xlu1 %v1185_v46  ;;  %483 = vmax.xlane.f32.xlu0 %v1183_v45 }
 0x153   : > { %v486_v50 = vpop.xlane.xlu1 %485  ;;  %v482_v51 = vpop.xlane.xlu0 %481 }
 0x154   : > { %v1195_v52 = vmax.f32 %v1190_v48, %v486_v50  ;;  %v1198_v53 = vmax.f32 %v1192_v49, %v482_v51 }
 0x156   : > { %v515_v54 = vsub.f32 %v1190_v48, %v1195_v52  ;;  %644 = vst.msk [vmem:[#allocation2 + $0x10] sm:$0xff] %vm633_vm1, %v1195_v52  ;;  %v513_v55 = vsub.f32 %v1192_v49, %v1198_v53  ;;  %557 = vperm.xlu1 %936, %v1195_v52   ;;  %547 = vperm.xlu2 %935, %v1198_v53  }
 0x157   : > { %642 = vst.msk [vmem:[#allocation2] sm:$0xff] %vm633_vm1, %v1198_v53 }
 0x158   : > { %v525_v49 = vmul.f32 1.442695, %v515_v54 }
 0x15a   : > { %v490_v59 = vpop.xlane.xlu2 %489 }
 0x15b   : > { %v1217_v60 = vmax.f32 %v1210_v56, %v490_v59  ;;  %v488_v61 = vpop.xlane.xlu1 %487  ;;  %v494_v62 = vpop.xlane.xlu0 %493 }
 0x15c   : > { %v1220_v63 = vmax.f32 %v1212_v57, %v488_v61  ;;  %v1223_v0 = vmax.f32 %v1214_v58, %v494_v62  ;;  %v505_v62 = vld [vmem:[#allocation3] sm:$0xff] }
 0x15d   : > { %v517_v1 = vsub.f32 %v1210_v56, %v1217_v60  ;;  %646 = vst.msk [vmem:[#allocation2 + $0x20] sm:$0xff] %vm633_vm1, %v1217_v60 }
 0x15e   : > { %v516_v2 = vsub.f32 %v1212_v57, %v1220_v63  ;;  %645 = vst.msk [vmem:[#allocation2 + $0x18] sm:$0xff] %vm633_vm1, %v1220_v63  ;;  %v519_v3 = vsub.f32 %v1214_v58, %v1223_v0  ;;  %567 = vperm.xlu2 %935, %v1217_v60  }
 0x15f   : > { %648 = vst.msk [vmem:[#allocation2 + $0x30] sm:$0xff] %vm633_vm1, %v1223_v0  ;;  %v529_v59 = vmul.f32 1.442695, %v517_v1 }
 0x160   : > { %v527_v52 = vmul.f32 1.442695, %v516_v2 }
 0x162   : > { %v492_v7 = vpop.xlane.xlu2 %491 }
 0x163   : > { %v1245_v8 = vmax.f32 %v1238_v4, %v492_v7  ;;  %v496_v9 = vpop.xlane.xlu1 %495  ;;  %v484_v10 = vpop.xlane.xlu0 %483 }
 0x164   : > { %v1248_v11 = vmax.f32 %v1240_v5, %v496_v9  ;;  %v1251_v12 = vmax.f32 %v1242_v6, %v484_v10 }
 0x165   : > { %v518_v13 = vsub.f32 %v1238_v4, %v1245_v8  ;;  %647 = vst.msk [vmem:[#allocation2 + $0x28] sm:$0xff] %vm633_vm1, %v1245_v8  ;;  %572 = vperm.xlu1 %936, %v1245_v8   ;;  %v510_v4 = vld [vmem:[#allocation3 + $0x28] sm:$0xff] }
 0x166   : > { %v520_v14 = vsub.f32 %v1240_v5, %v1248_v11  ;;  %649 = vst.msk [vmem:[#allocation2 + $0x38] sm:$0xff] %vm633_vm1, %v1248_v11  ;;  %v514_v15 = vsub.f32 %v1242_v6, %v1251_v12  ;;  %562 = vperm.xlu2 %935, %v1220_v63   ;;  %552 = vperm.xlu0 %937, %v1251_v12   ;;  %v533_v5 = vmul.f32 1.442695, %v519_v3  ;;  %v512_v63 = vld [vmem:[#allocation3 + $0x38] sm:$0xff] }
 0x167   : > { %643 = vst.msk [vmem:[#allocation2 + $0x8] sm:$0xff] %vm633_vm1, %v1251_v12  ;;  %v531_v1 = vmul.f32 1.442695, %v518_v13  ;;  %v506_v13 = vld [vmem:[#allocation3 + $0x8] sm:$0xff] }
 0x168   : > { %v535_v48 = vmul.f32 1.442695, %v520_v14 }
 0x16d   : > { %582 = vperm.xlu1 %936, %v1248_v11   ;;  %v508_v11 = vld [vmem:[#allocation3 + $0x18] sm:$0xff] }
 0x16e   : > { %577 = vperm.xlu2 %935, %v1223_v0   ;;  %v511_v0 = vld [vmem:[#allocation3 + $0x30] sm:$0xff] }
 0x1b0   : > { %v548_v16 = vpop.permute.xlu2 %547 }
 0x1b1   : > { %v585_v17 = vsub.f32 %v1166_v33, %v548_v16  ;;  %v509_v16 = vld [vmem:[#allocation3 + $0x20] sm:$0xff] }
 0x1b3   : > { %v593_v18 = vmul.f32 1.442695, %v585_v17 }
 0x1b5   : > { %939 = vpow2.f32 %v593_v18 }
 0x1b8   : > { %v568_v19 = vpop.permute.xlu2 %567 }
 0x1b9   : > { %v589_v20 = vsub.f32 %v1172_v37, %v568_v19 }
 0x1bb   : > { %v940_v21 = vpop.eup %939  ;;  %v601_v22 = vmul.f32 1.442695, %v589_v20 }
 0x1bc   : > { %609 = vadd.xlane.f32.xlu0 %v940_v21  ;;  %v523_v21 = vmul.f32 1.442695, %v514_v15 }
 0x1bd   : > { %941 = vpow2.f32 %v601_v22 }
 0x1c0   : > { %v563_v29 = vpop.permute.xlu2 %562 }
 0x1c1   : > { %v588_v36 = vsub.f32 %v1176_v40, %v563_v29 }
 0x1c3   : > { %v942_v23 = vpop.eup %941  ;;  %v599_v39 = vmul.f32 1.442695, %v588_v36 }
 0x1c4   : > { %617 = vadd.xlane.f32.xlu0 %v942_v23 }
 0x1c8   : > { %v558_v24 = vpop.permute.xlu1 %557  ;;  %v578_v42 = vpop.permute.xlu2 %577 }
 0x1c9   : > { %v587_v25 = vsub.f32 %v1168_v34, %v558_v24 }
 0x1cb   : > { %v597_v26 = vmul.f32 1.442695, %v587_v25 }
 0x1cd   : > { %943 = vpow2.f32 %v597_v26 }
 0x1d3   : > { %v944_v27 = vpop.eup %943 }
 0x1d4   : > { %613 = vadd.xlane.f32.xlu1 %v944_v27 }
 0x1d7   : > { %v573_v28 = vpop.permute.xlu1 %572 }
 0x1d8   : > { %v590_v30 = vsub.f32 %v1181_v44, %v573_v28  ;;  %v553_v31 = vpop.permute.xlu0 %552  ;;  %v591_v44 = vsub.f32 %v1174_v38, %v578_v42 }
 0x1d9   : > { %v586_v32 = vsub.f32 %v1183_v45, %v553_v31 }
 0x1da   : > { %v603_v33 = vmul.f32 1.442695, %v590_v30  ;;  %v605_v45 = vmul.f32 1.442695, %v591_v44 }
 0x1db   : > { %v595_v35 = vmul.f32 1.442695, %v586_v32 }
 0x1dc   : > { %945 = vpow2.f32 %v603_v33 }
 0x1dd   : > { %947 = vpow2.f32 %v595_v35 }
 0x1df   : > { %v583_v37 = vpop.permute.xlu1 %582 }
 0x1e0   : > { %v592_v34 = vsub.f32 %v1185_v46, %v583_v37  ;;  %v521_v46 = vmul.f32 1.442695, %v513_v55  ;;  %v507_v55 = vld [vmem:[#allocation3 + $0x10] sm:$0xff] }
 0x1e2   : > { %v946_v41 = vpop.eup %945  ;;  %v607_v43 = vmul.f32 1.442695, %v592_v34 }
 0x1e3   : > { %v948_v47 = vpop.eup %947  ;;  %619 = vadd.xlane.f32.xlu1 %v946_v41 }
 0x1e4   : > { %949 = vpow2.f32 %v607_v43  ;;  %611 = vadd.xlane.f32.xlu2 %v948_v47 }
 0x1e5   : > { %951 = vpow2.f32 %v599_v39 }
 0x1e6   : > { %953 = vpow2.f32 %v605_v45 }
 0x1e7   : > { %955 = vpow2.f32 %v521_v46 }
 0x1e8   : > { %957 = vpow2.f32 %v529_v59 }
 0x1e9   : > { %959 = vpow2.f32 %v525_v49 }
 0x1ea   : > { %v950_v50 = vpop.eup %949  ;;  %961 = vpow2.f32 %v531_v1 }
 0x1eb   : > { %v952_v51 = vpop.eup %951  ;;  %623 = vadd.xlane.f32.xlu0 %v950_v50  ;;  %963 = vpow2.f32 %v523_v21 }
 0x1ec   : > { %615 = vadd.xlane.f32.xlu2 %v952_v51  ;;  %v954_v40 = vpop.eup %953  ;;  %965 = vpow2.f32 %v535_v48 }
 0x1ed   : > { %v956_v61 = vpop.eup %955  ;;  %967 = vpow2.f32 %v527_v52 }
 0x1ee   : > { %v537_v38 = vmul.f32 %v956_v61, %v505_v62  ;;  %v958_v10 = vpop.eup %957  ;;  %969 = vpow2.f32 %v533_v5 }
 0x1ef   : > { %v541_v17 = vmul.f32 %v958_v10, %v509_v16  ;;  %v960_v53 = vpop.eup %959 }
 0x1f0   : > { %v539_v56 = vmul.f32 %v960_v53, %v507_v55  ;;  %v962_v54 = vpop.eup %961 }
 0x1f1   : > { %v964_v8 = vpop.eup %963  ;;  %v542_v6 = vmul.f32 %v962_v54, %v510_v4 }
 0x1f2   : > { %v538_v15 = vmul.f32 %v964_v8, %v506_v13  ;;  %v966_v57 = vpop.eup %965 }
 0x1f3   : > { %v968_v2 = vpop.eup %967  ;;  %v544_v14 = vmul.f32 %v966_v57, %v512_v63 }
 0x1f4   : > { %621 = vadd.xlane.f32.xlu2 %v954_v40  ;;  %v540_v26 = vmul.f32 %v968_v2, %v508_v11  ;;  %v970_v58 = vpop.eup %969 }
 0x1f5   : > { %v543_v3 = vmul.f32 %v970_v58, %v511_v0 }
 0x22f   : > { %v610_v7 = vpop.xlane.xlu0 %609 }
 0x230   : > { %v625_v9 = vadd.f32 %v610_v7, %v537_v38 }
 0x232   : > { %634 = vst.msk [vmem:[#allocation3] sm:$0xff] %vm633_vm1, %v625_v9 }
 0x237   : > { %v618_v18 = vpop.xlane.xlu0 %617 }
 0x238   : > { %v629_v19 = vadd.f32 %v618_v18, %v541_v17 }
 0x23a   : > { %638 = vst.msk [vmem:[#allocation3 + $0x20] sm:$0xff] %vm633_vm1, %v629_v19 }
 0x247   : > { %v614_v60 = vpop.xlane.xlu1 %613 }
 0x248   : > { %v627_v20 = vadd.f32 %v614_v60, %v539_v56 }
 0x24a   : > { %636 = vst.msk [vmem:[#allocation3 + $0x10] sm:$0xff] %vm633_vm1, %v627_v20 }
 0x256   : > { %v620_v12 = vpop.xlane.xlu1 %619 }
 0x257   : > { %v630_v22 = vadd.f32 %v620_v12, %v542_v6  ;;  %v612_v23 = vpop.xlane.xlu2 %611 }
 0x258   : > { %v626_v24 = vadd.f32 %v612_v23, %v538_v15 }
 0x259   : > { %639 = vst.msk [vmem:[#allocation3 + $0x28] sm:$0xff] %vm633_vm1, %v630_v22 }
 0x25a   : > { %635 = vst.msk [vmem:[#allocation3 + $0x8] sm:$0xff] %vm633_vm1, %v626_v24 }
 0x25e   : > { %v624_v25 = vpop.xlane.xlu0 %623 }
 0x25f   : > { %v632_v27 = vadd.f32 %v624_v25, %v544_v14  ;;  %v616_v28 = vpop.xlane.xlu2 %615 }
 0x260   : > { %v628_v29 = vadd.f32 %v616_v28, %v540_v26 }
 0x261   : > { %641 = vst.msk [vmem:[#allocation3 + $0x38] sm:$0xff] %vm633_vm1, %v632_v27 }
 0x262   : > { %637 = vst.msk [vmem:[#allocation3 + $0x18] sm:$0xff] %vm633_vm1, %v628_v29 }
 0x266   : > { %653 = sbr.rel (%p851_p11) target bundleno = 639 (0x27f), region = 81 }
 0x267   : > { %v622_v30 = vpop.xlane.xlu2 %621 }
 0x268   : > { %v631_v31 = vadd.f32 %v622_v30, %v543_v3 }
 0x26a   : > { %640 = vst.msk [vmem:[#allocation3 + $0x30] sm:$0xff] %vm633_vm1, %v631_v31 }
 0x26b   : > { %v662_v32 = vld [vmem:[#allocation3] sm:$0xff]  ;;  %v663_v33 = vld [vmem:[#allocation3 + $0x8] sm:$0xff]  ;;  %v664_v35 = vld [vmem:[#allocation3 + $0x10] sm:$0xff] }
 0x26c   : > { %971 = vlog2.f32 %v662_v32  ;;  %v665_v36 = vld [vmem:[#allocation3 + $0x18] sm:$0xff]  ;;  %v666_v37 = vld [vmem:[#allocation3 + $0x20] sm:$0xff]  ;;  %v667_v34 = vld [vmem:[#allocation3 + $0x28] sm:$0xff] }
 0x26d   : > { %973 = vlog2.f32 %v663_v33  ;;  %v669_v41 = vld [vmem:[#allocation3 + $0x38] sm:$0xff]  ;;  %v654_v43 = vld [vmem:[#allocation2] sm:$0xff]  ;;  %v655_v45 = vld [vmem:[#allocation2 + $0x8] sm:$0xff] }
 0x26e   : > { %975 = vlog2.f32 %v664_v35  ;;  %v656_v40 = vld [vmem:[#allocation2 + $0x10] sm:$0xff]  ;;  %v657_v62 = vld [vmem:[#allocation2 + $0x18] sm:$0xff]  ;;  %v658_v10 = vld [vmem:[#allocation2 + $0x20] sm:$0xff] }
 0x26f   : > { %977 = vlog2.f32 %v665_v36  ;;  %v659_v19 = vld [vmem:[#allocation2 + $0x28] sm:$0xff]  ;;  %v660_v56 = vld [vmem:[#allocation2 + $0x30] sm:$0xff]  ;;  %v661_v21 = vld [vmem:[#allocation2 + $0x38] sm:$0xff] }
 0x270   : > { %979 = vlog2.f32 %v666_v37 }
 0x271   : > { %v668_v39 = vld [vmem:[#allocation3 + $0x30] sm:$0xff]  ;;  %981 = vlog2.f32 %v667_v34 }
 0x272   : > { %v972_v42 = vpop.eup %971  ;;  %983 = vlog2.f32 %v668_v39 }
 0x273   : > { %v974_v47 = vpop.eup %973  ;;  %v671_v44 = vmul.f32 0.6931472, %v972_v42  ;;  %985 = vlog2.f32 %v669_v41 }
 0x274   : > { %v976_v50 = vpop.eup %975  ;;  %v673_v51 = vmul.f32 0.6931472, %v974_v47 }
 0x275   : > { %v978_v46 = vpop.eup %977  ;;  %v686_v59 = vadd.f32 %v671_v44, %v654_v43  ;;  %v675_v61 = vmul.f32 0.6931472, %v976_v50 }
 0x276   : > { %v980_v38 = vpop.eup %979  ;;  %v687_v7 = vadd.f32 %v673_v51, %v655_v45  ;;  %v677_v9 = vmul.f32 0.6931472, %v978_v46 }
 0x277   : > { %v982_v16 = vpop.eup %981  ;;  %694 = vst.msk [vmem:[%s1361_s3] sm:$0xff] %vm633_vm1, %v686_v59  ;;  %v688_v17 = vadd.f32 %v675_v61, %v656_v40  ;;  %v679_v18 = vmul.f32 0.6931472, %v980_v38 }
 0x278   : > { %v984_v49 = vpop.eup %983  ;;  %695 = vst.msk [vmem:[%s1361_s3 + $0x8] sm:$0xff] %vm633_vm1, %v687_v7  ;;  %v689_v53 = vadd.f32 %v677_v9, %v657_v62  ;;  %v681_v55 = vmul.f32 0.6931472, %v982_v16 }
 0x279   : > { %v986_v60 = vpop.eup %985  ;;  %696 = vst.msk [vmem:[%s1361_s3 + $0x10] sm:$0xff] %vm633_vm1, %v688_v17  ;;  %v690_v1 = vadd.f32 %v679_v18, %v658_v10  ;;  %v683_v20 = vmul.f32 0.6931472, %v984_v49 }
 0x27a   : > { %697 = vst.msk [vmem:[%s1361_s3 + $0x18] sm:$0xff] %vm633_vm1, %v689_v53  ;;  %v691_v48 = vadd.f32 %v681_v55, %v659_v19  ;;  %v685_v52 = vmul.f32 0.6931472, %v986_v60 }
 0x27b   : > { %698 = vst.msk [vmem:[%s1361_s3 + $0x20] sm:$0xff] %vm633_vm1, %v690_v1  ;;  %v692_v54 = vadd.f32 %v683_v20, %v660_v56 }
 0x27c   : > { %699 = vst.msk [vmem:[%s1361_s3 + $0x28] sm:$0xff] %vm633_vm1, %v691_v48  ;;  %v693_v4 = vadd.f32 %v685_v52, %v661_v21 }
 0x27d   : > { %700 = vst.msk [vmem:[%s1361_s3 + $0x30] sm:$0xff] %vm633_vm1, %v692_v54 }
 0x27e   : > { %701 = vst.msk [vmem:[%s1361_s3 + $0x38] sm:$0xff] %vm633_vm1, %v693_v4 }
 0x27f PF: > { %s13_s16 = sadd.s32 1, %s1025_s16   ;;  %s1362_s12 = smov %s1013_s13 }
 0x280   : > { %p10_p12 = scmp.ge.s32.totalorder %s13_s16, 5   ;;  %s1363_s13 = smov %s1085_s20 }
 0x281   : > { %s1364_s14 = smov %s1021_s15  ;;  %s1365_s15 = smov %s1367_s17 }
 0x282   :  { %12 = sbr.rel (!%p10_p12) target bundleno = 3 (0x3), region = 122 }

// kernel: forward.3
= control target key start
LH: loop header
LB: loop body
LE: loop exit
PB: predicated region body
PF: predicated region fallthrough
CT: control target
= control target key end

     0   :  { %20 = vsyncpa [#allocation5], 0  ;;  %s5555_s0 = inlined_call_operand.vmem [shape: bf16[64,32], index: 0, kind: input, shape index: {}]   ;;  %s5556_s1 = inlined_call_operand.vmem [shape: bf16[8,1024], index: 1, kind: input, shape index: {}]   ;;  %s5557_s2 = inlined_call_operand.hbm [shape: bf16[1024,128], index: 2, kind: input, shape index: {}]   ;;  %s5558_s3 = inlined_call_operand.vmem [shape: f32[1,128], index: 3, kind: input, shape index: {}]   ;;  %s5559_s4 = inlined_call_operand.vmem [shape: bf16[32,512], index: 4, kind: input, shape index: {}]   ;;  %s5560_s5 = inlined_call_operand.hbm [shape: bf16[128,512], index: 5, kind: input, shape index: {}]   ;;  %s5561_s6 = inlined_call_operand.vmem [shape: f32[1,512], index: 6, kind: input, shape index: {}]   ;;  %s5562_s7 = inlined_call_operand.hbm [shape: bf16[128,512], index: 7, kind: input, shape index: {}]   ;;  %s5563_s8 = inlined_call_operand.vmem [shape: bf16[128,512], index: 8, kind: input, shape index: {}]   ;;  %s5564_s9 = inlined_call_operand.vmem [shape: f32[1,512], index: 9, kind: input, shape index: {}]   ;;  %s5565_s10 = inlined_call_operand.vmem [shape: f32[2,8,128], index: 10, kind: input, shape index: {}, may-alias: {10,11}]   ;;  %s5566_s11 = inlined_call_operand.vmem [shape: f32[2,8,128], index: 11, kind: input, shape index: {}, may-alias: {10,11}]   ;;  %s5567_s12 = inlined_call_operand.vmem [shape: bf16[64,128], index: 12, kind: output, shape index: {0}]   ;;  %s5568_s13 = inlined_call_operand.hbm [shape: f32[2,8,128], index: 13, kind: output, shape index: {1}]   ;;  %s5569_s14 = inlined_call_operand.hbm [shape: f32[2,8,128], index: 14, kind: output, shape index: {2}]  }
   0x1   :  { %21 = vsyncpa [#allocation8], 0 }
   0x2   :  { %22 = vsyncpa [#allocation6], 0 }
   0x3   :  { %23 = vsyncpa [#allocation12], 0  ;;  %s4581_s29 = smov 0  }
   0x4 LB: > { %s393_s30 = sshll.u32 %s5560_s5, 4  ;;  %s4590_s15 = sadd.s32 4294967295, %s4493_s29   ;;  %s4493_s29 = sphi %s4581_s29, %s29_s29   ;;  %s394_s30 = int_to_ptr.hbm [resolvable:$true] %s393_s30 }
   0x5   : > { %p3222_p0 = scmp.ge.s32.totalorder %s4493_s29, 1  ;;  %p359_p1 = scmp.lt.s32.totalorder %s4493_s29, 3 }
   0x6   : > { %p3223_p2 = scmp.ne.s32.totalorder %s4590_s15, 0  ;;  %p4167_p3 = scmp.eq.s32.totalorder %s4590_s15, 0 }
   0x7   : > { %p4596_p4 = pnand %p3222_p0, %p359_p1  ;;  %s4495_s17 = smov [#allocation7]  }
   0x8   : > { %s395_s18 = sshll.u32 %s4495_s17, 4  ;;  %s373_s21 = sshll.u32 %s5557_s2, 4  ;;  %s396_s18 = int_to_ptr.vmem [resolvable:$true] %s395_s18  ;;  %s374_s21 = int_to_ptr.hbm [resolvable:$true] %s373_s21 }
   0x9   : > { %p4157_p5 = pneg %p4596_p4  ;;  %s4496_s23 = smov [#allocation4]  }
   0xa   : > { %s375_s24 = sshll.u32 %s4496_s23, 4  ;;  %s4497_s25 = smov 256   ;;  %s376_s24 = int_to_ptr.vmem [resolvable:$true] %s375_s24 }
   0xb   : > { %p4607_p6 = pnand %p4167_p3, %p4157_p5  ;;  %s4498_s26 = smov 16  }
   0xc   : > { %s410_s10 = sshll.u32 %s5562_s7, 4  ;;  %s4499_s11 = smov 64   ;;  %s411_s10 = int_to_ptr.hbm [resolvable:$true] %s410_s10 }
   0xd   : > { %4163 = dma.hbm_to_vmem [thread:$0]  (!%p4607_p6), %s394_s30, 4096, %s396_s18, [#allocation8], %s4497_s25, %s4497_s25, %s4498_s26  }
   0xe   : > { %s4500_s17 = smov 4   ;;  %s4501_s19 = smov [#allocation9]  }
   0xf   : > { %4160 = dma.hbm_to_vmem [thread:$0]  (!%p4607_p6), %s374_s21, 8192, %s376_s24, [#allocation5], %s4499_s11, %s4499_s11, %s4500_s17  }
  0x10   : > { %s412_s20 = sshll.u32 %s4501_s19, 4  ;;  %449 = sbr.rel (%p4596_p4) target bundleno = 1685 (0x695), region = 68  ;;  %s413_s20 = int_to_ptr.vmem [resolvable:$true] %s412_s20 }
  0x11   : > { %4166 = dma.hbm_to_vmem [thread:$0]  (!%p4607_p6), %s411_s10, 4096, %s413_s20, [#allocation8], %s4497_s25, %s4497_s25, %s4498_s26  }
  0x15   : > { %4476 = dma.done.wait (%p4167_p3), [#allocation5], 8192  }
  0x16   : > { %4478 = vsyncadd (%p4167_p3), [#allocation5], 4294959104 }
  0x17   : > { %4480 = dma.done.wait (%p4167_p3), [#allocation8], 8192  }
  0x18   : > { %4482 = vsyncadd (%p4167_p3), [#allocation8], 4294959104  ;;  %s3231_s30 = sshll.u32 %s4590_s15, 2 }
  0x19   : > { %p507_p7 = scmp.lt.s32.totalorder %s3231_s30, 7  ;;  %522 = sbr.rel (%p3223_p2) target bundleno = 237 (0xed), region = 84 }
  0x1b   : > { %s5615_s30 = smov (!%p507_p7, %s3231_s30), 7 }
  0x1c   : > { %s3232_s18 = sshll.u32 %s5615_s30, 2 }
  0x1d   : > { %s4634_s22 = scalar_lea.vmem %s5555_s0, %s3232_s18  ;;  %s4639_s25 = scalar_lea.vmem %s5567_s12, %s3232_s18 }
  0x1e   : > { %v3972_v0 = vld [vmem:[#allocation4 + $0x38] sm:$0xff]  ;;  %v3971_v4 = vld [vmem:[#allocation4 + $0x30] sm:$0xff]  ;;  %v3970_v8 = vld [vmem:[#allocation4 + $0x28] sm:$0xff] }
  0x1f   : > { %v3980_v1 = vld [vmem:[#allocation4 + $0x78] sm:$0xff]  ;;  %1071 = vmatpush.bf16.msra.mxu0 %v3972_v0  ;;  %v3979_v5 = vld [vmem:[#allocation4 + $0x70] sm:$0xff]  ;;  %v3978_v9 = vld [vmem:[#allocation4 + $0x68] sm:$0xff] }
  0x20   : > { %v3988_v2 = vld [vmem:[#allocation4 + $0xb8] sm:$0xff]  ;;  %1084 = vmatpush.bf16.msra.mxu1 %v3980_v1  ;;  %v3987_v6 = vld [vmem:[#allocation4 + $0xb0] sm:$0xff]  ;;  %v3986_v10 = vld [vmem:[#allocation4 + $0xa8] sm:$0xff] }
  0x21   : > { %v3996_v3 = vld [vmem:[#allocation4 + $0xf8] sm:$0xff]  ;;  %1097 = vmatpush.bf16.msra.mxu2 %v3988_v2  ;;  %v3995_v7 = vld [vmem:[#allocation4 + $0xf0] sm:$0xff]  ;;  %v3994_v11 = vld [vmem:[#allocation4 + $0xe8] sm:$0xff] }
  0x22   : > { %1110 = vmatpush.bf16.msra.mxu3 %v3996_v3  ;;  %v3969_v12 = vld [vmem:[#allocation4 + $0x20] sm:$0xff]  ;;  %v3968_v16 = vld [vmem:[#allocation4 + $0x18] sm:$0xff]  ;;  %v3967_v20 = vld [vmem:[#allocation4 + $0x10] sm:$0xff] }
  0x23   : > { %1072 = vmatpush.bf16.msra.mxu0 %v3971_v4  ;;  %v3977_v13 = vld [vmem:[#allocation4 + $0x60] sm:$0xff]  ;;  %v3976_v17 = vld [vmem:[#allocation4 + $0x58] sm:$0xff]  ;;  %v3975_v21 = vld [vmem:[#allocation4 + $0x50] sm:$0xff] }
  0x24   : > { %1085 = vmatpush.bf16.msra.mxu1 %v3979_v5  ;;  %v3985_v14 = vld [vmem:[#allocation4 + $0xa0] sm:$0xff]  ;;  %v3984_v18 = vld [vmem:[#allocation4 + $0x98] sm:$0xff]  ;;  %v3983_v22 = vld [vmem:[#allocation4 + $0x90] sm:$0xff] }
  0x25   : > { %1098 = vmatpush.bf16.msra.mxu2 %v3987_v6  ;;  %v3993_v15 = vld [vmem:[#allocation4 + $0xe0] sm:$0xff]  ;;  %v3992_v19 = vld [vmem:[#allocation4 + $0xd8] sm:$0xff]  ;;  %v3991_v23 = vld [vmem:[#allocation4 + $0xd0] sm:$0xff] }
  0x26   : > { %1111 = vmatpush.bf16.msra.mxu3 %v3995_v7  ;;  %v3966_v24 = vld [vmem:[#allocation4 + $0x8] sm:$0xff]  ;;  %v524_v28 = vld [vmem:[%s5556_s1 + $0x8] sm:$0xff]  ;;  %v523_v29 = vld [vmem:[%s5556_s1] sm:$0xff] }
  0x27   : > { %1073 = vmatpush.bf16.msra.mxu0 %v3970_v8  ;;  %v3974_v25 = vld [vmem:[#allocation4 + $0x48] sm:$0xff]  ;;  %v3965_v30 = vld [vmem:[#allocation4] sm:$0xff]  ;;  %v665_v32 = vunpack.c.l.b16 %v524_v28  ;;  %v666_v33 = vunpack.c.h.b16 %v524_v28  ;;  %v663_v36 = vunpack.c.l.b16 %v523_v29  ;;  %v664_v37 = vunpack.c.h.b16 %v523_v29  ;;  %v4004_v38 = vld [vmem:[#allocation4 + $0x138] sm:$0xff] }
  0x28   : > { %1086 = vmatpush.bf16.msra.mxu1 %v3978_v9  ;;  %v3982_v26 = vld [vmem:[#allocation4 + $0x88] sm:$0xff]  ;;  %v3973_v31 = vld [vmem:[#allocation4 + $0x40] sm:$0xff]  ;;  %v4012_v39 = vld [vmem:[#allocation4 + $0x178] sm:$0xff] }
  0x29   : > { %1099 = vmatpush.bf16.msra.mxu2 %v3986_v10  ;;  %v3990_v27 = vld [vmem:[#allocation4 + $0xc8] sm:$0xff]  ;;  %v3981_v34 = vld [vmem:[#allocation4 + $0x80] sm:$0xff]  ;;  %v4020_v40 = vld [vmem:[#allocation4 + $0x1b8] sm:$0xff]  ;;  %v673_v42 = vpack.c.b16 %v665_v32, %v665_v32  ;;  %v674_v43 = vpack.c.b16 %v666_v33, %v666_v33  ;;  %v671_v44 = vpack.c.b16 %v663_v36, %v663_v36  ;;  %v672_v45 = vpack.c.b16 %v664_v37, %v664_v37 }
  0x2a   : > { %1112 = vmatpush.bf16.msra.mxu3 %v3994_v11  ;;  %v3989_v35 = vld [vmem:[#allocation4 + $0xc0] sm:$0xff]  ;;  %v4028_v41 = vld [vmem:[#allocation4 + $0x1f8] sm:$0xff]  ;;  %v4003_v46 = vld [vmem:[#allocation4 + $0x130] sm:$0xff] }
  0x2b   : > { %1074 = vmatpush.bf16.msra.mxu0 %v3969_v12  ;;  %v4011_v47 = vld [vmem:[#allocation4 + $0x170] sm:$0xff]  ;;  %v4002_v50 = vld [vmem:[#allocation4 + $0x128] sm:$0xff]  ;;  %v4001_v54 = vld [vmem:[#allocation4 + $0x120] sm:$0xff] }
  0x2c   : > { %1087 = vmatpush.bf16.msra.mxu1 %v3977_v13  ;;  %v4019_v48 = vld [vmem:[#allocation4 + $0x1b0] sm:$0xff]  ;;  %v4010_v51 = vld [vmem:[#allocation4 + $0x168] sm:$0xff]  ;;  %v4009_v55 = vld [vmem:[#allocation4 + $0x160] sm:$0xff] }
  0x2d   : > { %1100 = vmatpush.bf16.msra.mxu2 %v3985_v14  ;;  %v4027_v49 = vld [vmem:[#allocation4 + $0x1f0] sm:$0xff]  ;;  %v4018_v52 = vld [vmem:[#allocation4 + $0x1a8] sm:$0xff]  ;;  %v4017_v56 = vld [vmem:[#allocation4 + $0x1a0] sm:$0xff] }
  0x2e   : > { %1113 = vmatpush.bf16.msra.mxu3 %v3993_v15  ;;  %v4026_v53 = vld [vmem:[#allocation4 + $0x1e8] sm:$0xff]  ;;  %v4025_v57 = vld [vmem:[#allocation4 + $0x1e0] sm:$0xff]  ;;  %v4000_v58 = vld [vmem:[#allocation4 + $0x118] sm:$0xff] }
  0x2f   : > { %1075 = vmatpush.bf16.msra.mxu0 %v3968_v16  ;;  %v4008_v59 = vld [vmem:[#allocation4 + $0x158] sm:$0xff]  ;;  %v3999_v62 = vld [vmem:[#allocation4 + $0x110] sm:$0xff]  ;;  %v3998_v2 = vld [vmem:[#allocation4 + $0x108] sm:$0xff] }
  0x30   : > { %1088 = vmatpush.bf16.msra.mxu1 %v3976_v17  ;;  %v4016_v60 = vld [vmem:[#allocation4 + $0x198] sm:$0xff]  ;;  %v4007_v63 = vld [vmem:[#allocation4 + $0x150] sm:$0xff]  ;;  %v4006_v3 = vld [vmem:[#allocation4 + $0x148] sm:$0xff] }
  0x31   : > { %1101 = vmatpush.bf16.msra.mxu2 %v3984_v18  ;;  %v4024_v61 = vld [vmem:[#allocation4 + $0x1d8] sm:$0xff]  ;;  %v4015_v0 = vld [vmem:[#allocation4 + $0x190] sm:$0xff]  ;;  %v525_v4 = vld [vmem:[%s5556_s1 + $0x10] sm:$0xff] }
  0x32   : > { %1114 = vmatpush.bf16.msra.mxu3 %v3992_v19  ;;  %v4023_v1 = vld [vmem:[#allocation4 + $0x1d0] sm:$0xff]  ;;  %v4014_v5 = vld [vmem:[#allocation4 + $0x188] sm:$0xff]  ;;  %v667_v8 = vunpack.c.l.b16 %v525_v4  ;;  %v668_v9 = vunpack.c.h.b16 %v525_v4  ;;  %v3997_v10 = vld [vmem:[#allocation4 + $0x100] sm:$0xff] }
  0x33   : > { %1076 = vmatpush.bf16.msra.mxu0 %v3967_v20  ;;  %v4022_v6 = vld [vmem:[#allocation4 + $0x1c8] sm:$0xff]  ;;  %v4005_v11 = vld [vmem:[#allocation4 + $0x140] sm:$0xff] }
  0x34   : > { %1089 = vmatpush.bf16.msra.mxu1 %v3975_v21  ;;  %v526_v7 = vld [vmem:[%s5556_s1 + $0x18] sm:$0xff]  ;;  %v4013_v14 = vld [vmem:[#allocation4 + $0x180] sm:$0xff]  ;;  %v675_v16 = vpack.c.b16 %v667_v8, %v667_v8  ;;  %v676_v17 = vpack.c.b16 %v668_v9, %v668_v9 }
  0x35   : > { %1102 = vmatpush.bf16.msra.mxu2 %v3983_v22  ;;  %v669_v12 = vunpack.c.l.b16 %v526_v7  ;;  %v670_v13 = vunpack.c.h.b16 %v526_v7  ;;  %v4021_v15 = vld [vmem:[#allocation4 + $0x1c0] sm:$0xff] }
  0x36   : > { %1115 = vmatpush.bf16.msra.mxu3 %v3991_v23 }
  0x37   : > { %1077 = vmatpush.bf16.msra.mxu0 %v3966_v24  ;;  %v677_v18 = vpack.c.b16 %v669_v12, %v669_v12  ;;  %v678_v19 = vpack.c.b16 %v670_v13, %v670_v13 }
  0x38   : > { %1090 = vmatpush.bf16.msra.mxu1 %v3974_v25 }
  0x39   : > { %1103 = vmatpush.bf16.msra.mxu2 %v3982_v26  ;;  %v4196_v26 = vld [vmem:[%s5558_s3] ss:$0 sm:$0xff] }
  0x3a   : > { %1116 = vmatpush.bf16.msra.mxu3 %v3990_v27 }
  0x3b   : > { %1078 = vmatpush.bf16.msra.mxu0 %v3965_v30 }
  0x3c   : > { %1091 = vmatpush.bf16.msra.mxu1 %v3973_v31 }
  0x3d   : > { %1104 = vmatpush.bf16.msra.mxu2 %v3981_v34 }
  0x3e   : > { %1117 = vmatpush.bf16.msra.mxu3 %v3989_v35  ;;  %1079 = vmatmul.bf16.vlgmr.msra.gmra.mxu0 %v671_v44 }
  0x3f   : > { %1123 = vmatpush.bf16.msrb.mxu0 %v4004_v38  ;;  %1092 = vmatmul.bf16.vlgmr.msra.gmra.mxu1 %v672_v45 }
  0x40   : > { %1136 = vmatpush.bf16.msrb.mxu1 %v4012_v39  ;;  %1105 = vmatmul.bf16.vlgmr.msra.gmra.mxu2 %v673_v42 }
  0x41   : > { %1149 = vmatpush.bf16.msrb.mxu2 %v4020_v40  ;;  %1118 = vmatmul.bf16.vlgmr.msra.gmra.mxu3 %v674_v43 }
  0x42   : > { %1162 = vmatpush.bf16.msrb.mxu3 %v4028_v41 }
  0x43   : > { %1124 = vmatpush.bf16.msrb.mxu0 %v4003_v46 }
  0x44   : > { %1137 = vmatpush.bf16.msrb.mxu1 %v4011_v47 }
  0x45   : > { %1150 = vmatpush.bf16.msrb.mxu2 %v4019_v48 }
  0x46   : > { %1163 = vmatpush.bf16.msrb.mxu3 %v4027_v49 }
  0x47   : > { %1125 = vmatpush.bf16.msrb.mxu0 %v4002_v50 }
  0x48   : > { %1138 = vmatpush.bf16.msrb.mxu1 %v4010_v51 }
  0x49   : > { %1151 = vmatpush.bf16.msrb.mxu2 %v4018_v52 }
  0x4a   : > { %1164 = vmatpush.bf16.msrb.mxu3 %v4026_v53 }
  0x4b   : > { %1126 = vmatpush.bf16.msrb.mxu0 %v4001_v54 }
  0x4c   : > { %1139 = vmatpush.bf16.msrb.mxu1 %v4009_v55 }
  0x4d   : > { %1152 = vmatpush.bf16.msrb.mxu2 %v4017_v56 }
  0x4e   : > { %1165 = vmatpush.bf16.msrb.mxu3 %v4025_v57 }
  0x4f   : > { %1127 = vmatpush.bf16.msrb.mxu0 %v4000_v58 }
  0x50   : > { %1140 = vmatpush.bf16.msrb.mxu1 %v4008_v59 }
  0x51   : > { %1153 = vmatpush.bf16.msrb.mxu2 %v4016_v60 }
  0x52   : > { %1166 = vmatpush.bf16.msrb.mxu3 %v4024_v61 }
  0x53   : > { %1128 = vmatpush.bf16.msrb.mxu0 %v3999_v62 }
  0x54   : > { %1141 = vmatpush.bf16.msrb.mxu1 %v4007_v63 }
  0x55   : > { %1154 = vmatpush.bf16.msrb.mxu2 %v4015_v0 }
  0x56   : > { %1167 = vmatpush.bf16.msrb.mxu3 %v4023_v1 }
  0x57   : > { %1129 = vmatpush.bf16.msrb.mxu0 %v3998_v2 }
  0x58   : > { %1142 = vmatpush.bf16.msrb.mxu1 %v4006_v3 }
  0x59   : > { %1155 = vmatpush.bf16.msrb.mxu2 %v4014_v5 }
  0x5a   : > { %1168 = vmatpush.bf16.msrb.mxu3 %v4022_v6 }
  0x5b   : > { %1130 = vmatpush.bf16.msrb.mxu0 %v3997_v10 }
  0x5c   : > { %1143 = vmatpush.bf16.msrb.mxu1 %v4005_v11 }
  0x5d   : > { %1156 = vmatpush.bf16.msrb.mxu2 %v4013_v14 }
  0x5e   : > { %1169 = vmatpush.bf16.msrb.mxu3 %v4021_v15  ;;  %1131 = vmatmul.bf16.vlgmr.msrb.gmra.mxu0 %v675_v16 }
  0x5f   : > { %1144 = vmatmul.bf16.vlgmr.msrb.gmra.mxu1 %v676_v17 }
  0x60   : > { %1157 = vmatmul.bf16.vlgmr.msrb.gmra.mxu2 %v677_v18 }
  0x61   : > { %1170 = vmatmul.bf16.vlgmr.msrb.gmra.mxu3 %v678_v19 }
  0xbb   : > { %v1080_v20 = vpop.f32.mrf.mxu0 }
  0xbc   : > { %v1093_v21 = vpop.f32.mrf.mxu1  ;;  %v1081_v29 = vadd.f32 %v4196_v26, %v1080_v20 }
  0xbe   : > { %v1094_v30 = vadd.f32 %v1093_v21, %v1081_v29 }
  0xc3   : > { %v1106_v22 = vpop.f32.mrf.mxu2  ;;  %v1082_v24 = vpop.f32.mrf.mxu0 }
  0xc4   : > { %v1119_v23 = vpop.f32.mrf.mxu3  ;;  %v1095_v25 = vpop.f32.mrf.mxu1  ;;  %v1107_v31 = vadd.f32 %v1106_v22, %v1094_v30 }
  0xc6   : > { %v1120_v32 = vadd.f32 %v1119_v23, %v1107_v31 }
  0xcb   : > { %v1108_v27 = vpop.f32.mrf.mxu2 }
  0xcc   : > { %v1121_v28 = vpop.f32.mrf.mxu3 }
  0xdb   : > { %v1132_v33 = vpop.f32.mrf.mxu0 }
  0xdc   : > { %v1145_v34 = vpop.f32.mrf.mxu1  ;;  %v1133_v35 = vadd.f32 %v1132_v33, %v1120_v32 }
  0xde   : > { %v1146_v36 = vadd.f32 %v1145_v34, %v1133_v35 }
  0xe3   : > { %v1158_v37 = vpop.f32.mrf.mxu2  ;;  %v1134_v40 = vpop.f32.mrf.mxu0 }
  0xe4   : > { %v1171_v38 = vpop.f32.mrf.mxu3  ;;  %v1159_v39 = vadd.f32 %v1158_v37, %v1146_v36  ;;  %v1147_v41 = vpop.f32.mrf.mxu1 }
  0xe6   : > { %v1172_v42 = vadd.f32 %v1171_v38, %v1159_v39 }
  0xe8   : > { %1175 = vst [vmem:[#allocation10] sm:$0xff] %v1172_v42 }
  0xe9   : > { %1176 = vst [vmem:[#allocation11] sm:$0xff] %v1172_v42 }
  0xea   : > { %1178 = vst [vmem:[#allocation10 + $0x8] sm:$0xff] %v1172_v42 }
  0xeb   : > { %1180 = vst [vmem:[#allocation11 + $0x8] sm:$0xff] %v1172_v42  ;;  %v1160_v43 = vpop.f32.mrf.mxu2 }
  0xec   : > { %v1173_v44 = vpop.f32.mrf.mxu3 }
  0xed PF: > { %v3518_v45 = vld [vmem:[%s5559_s4 + $0x20] sm:$0xf]  ;;  %v4037_v46 = vld [vmem:[%s5559_s4 + $0x2c] sm:$0xf0]  ;;  %v4035_v47 = vld [vmem:[%s5559_s4 + $0x24] sm:$0xf] }
  0xee   : > { %v3519_v48 = vor.u32 %v4037_v46, %v3518_v45  ;;  %v3520_v49 = vld [vmem:[%s5559_s4 + $0x30] sm:$0xf0]  ;;  %v3526_v50 = vld [vmem:[%s5559_s4 + $0x28] sm:$0xf]  ;;  %v4038_v51 = vld [vmem:[%s5559_s4 + $0x34] sm:$0xf0] }
  0xef   : > { %v3523_v52 = vor.u32 %v4035_v47, %v3520_v49  ;;  %v3527_v53 = vor.u32 %v4038_v51, %v3526_v50  ;;  %v4036_v54 = vld [vmem:[%s5559_s4 + $0x2c] sm:$0xf]  ;;  %v3528_v55 = vld [vmem:[%s5559_s4 + $0x38] sm:$0xf0]  ;;  %v3502_v56 = vld [vmem:[%s5559_s4] sm:$0xf] }
  0xf0   : > { %1266 = vmatpush.bf16.msra.mxu0 %v3519_v48  ;;  %v3531_v57 = vor.u32 %v4036_v54, %v3528_v55  ;;  %v4033_v58 = vld [vmem:[%s5559_s4 + $0xc] sm:$0xf0]  ;;  %v4031_v59 = vld [vmem:[%s5559_s4 + $0x4] sm:$0xf]  ;;  %v3504_v60 = vld [vmem:[%s5559_s4 + $0x10] sm:$0xf0] }
  0xf1   : > { %1285 = vmatpush.bf16.msra.mxu1 %v3523_v52  ;;  %1304 = vmatpush.bf16.msra.mxu2 %v3527_v53  ;;  %v3503_v61 = vor.u32 %v4033_v58, %v3502_v56  ;;  %v3507_v62 = vor.u32 %v4031_v59, %v3504_v60  ;;  %v3510_v63 = vld [vmem:[%s5559_s4 + $0x8] sm:$0xf]  ;;  %v4034_v0 = vld [vmem:[%s5559_s4 + $0x14] sm:$0xf0]  ;;  %v4032_v1 = vld [vmem:[%s5559_s4 + $0xc] sm:$0xf] }
  0xf2   : > { %1323 = vmatpush.bf16.msra.mxu3 %v3531_v57  ;;  %v3511_v2 = vor.u32 %v4034_v0, %v3510_v63  ;;  %v3512_v3 = vld [vmem:[%s5559_s4 + $0x18] sm:$0xf0]  ;;  %v4029_v4 = vld [vmem:[%s4634_s22] sm:$0xff]  ;;  %vm1253_vm0 = vcmask 261120   ;;  %v3654_v5 = vld [vmem:[#allocation7 + $0xe0] sm:$0xf] }
  0xf3   : > { %v3515_v6 = vor.u32 %v4032_v1, %v3512_v3  ;;  %v4069_v7 = vld [vmem:[#allocation7 + $0xec] sm:$0xf0]  ;;  %v4067_v8 = vld [vmem:[#allocation7 + $0xe4] sm:$0xf]  ;;  %v3656_v9 = vld [vmem:[#allocation7 + $0xf0] sm:$0xf0] }
  0xf4   : > { %1267 = vmatpush.bf16.msra.mxu0 %v3503_v61  ;;  %v4707_v10 = vor.u32 %v4069_v7, %v3654_v5  ;;  %v4709_v11 = vor.u32 %v4067_v8, %v3656_v9  ;;  %v3662_v12 = vld [vmem:[#allocation7 + $0xe8] sm:$0xf]  ;;  %v4070_v13 = vld [vmem:[#allocation7 + $0xf4] sm:$0xf0]  ;;  %v4068_v14 = vld [vmem:[#allocation7 + $0xec] sm:$0xf] }
  0xf5   : > { %1286 = vmatpush.bf16.msra.mxu1 %v3507_v62  ;;  %1305 = vmatpush.bf16.msra.mxu2 %v3511_v2  ;;  %v4711_v15 = vor.u32 %v4070_v13, %v3662_v12  ;;  %v3664_v16 = vld [vmem:[#allocation7 + $0xf8] sm:$0xf0]  ;;  %v3638_v17 = vld [vmem:[#allocation7 + $0xc0] sm:$0xf]  ;;  %v4065_v18 = vld [vmem:[#allocation7 + $0xcc] sm:$0xf0] }
  0xf6   : > { %1324 = vmatpush.bf16.msra.mxu3 %v3515_v6  ;;  %v4714_v19 = vor.u32 %v4068_v14, %v3664_v16  ;;  %v4716_v20 = vor.u32 %v4065_v18, %v3638_v17  ;;  %v4063_v21 = vld [vmem:[#allocation7 + $0xc4] sm:$0xf]  ;;  %v3640_v22 = vld [vmem:[#allocation7 + $0xd0] sm:$0xf0]  ;;  %v3646_v23 = vld [vmem:[#allocation7 + $0xc8] sm:$0xf] }
  0xf7   : > { %3532 = vmatmul.msk.bf16.vlgmr.msra.gmra.mxu0 %vm1253_vm0, %v4029_v4  ;;  %v4720_v24 = vor.u32 %v4063_v21, %v3640_v22  ;;  %v4066_v25 = vld [vmem:[#allocation7 + $0xd4] sm:$0xf0]  ;;  %v4064_v26 = vld [vmem:[#allocation7 + $0xcc] sm:$0xf]  ;;  %v3648_v27 = vld [vmem:[#allocation7 + $0xd8] sm:$0xf0] }
  0xf8   : > { %1554 = vmatpush.bf16.msrb.mxu0 %v4707_v10  ;;  %3534 = vmatmul.msk.bf16.vlgmr.msra.gmra.mxu1 %vm1253_vm0, %v4029_v4  ;;  %v3622_v28 = vld [vmem:[#allocation7 + $0xa0] sm:$0xf]  ;;  %v4061_v29 = vld [vmem:[#allocation7 + $0xac] sm:$0xf0]  ;;  %v4059_v30 = vld [vmem:[#allocation7 + $0xa4] sm:$0xf]  ;;  %v4726_v31 = vor.u32 %v4066_v25, %v3646_v23  ;;  %v4730_v33 = vor.u32 %v4064_v26, %v3648_v27 }
  0xf9   : > { %1567 = vmatpush.bf16.msrb.mxu1 %v4709_v11  ;;  %3536 = vmatmul.msk.bf16.vlgmr.msra.gmra.mxu2 %vm1253_vm0, %v4029_v4  ;;  %v3624_v32 = vld [vmem:[#allocation7 + $0xb0] sm:$0xf0]  ;;  %v4732_v34 = vor.u32 %v4061_v29, %v3622_v28  ;;  %v3630_v35 = vld [vmem:[#allocation7 + $0xa8] sm:$0xf]  ;;  %v4062_v36 = vld [vmem:[#allocation7 + $0xb4] sm:$0xf0] }
  0xfa   : > { %3538 = vmatmul.msk.bf16.vlgmr.msra.gmra.mxu3 %vm1253_vm0, %v4029_v4  ;;  %1580 = vmatpush.bf16.msrb.mxu2 %v4711_v15  ;;  %v4060_v37 = vld [vmem:[#allocation7 + $0xac] sm:$0xf]  ;;  %v4735_v38 = vor.u32 %v4059_v30, %v3624_v32  ;;  %v3632_v39 = vld [vmem:[#allocation7 + $0xb8] sm:$0xf0]  ;;  %v3606_v40 = vld [vmem:[#allocation7 + $0x80] sm:$0xf]  ;;  %v4738_v44 = vor.u32 %v4062_v36, %v3630_v35 }
  0xfb   : > { %1593 = vmatpush.bf16.msrb.mxu3 %v4714_v19  ;;  %v4057_v41 = vld [vmem:[#allocation7 + $0x8c] sm:$0xf0]  ;;  %v4055_v42 = vld [vmem:[#allocation7 + $0x84] sm:$0xf]  ;;  %v3608_v43 = vld [vmem:[#allocation7 + $0x90] sm:$0xf0]  ;;  %v4742_v45 = vor.u32 %v4060_v37, %v3632_v39 }
  0xfc   : > { %1555 = vmatpush.bf16.msrb.mxu0 %v4716_v20  ;;  %v4744_v46 = vor.u32 %v4057_v41, %v3606_v40  ;;  %v3614_v47 = vld [vmem:[#allocation7 + $0x88] sm:$0xf]  ;;  %v4058_v48 = vld [vmem:[#allocation7 + $0x94] sm:$0xf0]  ;;  %v4056_v49 = vld [vmem:[#allocation7 + $0x8c] sm:$0xf]  ;;  %v4747_v50 = vor.u32 %v4055_v42, %v3608_v43 }
  0xfd   : > { %1568 = vmatpush.bf16.msrb.mxu1 %v4720_v24  ;;  %v3616_v51 = vld [vmem:[#allocation7 + $0x98] sm:$0xf0]  ;;  %v3590_v52 = vld [vmem:[#allocation7 + $0x60] sm:$0xf]  ;;  %v4053_v53 = vld [vmem:[#allocation7 + $0x6c] sm:$0xf0]  ;;  %v4750_v56 = vor.u32 %v4058_v48, %v3614_v47 }
  0xfe   : > { %1581 = vmatpush.bf16.msrb.mxu2 %v4726_v31  ;;  %v4051_v54 = vld [vmem:[#allocation7 + $0x64] sm:$0xf]  ;;  %v3592_v55 = vld [vmem:[#allocation7 + $0x70] sm:$0xf0]  ;;  %v4030_v57 = vld [vmem:[%s4634_s22 + $0x8] sm:$0xff]  ;;  %v4755_v58 = vor.u32 %v4056_v49, %v3616_v51  ;;  %v4757_v59 = vor.u32 %v4053_v53, %v3590_v52  ;;  %s4502_s16 = smov [#allocation11]  }
  0xff   : > { %1594 = vmatpush.bf16.msrb.mxu3 %v4730_v33  ;;  %v3598_v60 = vld [vmem:[#allocation7 + $0x68] sm:$0xf]  ;;  %v4054_v61 = vld [vmem:[#allocation7 + $0x74] sm:$0xf0]  ;;  %v4052_v62 = vld [vmem:[#allocation7 + $0x6c] sm:$0xf]  ;;  %v4760_v63 = vor.u32 %v4051_v54, %v3592_v55 }
 0x100   : > { %1556 = vmatpush.bf16.msrb.mxu0 %v4732_v34  ;;  %v3600_v0 = vld [vmem:[#allocation7 + $0x78] sm:$0xf0]  ;;  %v3574_v1 = vld [vmem:[#allocation7 + $0x40] sm:$0xf]  ;;  %v4049_v2 = vld [vmem:[#allocation7 + $0x4c] sm:$0xf0]  ;;  %v4763_v5 = vor.u32 %v4054_v61, %v3598_v60 }
 0x101   : > { %1569 = vmatpush.bf16.msrb.mxu1 %v4735_v38  ;;  %v4047_v3 = vld [vmem:[#allocation7 + $0x44] sm:$0xf]  ;;  %v3576_v4 = vld [vmem:[#allocation7 + $0x50] sm:$0xf0]  ;;  %v4767_v6 = vor.u32 %v4052_v62, %v3600_v0  ;;  %v4769_v7 = vor.u32 %v4049_v2, %v3574_v1  ;;  %v3582_v8 = vld [vmem:[#allocation7 + $0x48] sm:$0xf] }
 0x102   : > { %1582 = vmatpush.bf16.msrb.mxu2 %v4738_v44  ;;  %v4050_v9 = vld [vmem:[#allocation7 + $0x54] sm:$0xf0]  ;;  %v4048_v12 = vld [vmem:[#allocation7 + $0x4c] sm:$0xf]  ;;  %v4773_v13 = vor.u32 %v4047_v3, %v3576_v4  ;;  %v3584_v14 = vld [vmem:[#allocation7 + $0x58] sm:$0xf0] }
 0x103   : > { %1595 = vmatpush.bf16.msrb.mxu3 %v4742_v45  ;;  %v3558_v16 = vld [vmem:[#allocation7 + $0x20] sm:$0xf]  ;;  %v4045_v17 = vld [vmem:[#allocation7 + $0x2c] sm:$0xf0]  ;;  %v4043_v18 = vld [vmem:[#allocation7 + $0x24] sm:$0xf]  ;;  %v4779_v22 = vor.u32 %v4050_v9, %v3582_v8  ;;  %v4783_v23 = vor.u32 %v4048_v12, %v3584_v14 }
 0x104   : > { %1557 = vmatpush.bf16.msrb.mxu0 %v4744_v46  ;;  %v3560_v21 = vld [vmem:[#allocation7 + $0x30] sm:$0xf0]  ;;  %v4785_v25 = vor.u32 %v4045_v17, %v3558_v16  ;;  %v3566_v26 = vld [vmem:[#allocation7 + $0x28] sm:$0xf]  ;;  %v4046_v27 = vld [vmem:[#allocation7 + $0x34] sm:$0xf0] }
 0x105   : > { %1570 = vmatpush.bf16.msrb.mxu1 %v4747_v50  ;;  %v4044_v28 = vld [vmem:[#allocation7 + $0x2c] sm:$0xf]  ;;  %v4788_v29 = vor.u32 %v4043_v18, %v3560_v21  ;;  %v3568_v30 = vld [vmem:[#allocation7 + $0x38] sm:$0xf0]  ;;  %v3542_v32 = vld [vmem:[#allocation7] sm:$0xf]  ;;  %v4791_v39 = vor.u32 %v4046_v27, %v3566_v26 }
 0x106   : > { %1583 = vmatpush.bf16.msrb.mxu2 %v4750_v56  ;;  %v4041_v35 = vld [vmem:[#allocation7 + $0xc] sm:$0xf0]  ;;  %v4039_v36 = vld [vmem:[#allocation7 + $0x4] sm:$0xf]  ;;  %v3544_v37 = vld [vmem:[#allocation7 + $0x10] sm:$0xf0]  ;;  %v4795_v40 = vor.u32 %v4044_v28, %v3568_v30 }
 0x107   : > { %1596 = vmatpush.bf16.msrb.mxu3 %v4755_v58  ;;  %3533 = vmatmul.msk.bf16.gmra.mxu0 %vm1253_vm0, %v4030_v57  ;;  %v4797_v41 = vor.u32 %v4041_v35, %v3542_v32  ;;  %v3550_v42 = vld [vmem:[#allocation7 + $0x8] sm:$0xf]  ;;  %v4042_v43 = vld [vmem:[#allocation7 + $0x14] sm:$0xf0]  ;;  %v4800_v47 = vor.u32 %v4039_v36, %v3544_v37  ;;  %v4040_v48 = vld [vmem:[#allocation7 + $0xc] sm:$0xf] }
 0x108   : > { %1558 = vmatpush.bf16.msrb.mxu0 %v4757_v59  ;;  %3535 = vmatmul.msk.bf16.gmra.mxu1 %vm1253_vm0, %v4030_v57  ;;  %v3552_v49 = vld [vmem:[#allocation7 + $0x18] sm:$0xf0]  ;;  %v1384_v51 = vld [vmem:[#allocation10] sm:$0xff]  ;;  %v4803_v52 = vor.u32 %v4042_v43, %v3550_v42  ;;  %v1193_v60 = vld [vmem:[%s5561_s6] sm:$0xf]  ;;  %s3104_s23 = sshll.u32 %s4502_s16, 4  ;;  %s3105_s23 = int_to_ptr.vmem [resolvable:$true] %s3104_s23 }
 0x109   : > { %1571 = vmatpush.bf16.msrb.mxu1 %v4760_v63  ;;  %3537 = vmatmul.msk.bf16.gmra.mxu2 %vm1253_vm0, %v4030_v57  ;;  %v4807_v53 = vor.u32 %v4040_v48, %v3552_v49  ;;  %v1393_v54 = vpack.c.bf16 %v1384_v51, %v1384_v51  ;;  %v1195_v61 = vperm.slane %v1193_v60, 0  ;;  %v1196_v0 = vperm.slane %v1193_v60, 1  ;;  %s3106_s26 = sshll.u32 %s5569_s14, 4  ;;  %p4173_p8 = scmp.eq.s32.totalorder %s4590_s15, 1  ;;  %s3107_s26 = int_to_ptr.hbm [resolvable:$true] %s3106_s26 }
 0x10a   : > { %3539 = vmatmul.msk.bf16.gmra.mxu3 %vm1253_vm0, %v4030_v57  ;;  %1584 = vmatpush.bf16.msrb.mxu2 %v4763_v5  ;;  %v1197_v9 = vperm.slane %v1193_v60, 2  ;;  %v1198_v12 = vperm.slane %v1193_v60, 3  ;;  %s4503_s27 = smov 128   ;;  %s4504_s28 = smov 8  }
 0x10b   : > { %1597 = vmatpush.bf16.msrb.mxu3 %v4767_v6  ;;  %s4505_s10 = smov [#allocation10]   ;;  %s3092_s20 = sshll.u32 %s5568_s13, 4  ;;  %s3093_s20 = int_to_ptr.hbm [resolvable:$true] %s3092_s20 }
 0x10c   : > { %1559 = vmatpush.bf16.msrb.mxu0 %v4769_v7  ;;  %s3090_s11 = sshll.u32 %s4505_s10, 4  ;;  %s3091_s11 = int_to_ptr.vmem [resolvable:$true] %s3090_s11 }
 0x10d   : > { %1572 = vmatpush.bf16.msrb.mxu1 %v4773_v13 }
 0x10e   : > { %1585 = vmatpush.bf16.msrb.mxu2 %v4779_v22 }
 0x10f   : > { %1598 = vmatpush.bf16.msrb.mxu3 %v4783_v23 }
 0x110   : > { %1560 = vmatpush.bf16.msrb.mxu0 %v4785_v25 }
 0x111   : > { %1573 = vmatpush.bf16.msrb.mxu1 %v4788_v29 }
 0x112   : > { %1586 = vmatpush.bf16.msrb.mxu2 %v4791_v39 }
 0x113   : > { %1599 = vmatpush.bf16.msrb.mxu3 %v4795_v40 }
 0x114   : > { %1561 = vmatpush.bf16.msrb.mxu0 %v4797_v41 }
 0x115   : > { %1574 = vmatpush.bf16.msrb.mxu1 %v4800_v47 }
 0x116   : > { %1587 = vmatpush.bf16.msrb.mxu2 %v4803_v52 }
 0x117   : > { %1600 = vmatpush.bf16.msrb.mxu3 %v4807_v53  ;;  %1562 = vmatmul.bf16.vlgmr.msrb.gmra.mxu0 %v1393_v54 }
 0x118   : > { %1682 = vmatpush.bf16.msra.mxu0 %v4707_v10  ;;  %1575 = vmatmul.bf16.vlgmr.msrb.gmra.mxu1 %v1393_v54 }
 0x119   : > { %1695 = vmatpush.bf16.msra.mxu1 %v4709_v11  ;;  %1588 = vmatmul.bf16.vlgmr.msrb.gmra.mxu2 %v1393_v54 }
 0x11a   : > { %1708 = vmatpush.bf16.msra.mxu2 %v4711_v15  ;;  %1601 = vmatmul.bf16.vlgmr.msrb.gmra.mxu3 %v1393_v54 }
 0x11b   : > { %1721 = vmatpush.bf16.msra.mxu3 %v4714_v19 }
 0x11c   : > { %1683 = vmatpush.bf16.msra.mxu0 %v4716_v20 }
 0x11d   : > { %1696 = vmatpush.bf16.msra.mxu1 %v4720_v24 }
 0x11e   : > { %1709 = vmatpush.bf16.msra.mxu2 %v4726_v31 }
 0x11f   : > { %1722 = vmatpush.bf16.msra.mxu3 %v4730_v33 }
 0x120   : > { %1684 = vmatpush.bf16.msra.mxu0 %v4732_v34 }
 0x121   : > { %1697 = vmatpush.bf16.msra.mxu1 %v4735_v38 }
 0x122   : > { %1710 = vmatpush.bf16.msra.mxu2 %v4738_v44 }
 0x123   : > { %1723 = vmatpush.bf16.msra.mxu3 %v4742_v45 }
 0x124   : > { %1685 = vmatpush.bf16.msra.mxu0 %v4744_v46 }
 0x125   : > { %1698 = vmatpush.bf16.msra.mxu1 %v4747_v50 }
 0x126   : > { %1711 = vmatpush.bf16.msra.mxu2 %v4750_v56 }
 0x127   : > { %1724 = vmatpush.bf16.msra.mxu3 %v4755_v58 }
 0x128   : > { %1686 = vmatpush.bf16.msra.mxu0 %v4757_v59 }
 0x129   : > { %1699 = vmatpush.bf16.msra.mxu1 %v4760_v63 }
 0x12a   : > { %1712 = vmatpush.bf16.msra.mxu2 %v4763_v5 }
 0x12b   : > { %1725 = vmatpush.bf16.msra.mxu3 %v4767_v6 }
 0x12c   : > { %1687 = vmatpush.bf16.msra.mxu0 %v4769_v7 }
 0x12d   : > { %1700 = vmatpush.bf16.msra.mxu1 %v4773_v13 }
 0x12e   : > { %1713 = vmatpush.bf16.msra.mxu2 %v4779_v22 }
 0x12f   : > { %1726 = vmatpush.bf16.msra.mxu3 %v4783_v23 }
 0x130   : > { %1688 = vmatpush.bf16.msra.mxu0 %v4785_v25 }
 0x131   : > { %1701 = vmatpush.bf16.msra.mxu1 %v4788_v29 }
 0x132   : > { %1714 = vmatpush.bf16.msra.mxu2 %v4791_v39 }
 0x133   : > { %1727 = vmatpush.bf16.msra.mxu3 %v4795_v40 }
 0x134   : > { %1689 = vmatpush.bf16.msra.mxu0 %v4797_v41 }
 0x135   : > { %1702 = vmatpush.bf16.msra.mxu1 %v4800_v47 }
 0x136   : > { %1715 = vmatpush.bf16.msra.mxu2 %v4803_v52 }
 0x137   : > { %1728 = vmatpush.bf16.msra.mxu3 %v4807_v53 }
 0x138   : > { %1811 = vmatpush.bf16.msrb.mxu0 %v4707_v10 }
 0x139   : > { %1824 = vmatpush.bf16.msrb.mxu1 %v4709_v11 }
 0x13a   : > { %1837 = vmatpush.bf16.msrb.mxu2 %v4711_v15 }
 0x13b   : > { %1850 = vmatpush.bf16.msrb.mxu3 %v4714_v19 }
 0x13c   : > { %1812 = vmatpush.bf16.msrb.mxu0 %v4716_v20 }
 0x13d   : > { %1825 = vmatpush.bf16.msrb.mxu1 %v4720_v24 }
 0x13e   : > { %1838 = vmatpush.bf16.msrb.mxu2 %v4726_v31 }
 0x13f   : > { %1851 = vmatpush.bf16.msrb.mxu3 %v4730_v33 }
 0x140   : > { %1813 = vmatpush.bf16.msrb.mxu0 %v4732_v34 }
 0x141   : > { %1826 = vmatpush.bf16.msrb.mxu1 %v4735_v38 }
 0x142   : > { %1839 = vmatpush.bf16.msrb.mxu2 %v4738_v44 }
 0x143   : > { %1852 = vmatpush.bf16.msrb.mxu3 %v4742_v45 }
 0x144   : > { %1814 = vmatpush.bf16.msrb.mxu0 %v4744_v46 }
 0x145   : > { %1827 = vmatpush.bf16.msrb.mxu1 %v4747_v50 }
 0x146   : > { %1840 = vmatpush.bf16.msrb.mxu2 %v4750_v56 }
 0x147   : > { %1853 = vmatpush.bf16.msrb.mxu3 %v4755_v58 }
 0x148   : > { %1815 = vmatpush.bf16.msrb.mxu0 %v4757_v59 }
 0x149   : > { %1828 = vmatpush.bf16.msrb.mxu1 %v4760_v63 }
 0x14a   : > { %1841 = vmatpush.bf16.msrb.mxu2 %v4763_v5 }
 0x14b   : > { %1854 = vmatpush.bf16.msrb.mxu3 %v4767_v6 }
 0x14c   : > { %1816 = vmatpush.bf16.msrb.mxu0 %v4769_v7 }
 0x14d   : > { %1829 = vmatpush.bf16.msrb.mxu1 %v4773_v13 }
 0x14e   : > { %1842 = vmatpush.bf16.msrb.mxu2 %v4779_v22 }
 0x14f   : > { %1855 = vmatpush.bf16.msrb.mxu3 %v4783_v23 }
 0x150   : > { %1817 = vmatpush.bf16.msrb.mxu0 %v4785_v25 }
 0x151   : > { %1830 = vmatpush.bf16.msrb.mxu1 %v4788_v29 }
 0x152   : > { %1843 = vmatpush.bf16.msrb.mxu2 %v4791_v39 }
 0x153   : > { %1856 = vmatpush.bf16.msrb.mxu3 %v4795_v40 }
 0x154   : > { %1818 = vmatpush.bf16.msrb.mxu0 %v4797_v41 }
 0x155   : > { %1831 = vmatpush.bf16.msrb.mxu1 %v4800_v47 }
 0x156   : > { %1844 = vmatpush.bf16.msrb.mxu2 %v4803_v52 }
 0x157   : > { %1857 = vmatpush.bf16.msrb.mxu3 %v4807_v53 }
 0x174   : > { %v1269_v55 = vpop.f32.mrf.mxu0 }
 0x175   : > { %v1288_v57 = vpop.f32.mrf.mxu1  ;;  %v1270_v49 = vadd.f32 %v1269_v55, %v1195_v61 }
 0x176   : > { %v1289_v54 = vadd.f32 %v1288_v57, %v1196_v0 }
 0x17c   : > { %v1307_v62 = vpop.f32.mrf.mxu2  ;;  %v1271_v2 = vpop.f32.mrf.mxu0 }
 0x17d   : > { %v1326_v1 = vpop.f32.mrf.mxu3  ;;  %v4879_v3 = vadd.f32 %v1271_v2, %v1195_v61  ;;  %v1290_v4 = vpop.f32.mrf.mxu1 }
 0x17e   : > { %v4881_v8 = vadd.f32 %v1290_v4, %v1196_v0 }
 0x184   : > { %v1309_v14 = vpop.f32.mrf.mxu2  ;;  %v1274_v18 = vpop.f32.mrf.mxu0 }
 0x185   : > { %v4883_v16 = vadd.f32 %v1309_v14, %v1197_v9  ;;  %v1328_v17 = vpop.f32.mrf.mxu3  ;;  %v4887_v26 = vadd.f32 %v1274_v18, %v1195_v61  ;;  %v1293_v27 = vpop.f32.mrf.mxu1 }
 0x186   : > { %v4885_v21 = vadd.f32 %v1328_v17, %v1198_v12  ;;  %v4889_v28 = vadd.f32 %v1293_v27, %v1196_v0 }
 0x18c   : > { %v1312_v30 = vpop.f32.mrf.mxu2  ;;  %v1276_v36 = vpop.f32.mrf.mxu0 }
 0x18d   : > { %v4891_v32 = vadd.f32 %v1312_v30, %v1197_v9  ;;  %v1331_v35 = vpop.f32.mrf.mxu3  ;;  %v4895_v42 = vadd.f32 %v1276_v36, %v1195_v61  ;;  %v1295_v43 = vpop.f32.mrf.mxu1  ;;  %v1327_v36 = vadd.f32 %v1326_v1, %v1198_v12 }
 0x18e   : > { %v4893_v37 = vadd.f32 %v1331_v35, %v1198_v12  ;;  %v4897_v48 = vadd.f32 %v1295_v43, %v1196_v0 }
 0x18f   : > { %5574 = vst [vmem:[#allocation17_spill] sm:$0xff] %v4891_v32 }
 0x190   : > { %5575 = vst [vmem:[#allocation18_spill] sm:$0xff] %v4893_v37 }
 0x191   : > { %5576 = vst [vmem:[#allocation19_spill] sm:$0xff] %v4895_v42 }
 0x192   : > { %5577 = vst [vmem:[#allocation20_spill] sm:$0xff] %v4897_v48 }
 0x194   : > { %v1314_v51 = vpop.f32.mrf.mxu2  ;;  %v1563_v4 = vpop.f32.mrf.mxu0 }
 0x195   : > { %v4899_v60 = vadd.f32 %v1314_v51, %v1197_v9  ;;  %v1333_v2 = vpop.f32.mrf.mxu3  ;;  %v1606_v17 = vadd.f32 %v1563_v4, %v1270_v49  ;;  %v1576_v18 = vpop.f32.mrf.mxu1 }
 0x196   : > { %v4901_v14 = vadd.f32 %v1333_v2, %v1198_v12  ;;  %v1607_v27 = vadd.f32 %v1576_v18, %v1289_v54  ;;  %v1308_v2 = vadd.f32 %v1307_v62, %v1197_v9 }
 0x197   : > { %5578 = vst [vmem:[#allocation21_spill] sm:$0xff] %v4899_v60  ;;  %v3668_v30 = vmul.f32 -1.442695, %v1606_v17 }
 0x198   : > { %5579 = vst [vmem:[#allocation22_spill] sm:$0xff] %v4901_v14  ;;  %v3669_v35 = vmul.f32 -1.442695, %v1607_v27 }
 0x199   : > { %4197 = vpow2.f32 %v3668_v30 }
 0x19a   : > { %4199 = vpow2.f32 %v3669_v35 }
 0x19c   : > { %v1589_v42 = vpop.f32.mrf.mxu2  ;;  %v1565_v48 = vpop.f32.mrf.mxu0 }
 0x19d   : > { %v1602_v43 = vpop.f32.mrf.mxu3  ;;  %v1578_v61 = vpop.f32.mrf.mxu1  ;;  %v1608_v18 = vadd.f32 %v1589_v42, %v1308_v2 }
 0x19e   : > { %v1609_v55 = vadd.f32 %v1602_v43, %v1327_v36 }
 0x19f   : > { %v4198_v57 = vpop.eup %4197 }
 0x1a0   : > { %v3670_v0 = vmul.f32 -1.442695, %v1609_v55  ;;  %v4200_v51 = vpop.eup %4199  ;;  %v1613_v60 = vadd.f32 1.0, %v4198_v57 }
 0x1a1   : > { %v1632_v32 = vadd.f32 1.0, %v4200_v51 }
 0x1a2   : > { %4201 = vpow2.f32 %v3670_v0  ;;  %v1625_v36 = vand.u32 2147483648, %v1613_v60  ;;  %v1623_v61 = vand.u32 2147483647, %v1613_v60  ;;  %vm1619_vm3 = vweird.f32 %v1613_v60 }
 0x1a3   : > { %4203 = vrcp.f32 %v1613_v60  ;;  %v1644_v43 = vand.u32 2147483648, %v1632_v32  ;;  %v1642_v0 = vand.u32 2147483647, %v1632_v32  ;;  %vm1638_vm4 = vweird.f32 %v1632_v32 }
 0x1a4   : > { %4205 = vrcp.f32 %v1632_v32  ;;  %v1591_v49 = vpop.f32.mrf.mxu2  ;;  %v1626_v42 = vor.u32 1.1754944e-38, %v1625_v36  ;;  %vm1624_vm7 = vcmp.eq.f32.partialorder %v1623_v61, 8.507059e+37 }
 0x1a5   : > { %v1604_v54 = vpop.f32.mrf.mxu3  ;;  %v1645_v49 = vor.u32 1.1754944e-38, %v1644_v43  ;;  %vm1643_vm8 = vcmp.eq.f32.partialorder %v1642_v0, 8.507059e+37 }
 0x1a6   : > { %v1385_v54 = vld [vmem:[#allocation11] sm:$0xff] }
 0x1a8   : > { %v4202_v4 = vpop.eup %4201 }
 0x1a9   : > { %v4204_v17 = vpop.eup %4203  ;;  %v1652_v1 = vadd.f32 1.0, %v4202_v4 }
 0x1aa   : > { %v4206_v12 = vpop.eup %4205  ;;  %v1615_v27 = vmul.f32 %v4204_v17, %v1613_v60  ;;  %vm1620_vm1 = vweird.f32 %v4204_v17 }
 0x1ab   : > { %v1634_v48 = vmul.f32 %v4206_v12, %v1632_v32  ;;  %4207 = vrcp.f32 %v1652_v1  ;;  %vm1639_vm2 = vweird.f32 %v4206_v12  ;;  %vm1621_vm5 = vmor %vm1619_vm3, %vm1620_vm1  ;;  %v1664_v36 = vand.u32 2147483648, %v1652_v1 }
 0x1ac   : > { %v1616_v30 = vsub.f32 1.0, %v1615_v27  ;;  %4209 = vtanh.f32 %v1608_v18  ;;  %vm1640_vm6 = vmor %vm1638_vm4, %vm1639_vm2  ;;  %vm1658_vm10 = vweird.f32 %v1652_v1 }
 0x1ad   : > { %v1635_v35 = vsub.f32 1.0, %v1634_v48  ;;  %v1665_v61 = vor.u32 1.1754944e-38, %v1664_v36 }
 0x1ae   : > { %v1617_v55 = vmul.f32 %v4204_v17, %v1616_v30 }
 0x1af   : > { %v1636_v57 = vmul.f32 %v4206_v12, %v1635_v35 }
 0x1b0   : > { %v1618_v62 = vadd.f32 %v4204_v17, %v1617_v55 }
 0x1b1   : > { %v4208_v9 = vpop.eup %4207  ;;  %v1637_v51 = vadd.f32 %v4206_v12, %v1636_v57 }
 0x1b2   : > { %v1622_v2 = vsel %vm1621_vm5, %v4204_v17, %v1618_v62  ;;  %v1654_v4 = vmul.f32 %v4208_v9, %v1652_v1  ;;  %v4210_v18 = vpop.eup %4209  ;;  %vm1659_vm9 = vweird.f32 %v4208_v9  ;;  %v1662_v17 = vand.u32 2147483647, %v1652_v1 }
 0x1b3   : > { %v1627_v27 = vsel %vm1624_vm7, %v1626_v42, %v1622_v2  ;;  %v1641_v48 = vsel %vm1640_vm6, %v4206_v12, %v1637_v51  ;;  %vm1660_vm11 = vmor %vm1658_vm10, %vm1659_vm9 }
 0x1b4   : > { %v1646_v30 = vsel %vm1643_vm8, %v1645_v49, %v1641_v48  ;;  %v1669_v35 = vmul.f32 %v4210_v18, %v1627_v27  ;;  %v1655_v14 = vsub.f32 1.0, %v1654_v4  ;;  %vm1663_vm12 = vcmp.eq.f32.partialorder %v1662_v17, 8.507059e+37 }
 0x1b5   : > { %v1668_v55 = vmul.f32 %v1646_v30, %v1385_v54 }
 0x1b6   : > { %v1656_v60 = vmul.f32 %v4208_v9, %v1655_v14 }
 0x1b7   : > { %v4903_v37 = vadd.f32 %v1669_v35, %v1668_v55 }
 0x1b8   : > { %v1657_v32 = vadd.f32 %v4208_v9, %v1656_v60 }
 0x1b9   : > { %4211 = vtanh.f32 %v4903_v37 }
 0x1ba   : > { %v1661_v43 = vsel %vm1660_vm11, %v4208_v9, %v1657_v32 }
 0x1bb   : > { %v1666_v57 = vsel %vm1663_vm12, %v1665_v61, %v1661_v43 }
 0x1bf   : > { %v4212_v12 = vpop.eup %4211 }
 0x1c0   : > { %v1672_v0 = vmul.f32 %v4212_v12, %v1666_v57  ;;  %v4103_v57 = vld [vmem:[#allocation9 + $0xec] sm:$0xf0] }
 0x1c2   : > { %v1673_v62 = vpack.c.bf16 %v1672_v0, %v1672_v0  ;;  %v4101_v0 = vld [vmem:[#allocation9 + $0xe4] sm:$0xf] }
 0x1c4   : > { %1674 = vst [vmem:[#allocation3] sm:$0xf] %v1673_v62  ;;  %1690 = vmatmul.bf16.vlgmr.msra.gmra.mxu0 %v1673_v62  ;;  %1703 = vmatmul.bf16.vlgmr.msra.gmra.mxu1 %v1673_v62 }
 0x1c5   : > { %1716 = vmatmul.bf16.vlgmr.msra.gmra.mxu2 %v1673_v62  ;;  %1729 = vmatmul.bf16.vlgmr.msra.gmra.mxu3 %v1673_v62 }
 0x1c6   : > { %1940 = vmatpush.bf16.msra.mxu0 %v4707_v10  ;;  %1953 = vmatpush.bf16.msra.mxu1 %v4709_v11 }
 0x1c7   : > { %1966 = vmatpush.bf16.msra.mxu2 %v4711_v15  ;;  %1979 = vmatpush.bf16.msra.mxu3 %v4714_v19 }
 0x1ca   : > { %1941 = vmatpush.bf16.msra.mxu0 %v4716_v20  ;;  %1954 = vmatpush.bf16.msra.mxu1 %v4720_v24 }
 0x1cb   : > { %1967 = vmatpush.bf16.msra.mxu2 %v4726_v31  ;;  %1980 = vmatpush.bf16.msra.mxu3 %v4730_v33 }
 0x1ce   : > { %1942 = vmatpush.bf16.msra.mxu0 %v4732_v34  ;;  %1955 = vmatpush.bf16.msra.mxu1 %v4735_v38 }
 0x1cf   : > { %1968 = vmatpush.bf16.msra.mxu2 %v4738_v44  ;;  %1981 = vmatpush.bf16.msra.mxu3 %v4742_v45 }
 0x1d2   : > { %1943 = vmatpush.bf16.msra.mxu0 %v4744_v46  ;;  %1956 = vmatpush.bf16.msra.mxu1 %v4747_v50 }
 0x1d3   : > { %1969 = vmatpush.bf16.msra.mxu2 %v4750_v56  ;;  %1982 = vmatpush.bf16.msra.mxu3 %v4755_v58 }
 0x1d6   : > { %1944 = vmatpush.bf16.msra.mxu0 %v4757_v59  ;;  %1957 = vmatpush.bf16.msra.mxu1 %v4760_v63 }
 0x1d7   : > { %1970 = vmatpush.bf16.msra.mxu2 %v4763_v5  ;;  %1983 = vmatpush.bf16.msra.mxu3 %v4767_v6 }
 0x1da   : > { %1945 = vmatpush.bf16.msra.mxu0 %v4769_v7  ;;  %1958 = vmatpush.bf16.msra.mxu1 %v4773_v13 }
 0x1db   : > { %1971 = vmatpush.bf16.msra.mxu2 %v4779_v22  ;;  %1984 = vmatpush.bf16.msra.mxu3 %v4783_v23 }
 0x1de   : > { %1946 = vmatpush.bf16.msra.mxu0 %v4785_v25  ;;  %1959 = vmatpush.bf16.msra.mxu1 %v4788_v29 }
 0x1df   : > { %1972 = vmatpush.bf16.msra.mxu2 %v4791_v39  ;;  %1985 = vmatpush.bf16.msra.mxu3 %v4795_v40 }
 0x1e2   : > { %1947 = vmatpush.bf16.msra.mxu0 %v4797_v41  ;;  %1960 = vmatpush.bf16.msra.mxu1 %v4800_v47 }
 0x1e3   : > { %1973 = vmatpush.bf16.msra.mxu2 %v4803_v52  ;;  %1986 = vmatpush.bf16.msra.mxu3 %v4807_v53 }
 0x241   : > { %v1691_v10 = vpop.f32.mrf.mxu0  ;;  %v1704_v11 = vpop.f32.mrf.mxu1 }
 0x242   : > { %v1734_v15 = vadd.f32 %v1691_v10, %v4879_v3  ;;  %v1735_v19 = vadd.f32 %v1704_v11, %v4881_v8  ;;  %v3804_v10 = vld [vmem:[#allocation9 + $0xf0] sm:$0xf0]  ;;  %v3810_v11 = vld [vmem:[#allocation9 + $0xe8] sm:$0xf] }
 0x244   : > { %v3671_v20 = vmul.f32 -1.442695, %v1734_v15  ;;  %v3672_v24 = vmul.f32 -1.442695, %v1735_v19  ;;  %v4104_v15 = vld [vmem:[#allocation9 + $0xf4] sm:$0xf0] }
 0x246   : > { %4213 = vpow2.f32 %v3671_v20 }
 0x247   : > { %4215 = vpow2.f32 %v3672_v24  ;;  %v3807_v24 = vor.u32 %v4101_v0, %v3804_v10  ;;  %v3738_v0 = vld [vmem:[#allocation9 + $0x60] sm:$0xf] }
 0x248   : > { %v1717_v31 = vpop.f32.mrf.mxu2  ;;  %v1730_v33 = vpop.f32.mrf.mxu3 }
 0x249   : > { %v1737_v34 = vadd.f32 %v1730_v33, %v4885_v21  ;;  %v1693_v38 = vpop.f32.mrf.mxu0  ;;  %v1706_v44 = vpop.f32.mrf.mxu1  ;;  %v1736_v13 = vadd.f32 %v1717_v31, %v4883_v16  ;;  %v3811_v31 = vor.u32 %v4104_v15, %v3810_v11  ;;  %v4102_v33 = vld [vmem:[#allocation9 + $0xec] sm:$0xf]  ;;  %v4087_v11 = vld [vmem:[#allocation9 + $0x6c] sm:$0xf0] }
 0x24a   : > { %v3739_v15 = vor.u32 %v4087_v11, %v3738_v0  ;;  %v3692_v0 = vld [vmem:[#allocation9 + $0x10] sm:$0xf0] }
 0x24b   : > { %v3673_v45 = vmul.f32 -1.442695, %v1737_v34  ;;  %v3812_v34 = vld [vmem:[#allocation9 + $0xf8] sm:$0xf0] }
 0x24c   : > { %v4214_v46 = vpop.eup %4213 }
 0x24d   : > { %v4216_v50 = vpop.eup %4215  ;;  %v1741_v56 = vadd.f32 1.0, %v4214_v46  ;;  %4217 = vpow2.f32 %v3673_v45  ;;  %v3815_v45 = vor.u32 %v4102_v33, %v3812_v34  ;;  %v3786_v46 = vld [vmem:[#allocation9 + $0xc0] sm:$0xf]  ;;  %v3746_v33 = vld [vmem:[#allocation9 + $0x68] sm:$0xf] }
 0x24e   : > { %v1760_v58 = vadd.f32 1.0, %v4216_v50  ;;  %v4099_v50 = vld [vmem:[#allocation9 + $0xcc] sm:$0xf0]  ;;  %v4088_v34 = vld [vmem:[#allocation9 + $0x74] sm:$0xf0] }
 0x24f   : > { %4219 = vrcp.f32 %v1741_v56  ;;  %v1753_v40 = vand.u32 2147483648, %v1741_v56  ;;  %v1751_v52 = vand.u32 2147483647, %v1741_v56  ;;  %vm1747_vm15 = vweird.f32 %v1741_v56 }
 0x250   : > { %4221 = vrcp.f32 %v1760_v58  ;;  %v1719_v59 = vpop.f32.mrf.mxu2  ;;  %v1732_v63 = vpop.f32.mrf.mxu3  ;;  %v1772_v41 = vand.u32 2147483648, %v1760_v58  ;;  %v1770_v3 = vand.u32 2147483647, %v1760_v58  ;;  %vm1766_vm0 = vweird.f32 %v1760_v58 }
 0x251   : > { %v1754_v16 = vor.u32 1.1754944e-38, %v1753_v40  ;;  %vm1752_vm3 = vcmp.eq.f32.partialorder %v1751_v52, 8.507059e+37  ;;  %v3787_v63 = vor.u32 %v4099_v50, %v3786_v46  ;;  %v4093_v40 = vld [vmem:[#allocation9 + $0xa4] sm:$0xf]  ;;  %v3747_v46 = vor.u32 %v4088_v34, %v3746_v33  ;;  %v4086_v50 = vld [vmem:[#allocation9 + $0x6c] sm:$0xf] }
 0x252   : > { %v1773_v9 = vor.u32 1.1754944e-38, %v1772_v41  ;;  %vm1771_vm4 = vcmp.eq.f32.partialorder %v1770_v3, 8.507059e+37  ;;  %v3772_v41 = vld [vmem:[#allocation9 + $0xb0] sm:$0xf0]  ;;  %v3700_v33 = vld [vmem:[#allocation9 + $0x18] sm:$0xf0] }
 0x253   : > { %v4218_v5 = vpop.eup %4217  ;;  %v3775_v3 = vor.u32 %v4093_v40, %v3772_v41  ;;  %v3706_v40 = vld [vmem:[#allocation9 + $0x20] sm:$0xf] }
 0x254   : > { %v1780_v6 = vadd.f32 1.0, %v4218_v5  ;;  %v3788_v5 = vld [vmem:[#allocation9 + $0xd0] sm:$0xf0] }
 0x255   : > { %v4220_v7 = vpop.eup %4219 }
 0x256   : > { %v4222_v22 = vpop.eup %4221  ;;  %v1743_v23 = vmul.f32 %v4220_v7, %v1741_v56  ;;  %4223 = vrcp.f32 %v1780_v6  ;;  %vm1748_vm13 = vweird.f32 %v4220_v7  ;;  %v1792_v55 = vand.u32 2147483648, %v1780_v6  ;;  %v4097_v56 = vld [vmem:[#allocation9 + $0xc4] sm:$0xf] }
 0x257   : > { %v1762_v25 = vmul.f32 %v4222_v22, %v1760_v58  ;;  %4225 = vtanh.f32 %v1736_v13  ;;  %vm1767_vm14 = vweird.f32 %v4222_v22  ;;  %vm1749_vm1 = vmor %vm1747_vm15, %vm1748_vm13  ;;  %vm1786_vm6 = vweird.f32 %v1780_v6  ;;  %v4100_v13 = vld [vmem:[#allocation9 + $0xd4] sm:$0xf0] }
 0x258   : > { %v1744_v29 = vsub.f32 1.0, %v1743_v23  ;;  %vm1768_vm2 = vmor %vm1766_vm0, %vm1767_vm14  ;;  %v1790_v60 = vand.u32 2147483647, %v1780_v6  ;;  %v1793_v36 = vor.u32 1.1754944e-38, %v1792_v55  ;;  %v3770_v23 = vld [vmem:[#allocation9 + $0xa0] sm:$0xf] }
 0x259   : > { %v1763_v39 = vsub.f32 1.0, %v1762_v25  ;;  %v4095_v25 = vld [vmem:[#allocation9 + $0xac] sm:$0xf0] }
 0x25a   : > { %v1745_v47 = vmul.f32 %v4220_v7, %v1744_v29  ;;  %vm1791_vm8 = vcmp.eq.f32.partialorder %v1790_v60, 8.507059e+37 }
 0x25b   : > { %v1764_v53 = vmul.f32 %v4222_v22, %v1763_v39  ;;  %v3771_v39 = vor.u32 %v4095_v25, %v3770_v23 }
 0x25c   : > { %v4224_v8 = vpop.eup %4223  ;;  %v1746_v21 = vadd.f32 %v4220_v7, %v1745_v47  ;;  %v3778_v47 = vld [vmem:[#allocation9 + $0xa8] sm:$0xf] }
 0x25d   : > { %v1765_v14 = vadd.f32 %v4222_v22, %v1764_v53  ;;  %v1782_v1 = vmul.f32 %v4224_v8, %v1780_v6  ;;  %v4226_v51 = vpop.eup %4225  ;;  %vm1787_vm5 = vweird.f32 %v4224_v8  ;;  %v3791_v6 = vor.u32 %v4097_v56, %v3788_v5  ;;  %v3748_v56 = vld [vmem:[#allocation9 + $0x78] sm:$0xf0]  ;;  %v4083_v5 = vld [vmem:[#allocation9 + $0x4c] sm:$0xf0] }
 0x25e   : > { %v1750_v42 = vsel %vm1749_vm1, %v4220_v7, %v1746_v21  ;;  %vm1788_vm7 = vmor %vm1786_vm6, %vm1787_vm5  ;;  %v3794_v7 = vld [vmem:[#allocation9 + $0xc8] sm:$0xf]  ;;  %v4094_v21 = vld [vmem:[#allocation9 + $0xac] sm:$0xf] }
 0x25f   : > { %v1755_v49 = vsel %vm1752_vm3, %v1754_v16, %v1750_v42  ;;  %v1769_v54 = vsel %vm1768_vm2, %v4222_v22, %v1765_v14  ;;  %v1783_v2 = vsub.f32 1.0, %v1782_v1  ;;  %v4098_v22 = vld [vmem:[#allocation9 + $0xcc] sm:$0xf]  ;;  %v3780_v16 = vld [vmem:[#allocation9 + $0xb8] sm:$0xf0] }
 0x260   : > { %v1774_v4 = vsel %vm1771_vm4, %v1773_v9, %v1769_v54  ;;  %v1797_v18 = vmul.f32 %v4226_v51, %v1755_v49  ;;  %v5580_v14 = vld [vmem:[#allocation18_spill] sm:$0xff]  ;;  %v3783_v49 = vor.u32 %v4094_v21, %v3780_v16  ;;  %v3754_v54 = vld [vmem:[#allocation9 + $0x80] sm:$0xf] }
 0x261   : > { %v1796_v27 = vmul.f32 %v1774_v4, %v4903_v37  ;;  %v1784_v48 = vmul.f32 %v4224_v8, %v1783_v2  ;;  %v3802_v37 = vld [vmem:[#allocation9 + $0xe0] sm:$0xf]  ;;  %v4091_v2 = vld [vmem:[#allocation9 + $0x8c] sm:$0xf0]  ;;  %v4089_v4 = vld [vmem:[#allocation9 + $0x84] sm:$0xf] }
 0x262   : > { %v3803_v62 = vor.u32 %v4103_v57, %v3802_v37 }
 0x263   : > { %v4943_v30 = vadd.f32 %v1797_v18, %v1796_v27  ;;  %v1785_v35 = vadd.f32 %v4224_v8, %v1784_v48  ;;  %v3755_v18 = vor.u32 %v4091_v2, %v3754_v54  ;;  %v3756_v27 = vld [vmem:[#allocation9 + $0x90] sm:$0xf0]  ;;  %v3762_v48 = vld [vmem:[#allocation9 + $0x88] sm:$0xf] }
 0x264   : > { %v3759_v60 = vor.u32 %v4089_v4, %v3756_v27  ;;  %v3714_v54 = vld [vmem:[#allocation9 + $0x28] sm:$0xf]  ;;  %v4078_v27 = vld [vmem:[#allocation9 + $0x2c] sm:$0xf] }
 0x265   : > { %4227 = vtanh.f32 %v4943_v30  ;;  %v1789_v32 = vsel %vm1788_vm7, %v4224_v8, %v1785_v35  ;;  %v4096_v8 = vld [vmem:[#allocation9 + $0xb4] sm:$0xf0] }
 0x266   : > { %v1794_v43 = vsel %vm1791_vm8, %v1793_v36, %v1789_v32  ;;  %v3779_v51 = vor.u32 %v4096_v8, %v3778_v47  ;;  %v4092_v35 = vld [vmem:[#allocation9 + $0x94] sm:$0xf0]  ;;  %v4090_v32 = vld [vmem:[#allocation9 + $0x8c] sm:$0xf]  ;;  %v3764_v36 = vld [vmem:[#allocation9 + $0x98] sm:$0xf0] }
 0x267   : > { %v3767_v37 = vor.u32 %v4090_v32, %v3764_v36  ;;  %v3690_v32 = vld [vmem:[#allocation9] sm:$0xf]  ;;  %v4075_v36 = vld [vmem:[#allocation9 + $0xc] sm:$0xf0] }
 0x26b   : > { %v4228_v17 = vpop.eup %4227 }
 0x26c   : > { %v1800_v61 = vmul.f32 %v4228_v17, %v1794_v43  ;;  %v3763_v43 = vor.u32 %v4092_v35, %v3762_v48  ;;  %v3716_v48 = vld [vmem:[#allocation9 + $0x38] sm:$0xf0] }
 0x26e   : > { %v1801_v12 = vpack.c.bf16 %v1800_v61, %v1800_v61 }
 0x270   : > { %1803 = vst [vmem:[#allocation3 + $0x4] sm:$0xf] %v1801_v12  ;;  %1819 = vmatmul.bf16.vlgmr.msrb.gmra.mxu0 %v1801_v12  ;;  %1832 = vmatmul.bf16.vlgmr.msrb.gmra.mxu1 %v1801_v12 }
 0x271   : > { %1845 = vmatmul.bf16.vlgmr.msrb.gmra.mxu2 %v1801_v12  ;;  %1858 = vmatmul.bf16.vlgmr.msrb.gmra.mxu3 %v1801_v12 }
 0x272   : > { %2282 = vmatpush.bf16.msrb.mxu0 %v3803_v62  ;;  %2301 = vmatpush.bf16.msrb.mxu1 %v3807_v24 }
 0x273   : > { %2320 = vmatpush.bf16.msrb.mxu2 %v3811_v31  ;;  %2339 = vmatpush.bf16.msrb.mxu3 %v3815_v45 }
 0x276   : > { %2283 = vmatpush.bf16.msrb.mxu0 %v3787_v63  ;;  %2302 = vmatpush.bf16.msrb.mxu1 %v3791_v6  ;;  %v3751_v63 = vor.u32 %v4086_v50, %v3748_v56  ;;  %v4081_v6 = vld [vmem:[#allocation9 + $0x44] sm:$0xf] }
 0x27a   : > { %2284 = vmatpush.bf16.msrb.mxu0 %v3771_v39  ;;  %2303 = vmatpush.bf16.msrb.mxu1 %v3775_v3  ;;  %v3732_v39 = vld [vmem:[#allocation9 + $0x58] sm:$0xf0] }
 0x27e   : > { %2285 = vmatpush.bf16.msrb.mxu0 %v3755_v18  ;;  %2304 = vmatpush.bf16.msrb.mxu1 %v3759_v60  ;;  %v4080_v18 = vld [vmem:[#allocation9 + $0x34] sm:$0xf0]  ;;  %v3719_v60 = vor.u32 %v4078_v27, %v3716_v48 }
 0x282   : > { %2286 = vmatpush.bf16.msrb.mxu0 %v3739_v15 }
 0x2ed   : > { %v1820_v19 = vpop.f32.mrf.mxu0  ;;  %v1833_v20 = vpop.f32.mrf.mxu1 }
 0x2ee   : > { %v1863_v38 = vadd.f32 %v1820_v19, %v4887_v26  ;;  %v1864_v44 = vadd.f32 %v1833_v20, %v4889_v28  ;;  %v3795_v26 = vor.u32 %v4100_v13, %v3794_v7  ;;  %v3796_v28 = vld [vmem:[#allocation9 + $0xd8] sm:$0xf0]  ;;  %v4085_v19 = vld [vmem:[#allocation9 + $0x64] sm:$0xf]  ;;  %v3740_v20 = vld [vmem:[#allocation9 + $0x70] sm:$0xf0] }
 0x2ef   : > { %v3799_v29 = vor.u32 %v4098_v22, %v3796_v28  ;;  %v3743_v31 = vor.u32 %v4085_v19, %v3740_v20  ;;  %v3724_v22 = vld [vmem:[#allocation9 + $0x50] sm:$0xf0]  ;;  %v4084_v28 = vld [vmem:[#allocation9 + $0x54] sm:$0xf0] }
 0x2f0   : > { %v3674_v58 = vmul.f32 -1.442695, %v1863_v38  ;;  %v3675_v59 = vmul.f32 -1.442695, %v1864_v44  ;;  %2321 = vmatpush.bf16.msrb.mxu2 %v3795_v26  ;;  %v5581_v44 = vld [vmem:[#allocation17_spill] sm:$0xff]  ;;  %v3727_v8 = vor.u32 %v4081_v6, %v3724_v22 }
 0x2f1   : > { %2340 = vmatpush.bf16.msrb.mxu3 %v3799_v29  ;;  %2305 = vmatpush.bf16.msrb.mxu1 %v3743_v31  ;;  %v3730_v26 = vld [vmem:[#allocation9 + $0x48] sm:$0xf]  ;;  %v4082_v29 = vld [vmem:[#allocation9 + $0x4c] sm:$0xf] }
 0x2f2   : > { %4229 = vpow2.f32 %v3674_v58  ;;  %v3722_v58 = vld [vmem:[#allocation9 + $0x40] sm:$0xf]  ;;  %v3731_v21 = vor.u32 %v4084_v28, %v3730_v26  ;;  %v3735_v16 = vor.u32 %v4082_v29, %v3732_v39  ;;  %v4074_v31 = vld [vmem:[#allocation9 + $0xc] sm:$0xf]  ;;  %v4071_v29 = vld [vmem:[#allocation3] sm:$0xff] }
 0x2f3   : > { %4231 = vpow2.f32 %v3675_v59  ;;  %v3723_v13 = vor.u32 %v4083_v5, %v3722_v58  ;;  %v3703_v50 = vor.u32 %v4074_v31, %v3700_v33  ;;  %v3924_v31 = vld [vmem:[%s5563_s8 + $0xd8] sm:$0xf0] }
 0x2f4   : > { %v1846_v52 = vpop.f32.mrf.mxu2  ;;  %v1859_v53 = vpop.f32.mrf.mxu3  ;;  %2322 = vmatpush.bf16.msrb.mxu2 %v3779_v51 }
 0x2f5   : > { %v1866_v1 = vadd.f32 %v1859_v53, %v5580_v14  ;;  %v1822_v9 = vpop.f32.mrf.mxu0  ;;  %v1835_v42 = vpop.f32.mrf.mxu1  ;;  %2341 = vmatpush.bf16.msrb.mxu3 %v3783_v49  ;;  %v1865_v45 = vadd.f32 %v1846_v52, %v5581_v44  ;;  %2287 = vmatpush.bf16.msrb.mxu0 %v3723_v13  ;;  %v4079_v53 = vld [vmem:[#allocation9 + $0x2c] sm:$0xf0]  ;;  %v4077_v14 = vld [vmem:[#allocation9 + $0x24] sm:$0xf] }
 0x2f6   : > { %v3707_v49 = vor.u32 %v4079_v53, %v3706_v40  ;;  %2306 = vmatpush.bf16.msrb.mxu1 %v3727_v8  ;;  %v5584_v40 = vld [vmem:[#allocation19_spill] sm:$0xff] }
 0x2f7   : > { %v3676_v55 = vmul.f32 -1.442695, %v1866_v1  ;;  %v3708_v1 = vld [vmem:[#allocation9 + $0x30] sm:$0xf0] }
 0x2f8   : > { %v4230_v17 = vpop.eup %4229  ;;  %2323 = vmatpush.bf16.msrb.mxu2 %v3763_v43  ;;  %v3711_v4 = vor.u32 %v4077_v14, %v3708_v1  ;;  %v4135_v14 = vld [vmem:[%s5563_s8 + $0xec] sm:$0xf0]  ;;  %v4133_v1 = vld [vmem:[%s5563_s8 + $0xe4] sm:$0xf] }
 0x2f9   : > { %v4232_v61 = vpop.eup %4231  ;;  %v4949_v12 = vadd.f32 1.0, %v4230_v17  ;;  %4233 = vpow2.f32 %v3676_v55  ;;  %2342 = vmatpush.bf16.msrb.mxu3 %v3767_v37  ;;  %2288 = vmatpush.bf16.msrb.mxu0 %v3707_v49  ;;  %v3715_v55 = vor.u32 %v4080_v18, %v3714_v54  ;;  %v4073_v17 = vld [vmem:[#allocation9 + $0x4] sm:$0xf]  ;;  %v3691_v37 = vor.u32 %v4075_v36, %v3690_v32  ;;  %v4136_v18 = vld [vmem:[%s5563_s8 + $0xf4] sm:$0xf0] }
 0x2fa   : > { %v4951_v57 = vadd.f32 1.0, %v4232_v61  ;;  %2307 = vmatpush.bf16.msrb.mxu1 %v3711_v4  ;;  %v3695_v34 = vor.u32 %v4073_v17, %v3692_v0  ;;  %v3938_v4 = vld [vmem:[%s5563_s8 + $0xe8] sm:$0xf]  ;;  %v3914_v17 = vld [vmem:[%s5563_s8 + $0xc0] sm:$0xf] }
 0x2fb   : > { %4235 = vrcp.f32 %v4949_v12  ;;  %v1880_v24 = vand.u32 2147483647, %v4949_v12  ;;  %v1882_v52 = vand.u32 2147483648, %v4949_v12  ;;  %vm1876_vm13 = vweird.f32 %v4949_v12 }
 0x2fc   : > { %4237 = vrcp.f32 %v4951_v57  ;;  %v1848_v62 = vpop.f32.mrf.mxu2  ;;  %v1861_v10 = vpop.f32.mrf.mxu3  ;;  %2324 = vmatpush.bf16.msrb.mxu2 %v3747_v46  ;;  %v1901_v47 = vand.u32 2147483648, %v4951_v57  ;;  %v1899_v51 = vand.u32 2147483647, %v4951_v57  ;;  %vm1895_vm12 = vweird.f32 %v4951_v57 }
 0x2fd   : > { %2343 = vmatpush.bf16.msrb.mxu3 %v3751_v63  ;;  %vm4970_vm9 = vcmp.eq.f32.partialorder %v1880_v24, 8.507059e+37  ;;  %v3698_v62 = vld [vmem:[#allocation9 + $0x8] sm:$0xf]  ;;  %v4076_v10 = vld [vmem:[#allocation9 + $0x14] sm:$0xf0]  ;;  %v1883_v19 = vor.u32 1.1754944e-38, %v1882_v52  ;;  %2289 = vmatpush.bf16.msrb.mxu0 %v3691_v37  ;;  %v5026_v48 = vor.u32 %v4136_v18, %v3938_v4 }
 0x2fe   : > { %v1902_v15 = vor.u32 1.1754944e-38, %v1901_v47  ;;  %vm1900_vm0 = vcmp.eq.f32.partialorder %v1899_v51, 8.507059e+37  ;;  %2308 = vmatpush.bf16.msrb.mxu1 %v3695_v34  ;;  %v5585_v47 = vld [vmem:[#allocation20_spill] sm:$0xff]  ;;  %v3898_v34 = vld [vmem:[%s5563_s8 + $0xa0] sm:$0xf] }
 0x2ff   : > { %v4234_v38 = vpop.eup %4233  ;;  %v3866_v18 = vld [vmem:[%s5563_s8 + $0x60] sm:$0xf] }
 0x300   : > { %v4957_v59 = vadd.f32 1.0, %v4234_v38  ;;  %2325 = vmatpush.bf16.msrb.mxu2 %v3731_v21  ;;  %v3699_v38 = vor.u32 %v4076_v10, %v3698_v62  ;;  %v3916_v10 = vld [vmem:[%s5563_s8 + $0xd0] sm:$0xf0] }
 0x301   : > { %v4959_v7 = vpop.eup %4235  ;;  %2344 = vmatpush.bf16.msrb.mxu3 %v3735_v16  ;;  %v3930_v16 = vld [vmem:[%s5563_s8 + $0xe0] sm:$0xf] }
 0x302   : > { %v4961_v23 = vpop.eup %4237  ;;  %v1872_v25 = vmul.f32 %v4959_v7, %v4949_v12  ;;  %4239 = vrcp.f32 %v4957_v59  ;;  %vm1877_vm10 = vweird.f32 %v4959_v7  ;;  %vm1915_vm2 = vweird.f32 %v4957_v59 }
 0x303   : > { %v1891_v41 = vmul.f32 %v4961_v23, %v4951_v57  ;;  %4241 = vtanh.f32 %v1865_v45  ;;  %vm1896_vm11 = vweird.f32 %v4961_v23  ;;  %vm1878_vm14 = vmor %vm1876_vm13, %vm1877_vm10  ;;  %v1919_v13 = vand.u32 2147483647, %v4957_v59 }
 0x304   : > { %v1873_v3 = vsub.f32 1.0, %v1872_v25  ;;  %vm1897_vm15 = vmor %vm1895_vm12, %vm1896_vm11  ;;  %2326 = vmatpush.bf16.msrb.mxu2 %v3715_v55  ;;  %v5013_v54 = vor.u32 %v4135_v14, %v3930_v16  ;;  %v3940_v55 = vld [vmem:[%s5563_s8 + $0xf8] sm:$0xf0]  ;;  %v4124_v16 = vld [vmem:[%s5563_s8 + $0x94] sm:$0xf0] }
 0x305   : > { %v1892_v9 = vsub.f32 1.0, %v1891_v41  ;;  %2345 = vmatpush.bf16.msrb.mxu3 %v3719_v60  ;;  %vm1920_vm4 = vcmp.eq.f32.partialorder %v1919_v13, 8.507059e+37  ;;  %v4122_v14 = vld [vmem:[%s5563_s8 + $0x8c] sm:$0xf] }
 0x306   : > { %v1874_v2 = vmul.f32 %v4959_v7, %v1873_v3 }
 0x307   : > { %v1893_v35 = vmul.f32 %v4961_v23, %v1892_v9  ;;  %v5586_v9 = vld [vmem:[#allocation22_spill] sm:$0xff] }
 0x308   : > { %v4240_v43 = vpop.eup %4239  ;;  %v1875_v61 = vadd.f32 %v4959_v7, %v1874_v2  ;;  %2327 = vmatpush.bf16.msrb.mxu2 %v3699_v38  ;;  %v3932_v2 = vld [vmem:[%s5563_s8 + $0xf0] sm:$0xf0] }
 0x309   : > { %v4242_v11 = vpop.eup %4241  ;;  %v1894_v20 = vadd.f32 %v4961_v23, %v1893_v35  ;;  %v1911_v24 = vmul.f32 %v4240_v43, %v4957_v59  ;;  %2346 = vmatpush.bf16.msrb.mxu3 %v3703_v50  ;;  %vm1916_vm1 = vweird.f32 %v4240_v43  ;;  %v5024_v27 = vor.u32 %v4133_v1, %v3932_v2  ;;  %v4134_v35 = vld [vmem:[%s5563_s8 + $0xec] sm:$0xf]  ;;  %v4125_v50 = vld [vmem:[%s5563_s8 + $0xa4] sm:$0xf]  ;;  %v3892_v1 = vld [vmem:[%s5563_s8 + $0x98] sm:$0xf0] }
 0x30a   : > { %v1879_v12 = vsel %vm1878_vm14, %v4959_v7, %v1875_v61  ;;  %v1921_v7 = vand.u32 2147483648, %v4957_v59  ;;  %vm1917_vm3 = vmor %vm1915_vm2, %vm1916_vm1  ;;  %v5035_v32 = vor.u32 %v4134_v35, %v3940_v55  ;;  %v4129_v61 = vld [vmem:[%s5563_s8 + $0xc4] sm:$0xf]  ;;  %v5166_v4 = vor.u32 %v4122_v14, %v3892_v1  ;;  %v4119_v35 = vld [vmem:[%s5563_s8 + $0x6c] sm:$0xf0] }
 0x30b   : > { %v1884_v44 = vsel %vm4970_vm9, %v1883_v19, %v1879_v12  ;;  %v1898_v45 = vsel %vm1897_vm15, %v4961_v23, %v1894_v20  ;;  %v1912_v46 = vsub.f32 1.0, %v1911_v24  ;;  %v5061_v19 = vor.u32 %v4129_v61, %v3916_v10  ;;  %v4132_v20 = vld [vmem:[%s5563_s8 + $0xd4] sm:$0xf0]  ;;  %v4130_v24 = vld [vmem:[%s5563_s8 + $0xcc] sm:$0xf] }
 0x30c   : > { %v1903_v56 = vsel %vm1900_vm0, %v1902_v15, %v1898_v45  ;;  %v1926_v58 = vmul.f32 %v4242_v11, %v1884_v44  ;;  %v1922_v26 = vor.u32 1.1754944e-38, %v1921_v7  ;;  %v3922_v11 = vld [vmem:[%s5563_s8 + $0xc8] sm:$0xf]  ;;  %v5082_v45 = vor.u32 %v4130_v24, %v3924_v31  ;;  %v4117_v61 = vld [vmem:[%s5563_s8 + $0x64] sm:$0xf] }
 0x30d   : > { %v1925_v57 = vmul.f32 %v1903_v56, %v4943_v30  ;;  %v1913_v63 = vmul.f32 %v4240_v43, %v1912_v46  ;;  %v5080_v44 = vor.u32 %v4132_v20, %v3922_v11  ;;  %v4127_v46 = vld [vmem:[%s5563_s8 + $0xac] sm:$0xf0]  ;;  %v3874_v10 = vld [vmem:[%s5563_s8 + $0x68] sm:$0xf]  ;;  %v4120_v11 = vld [vmem:[%s5563_s8 + $0x74] sm:$0xf0]  ;;  %v5203_v24 = vor.u32 %v4119_v35, %v3866_v18 }
 0x30e   : > { %v5100_v13 = vor.u32 %v4127_v46, %v3898_v34  ;;  %v3850_v34 = vld [vmem:[%s5563_s8 + $0x40] sm:$0xf]  ;;  %v3842_v35 = vld [vmem:[%s5563_s8 + $0x28] sm:$0xf] }
 0x30f   : > { %v4995_v5 = vadd.f32 %v1926_v58, %v1925_v57  ;;  %v1914_v6 = vadd.f32 %v4240_v43, %v1913_v63  ;;  %v3900_v58 = vld [vmem:[%s5563_s8 + $0xb0] sm:$0xf0]  ;;  %v3906_v57 = vld [vmem:[%s5563_s8 + $0xa8] sm:$0xf] }
 0x311   : > { %4243 = vtanh.f32 %v4995_v5  ;;  %v1918_v22 = vsel %vm1917_vm3, %v4240_v43, %v1914_v6  ;;  %v4131_v43 = vld [vmem:[%s5563_s8 + $0xcc] sm:$0xf0] }
 0x312   : > { %v1923_v28 = vsel %vm1920_vm4, %v1922_v26, %v1918_v22  ;;  %v5051_v62 = vor.u32 %v4131_v43, %v3914_v17  ;;  %v5587_v6 = vld [vmem:[#allocation21_spill] sm:$0xff]  ;;  %v5102_v22 = vor.u32 %v4125_v50, %v3900_v58  ;;  %v4128_v26 = vld [vmem:[%s5563_s8 + $0xb4] sm:$0xf0]  ;;  %v5219_v50 = vor.u32 %v4120_v11, %v3874_v10 }
 0x313   : > { %v4115_v58 = vld [vmem:[%s5563_s8 + $0x4c] sm:$0xf0] }
 0x317   : > { %v4244_v30 = vpop.eup %4243 }
 0x318   : > { %v1929_v23 = vmul.f32 %v4244_v30, %v1923_v28  ;;  %v4126_v30 = vld [vmem:[%s5563_s8 + $0xac] sm:$0xf]  ;;  %v3908_v28 = vld [vmem:[%s5563_s8 + $0xb8] sm:$0xf0] }
 0x31a   : > { %v1930_v25 = vpack.c.bf16 %v1929_v23, %v1929_v23 }
 0x31c   : > { %1932 = vst [vmem:[#allocation3 + $0x8] sm:$0xf] %v1930_v25  ;;  %1948 = vmatmul.bf16.vlgmr.msra.gmra.mxu0 %v1930_v25  ;;  %1961 = vmatmul.bf16.vlgmr.msra.gmra.mxu1 %v1930_v25 }
 0x31d   : > { %1974 = vmatmul.bf16.vlgmr.msra.gmra.mxu2 %v1930_v25  ;;  %1987 = vmatmul.bf16.vlgmr.msra.gmra.mxu3 %v1930_v25 }
 0x31e   : > { %2575 = vmatpush.bf16.msra.mxu0 %v5013_v54  ;;  %2588 = vmatpush.bf16.msra.mxu1 %v5024_v27 }
 0x31f   : > { %2601 = vmatpush.bf16.msra.mxu2 %v5026_v48  ;;  %2614 = vmatpush.bf16.msra.mxu3 %v5035_v32 }
 0x322   : > { %2576 = vmatpush.bf16.msra.mxu0 %v5051_v62  ;;  %2589 = vmatpush.bf16.msra.mxu1 %v5061_v19 }
 0x323   : > { %2602 = vmatpush.bf16.msra.mxu2 %v5080_v44  ;;  %2615 = vmatpush.bf16.msra.mxu3 %v5082_v45 }
 0x326   : > { %2577 = vmatpush.bf16.msra.mxu0 %v5100_v13  ;;  %2590 = vmatpush.bf16.msra.mxu1 %v5102_v22 }
 0x32c   : > { %2290 = vmatmul.bf16.vlgmr.msrb.gmra.mxu0 %v4071_v29  ;;  %2309 = vmatmul.bf16.vlgmr.msrb.gmra.mxu1 %v4071_v29 }
 0x32d   : > { %2328 = vmatmul.bf16.vlgmr.msrb.gmra.mxu2 %v4071_v29  ;;  %2347 = vmatmul.bf16.vlgmr.msrb.gmra.mxu3 %v4071_v29  ;;  %v5116_v29 = vor.u32 %v4128_v26, %v3906_v57  ;;  %v4113_v57 = vld [vmem:[%s5563_s8 + $0x44] sm:$0xf] }
 0x32f   : > { %2603 = vmatpush.bf16.msra.mxu2 %v5116_v29 }
 0x399   : > { %v1949_v39 = vpop.f32.mrf.mxu0  ;;  %v1962_v59 = vpop.f32.mrf.mxu1 }
 0x39a   : > { %v1992_v41 = vadd.f32 %v1949_v39, %v5584_v40  ;;  %v1993_v52 = vadd.f32 %v1962_v59, %v5585_v47  ;;  %v5118_v39 = vor.u32 %v4126_v30, %v3908_v28  ;;  %v3882_v59 = vld [vmem:[%s5563_s8 + $0x80] sm:$0xf]  ;;  %v4123_v40 = vld [vmem:[%s5563_s8 + $0x8c] sm:$0xf0]  ;;  %v5237_v30 = vor.u32 %v4115_v58, %v3850_v34  ;;  %v3858_v28 = vld [vmem:[%s5563_s8 + $0x48] sm:$0xf] }
 0x39b   : > { %v5130_v47 = vor.u32 %v4123_v40, %v3882_v59  ;;  %v3826_v34 = vld [vmem:[%s5563_s8 + $0x8] sm:$0xf]  ;;  %v4108_v58 = vld [vmem:[%s5563_s8 + $0x14] sm:$0xf0] }
 0x39c   : > { %v3677_v53 = vmul.f32 -1.442695, %v1992_v41  ;;  %v3678_v3 = vmul.f32 -1.442695, %v1993_v52  ;;  %v4121_v52 = vld [vmem:[%s5563_s8 + $0x84] sm:$0xf]  ;;  %2616 = vmatpush.bf16.msra.mxu3 %v5118_v39 }
 0x39d   : > { %2578 = vmatpush.bf16.msra.mxu0 %v5130_v47 }
 0x39e   : > { %4245 = vpow2.f32 %v3677_v53  ;;  %v3884_v53 = vld [vmem:[%s5563_s8 + $0x90] sm:$0xf0] }
 0x39f   : > { %4247 = vpow2.f32 %v3678_v3  ;;  %v3890_v3 = vld [vmem:[%s5563_s8 + $0x88] sm:$0xf] }
 0x3a0   : > { %v1975_v8 = vpop.f32.mrf.mxu2  ;;  %v1988_v21 = vpop.f32.mrf.mxu3  ;;  %v5164_v2 = vor.u32 %v4124_v16, %v3890_v3  ;;  %2617 = vmatpush.bf16.msra.mxu3 %v5166_v4  ;;  %v3860_v3 = vld [vmem:[%s5563_s8 + $0x58] sm:$0xf0] }
 0x3a1   : > { %v1995_v42 = vadd.f32 %v1988_v21, %v5586_v9  ;;  %v1951_v51 = vpop.f32.mrf.mxu0  ;;  %v1964_v49 = vpop.f32.mrf.mxu1  ;;  %v1994_v7 = vadd.f32 %v1975_v8, %v5587_v6  ;;  %2579 = vmatpush.bf16.msra.mxu0 %v5203_v24 }
 0x3a2   : > { %v5162_v49 = vor.u32 %v4121_v52, %v3884_v53  ;;  %2604 = vmatpush.bf16.msra.mxu2 %v5164_v2 }
 0x3a3   : > { %v3679_v60 = vmul.f32 -1.442695, %v1995_v42 }
 0x3a4   : > { %v4246_v36 = vpop.eup %4245  ;;  %2591 = vmatpush.bf16.msra.mxu1 %v5162_v49 }
 0x3a5   : > { %v4248_v37 = vpop.eup %4247  ;;  %v5048_v0 = vadd.f32 1.0, %v4246_v36  ;;  %4249 = vpow2.f32 %v3679_v60  ;;  %2580 = vmatpush.bf16.msra.mxu0 %v5237_v30 }
 0x3a6   : > { %v5059_v15 = vadd.f32 1.0, %v4248_v37  ;;  %2605 = vmatpush.bf16.msra.mxu2 %v5219_v50 }
 0x3a7   : > { %4251 = vrcp.f32 %v5048_v0  ;;  %v2009_v38 = vand.u32 2147483647, %v5048_v0  ;;  %v2011_v56 = vand.u32 2147483648, %v5048_v0  ;;  %vm2005_vm6 = vweird.f32 %v5048_v0 }
 0x3a8   : > { %4253 = vrcp.f32 %v5059_v15  ;;  %v1977_v33 = vpop.f32.mrf.mxu2  ;;  %v1990_v12 = vpop.f32.mrf.mxu3  ;;  %v2030_v23 = vand.u32 2147483648, %v5059_v15  ;;  %v2028_v42 = vand.u32 2147483647, %v5059_v15  ;;  %vm2024_vm10 = vweird.f32 %v5059_v15 }
 0x3a9   : > { %vm5180_vm8 = vcmp.eq.f32.partialorder %v2009_v38, 8.507059e+37  ;;  %v2012_v43 = vor.u32 1.1754944e-38, %v2011_v56  ;;  %v4118_v33 = vld [vmem:[%s5563_s8 + $0x6c] sm:$0xf]  ;;  %v3876_v12 = vld [vmem:[%s5563_s8 + $0x78] sm:$0xf0] }
 0x3aa   : > { %v2031_v60 = vor.u32 1.1754944e-38, %v2030_v23  ;;  %v5221_v56 = vor.u32 %v4118_v33, %v3876_v12  ;;  %v4116_v23 = vld [vmem:[%s5563_s8 + $0x54] sm:$0xf0]  ;;  %vm2029_vm12 = vcmp.eq.f32.partialorder %v2028_v42, 8.507059e+37  ;;  %v4109_v42 = vld [vmem:[%s5563_s8 + $0x24] sm:$0xf] }
 0x3ab   : > { %v4250_v63 = vpop.eup %4249  ;;  %v5260_v53 = vor.u32 %v4116_v23, %v3858_v28  ;;  %v4105_v33 = vld [vmem:[%s5563_s8 + $0x4] sm:$0xf]  ;;  %v3820_v12 = vld [vmem:[%s5563_s8 + $0x10] sm:$0xf0]  ;;  %v5349_v23 = vor.u32 %v4108_v58, %v3826_v34 }
 0x3ac   : > { %v5114_v25 = vadd.f32 1.0, %v4250_v63  ;;  %v3852_v63 = vld [vmem:[%s5563_s8 + $0x50] sm:$0xf0]  ;;  %2618 = vmatpush.bf16.msra.mxu3 %v5221_v56  ;;  %v5345_v28 = vor.u32 %v4105_v33, %v3820_v12 }
 0x3ad   : > { %v5126_v41 = vpop.eup %4251  ;;  %v5258_v52 = vor.u32 %v4113_v57, %v3852_v63  ;;  %2606 = vmatpush.bf16.msra.mxu2 %v5260_v53  ;;  %v4106_v57 = vld [vmem:[%s5563_s8 + $0xc] sm:$0xf]  ;;  %v3828_v63 = vld [vmem:[%s5563_s8 + $0x18] sm:$0xf0] }
 0x3ae   : > { %v5141_v8 = vpop.eup %4253  ;;  %v2001_v21 = vmul.f32 %v5126_v41, %v5048_v0  ;;  %vm2006_vm5 = vweird.f32 %v5126_v41  ;;  %4255 = vrcp.f32 %v5114_v25  ;;  %v3868_v0 = vld [vmem:[%s5563_s8 + $0x70] sm:$0xf0]  ;;  %vm2044_vm14 = vweird.f32 %v5114_v25 }
 0x3af   : > { %v2020_v9 = vmul.f32 %v5141_v8, %v5059_v15  ;;  %4257 = vtanh.f32 %v1994_v7  ;;  %vm5176_vm7 = vmor %vm2005_vm6, %vm2006_vm5  ;;  %vm2025_vm9 = vweird.f32 %v5141_v8  ;;  %v5205_v31 = vor.u32 %v4117_v61, %v3868_v0  ;;  %v4114_v15 = vld [vmem:[%s5563_s8 + $0x4c] sm:$0xf]  ;;  %v3844_v61 = vld [vmem:[%s5563_s8 + $0x38] sm:$0xf0] }
 0x3b0   : > { %v2002_v51 = vsub.f32 1.0, %v2001_v21  ;;  %vm5250_vm11 = vmor %vm2024_vm10, %vm2025_vm9  ;;  %v3834_v21 = vld [vmem:[%s5563_s8 + $0x20] sm:$0xf]  ;;  %v5275_v1 = vor.u32 %v4114_v15, %v3860_v3  ;;  %v4107_v0 = vld [vmem:[%s5563_s8 + $0xc] sm:$0xf0]  ;;  %v5351_v15 = vor.u32 %v4106_v57, %v3828_v63 }
 0x3b1   : > { %v2021_v55 = vsub.f32 1.0, %v2020_v9  ;;  %2592 = vmatpush.bf16.msra.mxu1 %v5205_v31  ;;  %v4111_v9 = vld [vmem:[%s5563_s8 + $0x2c] sm:$0xf0] }
 0x3b2   : > { %v2003_v37 = vmul.f32 %v5126_v41, %v2002_v51  ;;  %2619 = vmatpush.bf16.msra.mxu3 %v5275_v1 }
 0x3b3   : > { %v2022_v20 = vmul.f32 %v5141_v8, %v2021_v55  ;;  %v4112_v55 = vld [vmem:[%s5563_s8 + $0x34] sm:$0xf0] }
 0x3b4   : > { %v5216_v38 = vpop.eup %4255  ;;  %v2004_v46 = vadd.f32 %v5126_v41, %v2003_v37  ;;  %v5314_v11 = vor.u32 %v4112_v55, %v3842_v35 }
 0x3b5   : > { %v4258_v6 = vpop.eup %4257  ;;  %v2023_v7 = vadd.f32 %v5141_v8, %v2022_v20  ;;  %v2040_v26 = vmul.f32 %v5216_v38, %v5114_v25  ;;  %2593 = vmatpush.bf16.msra.mxu1 %v5258_v52  ;;  %vm2045_vm13 = vweird.f32 %v5216_v38 }
 0x3b6   : > { %v2008_v40 = vsel %vm5176_vm7, %v5126_v41, %v2004_v46  ;;  %vm2046_vm15 = vmor %vm2044_vm14, %vm2045_vm13  ;;  %2607 = vmatpush.bf16.msra.mxu2 %v5314_v11 }
 0x3b7   : > { %v2013_v16 = vsel %vm5180_vm8, %v2012_v43, %v2008_v40  ;;  %v2027_v41 = vsel %vm5250_vm11, %v5141_v8, %v2023_v7  ;;  %v2041_v14 = vsub.f32 1.0, %v2040_v26  ;;  %v3836_v8 = vld [vmem:[%s5563_s8 + $0x30] sm:$0xf0]  ;;  %v4110_v43 = vld [vmem:[%s5563_s8 + $0x2c] sm:$0xf] }
 0x3b8   : > { %v2032_v51 = vsel %vm2029_vm12, %v2031_v60, %v2027_v41  ;;  %v2055_v18 = vmul.f32 %v4258_v6, %v2013_v16  ;;  %v5295_v60 = vor.u32 %v4111_v9, %v3834_v21  ;;  %v5304_v37 = vor.u32 %v4109_v42, %v3836_v8  ;;  %v2407_v41 = vld [vmem:[#allocation10 + $0x8] sm:$0xff]  ;;  %v2291_v9 = vpop.f32.mrf.mxu0  ;;  %v2310_v42 = vpop.f32.mrf.mxu1 }
 0x3b9   : > { %v2054_v36 = vmul.f32 %v2032_v51, %v4995_v5  ;;  %v2042_v17 = vmul.f32 %v5216_v38, %v2041_v14  ;;  %v3818_v5 = vld [vmem:[%s5563_s8] sm:$0xf]  ;;  %v5316_v20 = vor.u32 %v4110_v43, %v3844_v61  ;;  %v2050_v6 = vand.u32 2147483648, %v5114_v25  ;;  %v2329_v51 = vpop.f32.mrf.mxu2 }
 0x3ba   : > { %2581 = vmatpush.bf16.msra.mxu0 %v5295_v60  ;;  %v5340_v7 = vor.u32 %v4107_v0, %v3818_v5  ;;  %v2048_v26 = vand.u32 2147483647, %v5114_v25  ;;  %2594 = vmatpush.bf16.msra.mxu1 %v5304_v37  ;;  %v2414_v14 = vpack.c.bf16 %v2407_v41, %v2407_v41  ;;  %v2100_v0 = vld [vmem:[%s5564_s9] sm:$0xf] }
 0x3bb   : > { %v2056_v10 = vadd.f32 %v2055_v18, %v2054_v36  ;;  %v2043_v46 = vadd.f32 %v5216_v38, %v2042_v17  ;;  %2620 = vmatpush.bf16.msra.mxu3 %v5316_v20  ;;  %v2051_v40 = vor.u32 1.1754944e-38, %v2050_v6  ;;  %2608 = vmatpush.bf16.msra.mxu2 %v5349_v23  ;;  %v2348_v18 = vpop.f32.mrf.mxu3  ;;  %v5445_v12 = vperm.slane %v2100_v0, 0 }
 0x3bc   : > { %vm2049_vm0 = vcmp.eq.f32.partialorder %v2048_v26, 8.507059e+37  ;;  %v5447_v34 = vperm.slane %v2100_v0, 1 }
 0x3bd   : > { %4259 = vtanh.f32 %v2056_v10  ;;  %2063 = vst [vmem:[#allocation11] sm:$0xff] %v2056_v10  ;;  %v2047_v59 = vsel %vm2046_vm15, %v5216_v38, %v2043_v46  ;;  %v2292_v46 = vadd.f32 %v2291_v9, %v5445_v12 }
 0x3be   : > { %2582 = vmatpush.bf16.msra.mxu0 %v5340_v7  ;;  %2595 = vmatpush.bf16.msra.mxu1 %v5345_v28  ;;  %v2052_v3 = vsel %vm2049_vm0, %v2051_v40, %v2047_v59  ;;  %v2311_v58 = vadd.f32 %v2310_v42, %v5447_v34 }
 0x3bf   : > { %2621 = vmatpush.bf16.msra.mxu3 %v5351_v15  ;;  %2726 = vmatpush.bf16.msrb.mxu2 %v5026_v48 }
 0x3c0   : > { %v5422_v8 = vpop.f32.mrf.mxu0  ;;  %v5424_v35 = vpop.f32.mrf.mxu1 }
 0x3c1   : > { %v5426_v55 = vpop.f32.mrf.mxu2 }
 0x3c2   : > { %2700 = vmatpush.bf16.msrb.mxu0 %v5013_v54  ;;  %2713 = vmatpush.bf16.msrb.mxu1 %v5024_v27  ;;  %5594 = vst [vmem:[#allocation18_spill] sm:$0xff] %v5426_v55 }
 0x3c3   : > { %v4260_v25 = vpop.eup %4259  ;;  %2739 = vmatpush.bf16.msrb.mxu3 %v5035_v32  ;;  %2727 = vmatpush.bf16.msrb.mxu2 %v5080_v44  ;;  %v5428_v36 = vpop.f32.mrf.mxu3 }
 0x3c4   : > { %v2058_v21 = vmul.f32 %v4260_v25, %v2052_v3  ;;  %v5455_v25 = vperm.slane %v2100_v0, 3 }
 0x3c6   : > { %v2059_v38 = vpack.c.bf16 %v2058_v21, %v2058_v21  ;;  %2062 = vst [vmem:[#allocation10] sm:$0xff] %v2058_v21  ;;  %2701 = vmatpush.bf16.msrb.mxu0 %v5051_v62  ;;  %2714 = vmatpush.bf16.msrb.mxu1 %v5061_v19 }
 0x3c7   : > { %2740 = vmatpush.bf16.msrb.mxu3 %v5082_v45  ;;  %2728 = vmatpush.bf16.msrb.mxu2 %v5116_v29 }
 0x3c8   : > { %2061 = vst [vmem:[#allocation3 + $0xc] sm:$0xf] %v2059_v38  ;;  %v2349_v38 = vadd.f32 %v2348_v18, %v5455_v25 }
 0x3ca   : > { %2702 = vmatpush.bf16.msrb.mxu0 %v5100_v13  ;;  %2715 = vmatpush.bf16.msrb.mxu1 %v5102_v22 }
 0x3cb   : > { %2741 = vmatpush.bf16.msrb.mxu3 %v5118_v39  ;;  %2729 = vmatpush.bf16.msrb.mxu2 %v5164_v2 }
 0x3ce   : > { %2703 = vmatpush.bf16.msrb.mxu0 %v5130_v47  ;;  %2716 = vmatpush.bf16.msrb.mxu1 %v5162_v49 }
 0x3cf   : > { %v4072_v16 = vld [vmem:[#allocation3 + $0x8] sm:$0xff]  ;;  %2742 = vmatpush.bf16.msrb.mxu3 %v5166_v4  ;;  %2730 = vmatpush.bf16.msrb.mxu2 %v5219_v50 }
 0x3d0   : > { %2295 = vmatmul.bf16.gmra.mxu0 %v4072_v16  ;;  %2314 = vmatmul.bf16.gmra.mxu1 %v4072_v16 }
 0x3d1   : > { %2333 = vmatmul.bf16.gmra.mxu2 %v4072_v16  ;;  %2352 = vmatmul.bf16.gmra.mxu3 %v4072_v16 }
 0x3d2   : > { %2704 = vmatpush.bf16.msrb.mxu0 %v5203_v24  ;;  %2717 = vmatpush.bf16.msrb.mxu1 %v5205_v31 }
 0x3d3   : > { %2743 = vmatpush.bf16.msrb.mxu3 %v5221_v56  ;;  %2731 = vmatpush.bf16.msrb.mxu2 %v5260_v53 }
 0x3d6   : > { %2705 = vmatpush.bf16.msrb.mxu0 %v5237_v30  ;;  %2718 = vmatpush.bf16.msrb.mxu1 %v5258_v52 }
 0x3d7   : > { %2744 = vmatpush.bf16.msrb.mxu3 %v5275_v1  ;;  %2732 = vmatpush.bf16.msrb.mxu2 %v5314_v11 }
 0x3da   : > { %2706 = vmatpush.bf16.msrb.mxu0 %v5295_v60  ;;  %2719 = vmatpush.bf16.msrb.mxu1 %v5304_v37 }
 0x3db   : > { %2745 = vmatpush.bf16.msrb.mxu3 %v5316_v20  ;;  %2733 = vmatpush.bf16.msrb.mxu2 %v5349_v23 }
 0x3de   : > { %2707 = vmatpush.bf16.msrb.mxu0 %v5340_v7  ;;  %2720 = vmatpush.bf16.msrb.mxu1 %v5345_v28 }
 0x3df   : > { %2746 = vmatpush.bf16.msrb.mxu3 %v5351_v15 }
 0x3e0   : > { %2583 = vmatmul.bf16.vlgmr.msra.gmra.mxu0 %v2414_v14  ;;  %2596 = vmatmul.bf16.vlgmr.msra.gmra.mxu1 %v2414_v14 }
 0x3e1   : > { %2609 = vmatmul.bf16.vlgmr.msra.gmra.mxu2 %v2414_v14  ;;  %2622 = vmatmul.bf16.vlgmr.msra.gmra.mxu3 %v2414_v14 }
 0x3e2   : > { %2826 = vmatpush.bf16.msra.mxu0 %v5013_v54  ;;  %2839 = vmatpush.bf16.msra.mxu1 %v5024_v27 }
 0x3e3   : > { %2852 = vmatpush.bf16.msra.mxu2 %v5026_v48  ;;  %2865 = vmatpush.bf16.msra.mxu3 %v5035_v32 }
 0x3e6   : > { %2827 = vmatpush.bf16.msra.mxu0 %v5051_v62  ;;  %2840 = vmatpush.bf16.msra.mxu1 %v5061_v19 }
 0x3e7   : > { %2853 = vmatpush.bf16.msra.mxu2 %v5080_v44  ;;  %2866 = vmatpush.bf16.msra.mxu3 %v5082_v45 }
 0x3ea   : > { %2828 = vmatpush.bf16.msra.mxu0 %v5100_v13  ;;  %2841 = vmatpush.bf16.msra.mxu1 %v5102_v22 }
 0x3eb   : > { %2854 = vmatpush.bf16.msra.mxu2 %v5116_v29  ;;  %2867 = vmatpush.bf16.msra.mxu3 %v5118_v39 }
 0x3ee   : > { %2829 = vmatpush.bf16.msra.mxu0 %v5130_v47  ;;  %2842 = vmatpush.bf16.msra.mxu1 %v5162_v49 }
 0x3ef   : > { %2855 = vmatpush.bf16.msra.mxu2 %v5164_v2  ;;  %2868 = vmatpush.bf16.msra.mxu3 %v5166_v4 }
 0x3f2   : > { %2830 = vmatpush.bf16.msra.mxu0 %v5203_v24  ;;  %2843 = vmatpush.bf16.msra.mxu1 %v5205_v31 }
 0x3f3   : > { %2856 = vmatpush.bf16.msra.mxu2 %v5219_v50  ;;  %2869 = vmatpush.bf16.msra.mxu3 %v5221_v56 }
 0x3f6   : > { %2831 = vmatpush.bf16.msra.mxu0 %v5237_v30  ;;  %2844 = vmatpush.bf16.msra.mxu1 %v5258_v52 }
 0x3f7   : > { %2857 = vmatpush.bf16.msra.mxu2 %v5260_v53  ;;  %2870 = vmatpush.bf16.msra.mxu3 %v5275_v1 }
 0x3fa   : > { %2832 = vmatpush.bf16.msra.mxu0 %v5295_v60  ;;  %2845 = vmatpush.bf16.msra.mxu1 %v5304_v37 }
 0x3fb   : > { %2858 = vmatpush.bf16.msra.mxu2 %v5314_v11  ;;  %2871 = vmatpush.bf16.msra.mxu3 %v5316_v20 }
 0x3fe   : > { %2833 = vmatpush.bf16.msra.mxu0 %v5340_v7  ;;  %2846 = vmatpush.bf16.msra.mxu1 %v5345_v28 }
 0x3ff   : > { %2859 = vmatpush.bf16.msra.mxu2 %v5349_v23  ;;  %2872 = vmatpush.bf16.msra.mxu3 %v5351_v15 }
 0x44d   : > { %v5430_v17 = vpop.f32.mrf.mxu0  ;;  %v5432_v43 = vpop.f32.mrf.mxu1 }
 0x44e   : > { %5595 = vst [vmem:[#allocation17_spill] sm:$0xff] %v5430_v17 }
 0x44f   : > { %5596 = vst [vmem:[#allocation19_spill] sm:$0xff] %v5432_v43 }
 0x454   : > { %v5434_v61 = vpop.f32.mrf.mxu2  ;;  %v5436_v5 = vpop.f32.mrf.mxu3 }
 0x455   : > { %5597 = vst [vmem:[#allocation20_spill] sm:$0xff] %v5434_v61  ;;  %v5441_v10 = vpop.f32.mrf.mxu0  ;;  %v5443_v33 = vpop.f32.mrf.mxu1 }
 0x456   : > { %5598 = vst [vmem:[#allocation22_spill] sm:$0xff] %v5436_v5 }
 0x457   : > { %5599 = vst [vmem:[#allocation21_spill] sm:$0xff] %v5441_v10 }
 0x458   : > { %5600 = vst [vmem:[#allocation23_spill] sm:$0xff] %v5443_v33 }
 0x45c   : > { %v5451_v57 = vpop.f32.mrf.mxu2  ;;  %v5453_v63 = vpop.f32.mrf.mxu3 }
 0x45d   : > { %5601 = vst [vmem:[#allocation24_spill] sm:$0xff] %v5451_v57  ;;  %v2584_v6 = vpop.f32.mrf.mxu0  ;;  %v2597_v26 = vpop.f32.mrf.mxu1 }
 0x45e   : > { %5602 = vst [vmem:[#allocation25_spill] sm:$0xff] %v5453_v63  ;;  %v2627_v59 = vadd.f32 %v2584_v6, %v2292_v46  ;;  %v2628_v40 = vadd.f32 %v2597_v26, %v2311_v58  ;;  %v5458_v58 = vperm.slane %v2100_v0, 2 }
 0x460   : > { %v3944_v3 = vmul.f32 -1.442695, %v2627_v59  ;;  %v3945_v21 = vmul.f32 -1.442695, %v2628_v40  ;;  %5603 = vst [vmem:[#allocation26_spill] sm:$0xff] %v5458_v58  ;;  %v2330_v18 = vadd.f32 %v2329_v51, %v5458_v58 }
 0x462   : > { %4261 = vpow2.f32 %v3944_v3 }
 0x463   : > { %4263 = vpow2.f32 %v3945_v21 }
 0x464   : > { %v2610_v16 = vpop.f32.mrf.mxu2  ;;  %v2623_v41 = vpop.f32.mrf.mxu3 }
 0x465   : > { %v2630_v14 = vadd.f32 %v2623_v41, %v2349_v38  ;;  %v2586_v9 = vpop.f32.mrf.mxu0  ;;  %v2599_v42 = vpop.f32.mrf.mxu1  ;;  %v2629_v21 = vadd.f32 %v2610_v16, %v2330_v18 }
 0x467   : > { %v3946_v57 = vmul.f32 -1.442695, %v2630_v14 }
 0x468   : > { %v4262_v33 = vpop.eup %4261 }
 0x469   : > { %v4264_v63 = vpop.eup %4263  ;;  %v2634_v10 = vadd.f32 1.0, %v4262_v33  ;;  %4265 = vpow2.f32 %v3946_v57 }
 0x46a   : > { %v2653_v46 = vadd.f32 1.0, %v4264_v63 }
 0x46b   : > { %4267 = vrcp.f32 %v2634_v10  ;;  %v2646_v57 = vand.u32 2147483648, %v2634_v10  ;;  %v2644_v42 = vand.u32 2147483647, %v2634_v10  ;;  %vm2640_vm3 = vweird.f32 %v2634_v10 }
 0x46c   : > { %4269 = vrcp.f32 %v2653_v46  ;;  %v2625_v6 = vpop.f32.mrf.mxu3  ;;  %v2612_v26 = vpop.f32.mrf.mxu2  ;;  %v2665_v0 = vand.u32 2147483648, %v2653_v46  ;;  %vm2659_vm4 = vweird.f32 %v2653_v46 }
 0x46d   : > { %v2663_v26 = vand.u32 2147483647, %v2653_v46  ;;  %v2647_v16 = vor.u32 1.1754944e-38, %v2646_v57  ;;  %vm2645_vm7 = vcmp.eq.f32.partialorder %v2644_v42, 8.507059e+37 }
 0x46f   : > { %v4266_v59 = vpop.eup %4265  ;;  %vm2664_vm8 = vcmp.eq.f32.partialorder %v2663_v26, 8.507059e+37 }
 0x470   : > { %v2673_v40 = vadd.f32 1.0, %v4266_v59 }
 0x471   : > { %v4268_v3 = vpop.eup %4267 }
 0x472   : > { %v4270_v38 = vpop.eup %4269  ;;  %v2636_v41 = vmul.f32 %v4268_v3, %v2634_v10  ;;  %4271 = vrcp.f32 %v2673_v40  ;;  %vm2641_vm1 = vweird.f32 %v4268_v3  ;;  %v2685_v57 = vand.u32 2147483648, %v2673_v40 }
 0x473   : > { %v2655_v14 = vmul.f32 %v4270_v38, %v2653_v46  ;;  %4273 = vtanh.f32 %v2629_v21  ;;  %vm2660_vm2 = vweird.f32 %v4270_v38  ;;  %vm2642_vm5 = vmor %vm2640_vm3, %vm2641_vm1  ;;  %vm2679_vm10 = vweird.f32 %v2673_v40 }
 0x474   : > { %v2637_v9 = vsub.f32 1.0, %v2636_v41  ;;  %vm2661_vm6 = vmor %vm2659_vm4, %vm2660_vm2  ;;  %v2666_v41 = vor.u32 1.1754944e-38, %v2665_v0 }
 0x475   : > { %v2656_v33 = vsub.f32 1.0, %v2655_v14  ;;  %v2409_v14 = vld [vmem:[#allocation11 + $0x8] sm:$0xff] }
 0x476   : > { %v2638_v63 = vmul.f32 %v4268_v3, %v2637_v9 }
 0x477   : > { %v2657_v6 = vmul.f32 %v4270_v38, %v2656_v33 }
 0x478   : > { %v4272_v61 = vpop.eup %4271  ;;  %v2639_v51 = vadd.f32 %v4268_v3, %v2638_v63 }
 0x479   : > { %v2658_v59 = vadd.f32 %v4270_v38, %v2657_v6  ;;  %v2675_v18 = vmul.f32 %v4272_v61, %v2673_v40  ;;  %v4274_v21 = vpop.eup %4273  ;;  %vm2680_vm9 = vweird.f32 %v4272_v61 }
 0x47a   : > { %v2643_v5 = vsel %vm2642_vm5, %v4268_v3, %v2639_v51  ;;  %v2683_v3 = vand.u32 2147483647, %v2673_v40  ;;  %vm2681_vm11 = vmor %vm2679_vm10, %vm2680_vm9 }
 0x47b   : > { %v2648_v9 = vsel %vm2645_vm7, %v2647_v16, %v2643_v5  ;;  %v2662_v43 = vsel %vm2661_vm6, %v4270_v38, %v2658_v59  ;;  %v2676_v33 = vsub.f32 1.0, %v2675_v18  ;;  %v2686_v5 = vor.u32 1.1754944e-38, %v2685_v57 }
 0x47c   : > { %v2667_v17 = vsel %vm2664_vm8, %v2666_v41, %v2662_v43  ;;  %v2690_v55 = vmul.f32 %v4274_v21, %v2648_v9  ;;  %vm2684_vm12 = vcmp.eq.f32.partialorder %v2683_v3, 8.507059e+37 }
 0x47d   : > { %v2689_v58 = vmul.f32 %v2667_v17, %v2409_v14  ;;  %v2677_v63 = vmul.f32 %v4272_v61, %v2676_v33 }
 0x47f   : > { %v5461_v10 = vadd.f32 %v2690_v55, %v2689_v58  ;;  %v2678_v46 = vadd.f32 %v4272_v61, %v2677_v63 }
 0x481   : > { %4275 = vtanh.f32 %v5461_v10  ;;  %v2682_v0 = vsel %vm2681_vm11, %v4272_v61, %v2678_v46 }
 0x482   : > { %v2687_v42 = vsel %vm2684_vm12, %v2686_v5, %v2682_v0 }
 0x487   : > { %v4276_v38 = vpop.eup %4275 }
 0x488   : > { %v2693_v43 = vmul.f32 %v4276_v38, %v2687_v42 }
 0x48a   : > { %v2694_v6 = vpack.c.bf16 %v2693_v43, %v2693_v43 }
 0x48c   : > { %2708 = vmatmul.bf16.vlgmr.msrb.gmra.mxu0 %v2694_v6  ;;  %2695 = vst [vmem:[%s4639_s25] sm:$0xf] %v2694_v6  ;;  %2721 = vmatmul.bf16.vlgmr.msrb.gmra.mxu1 %v2694_v6 }
 0x48d   : > { %2734 = vmatmul.bf16.vlgmr.msrb.gmra.mxu2 %v2694_v6  ;;  %2747 = vmatmul.bf16.vlgmr.msrb.gmra.mxu3 %v2694_v6 }
 0x48e   : > { %2952 = vmatpush.bf16.msrb.mxu0 %v5013_v54  ;;  %2965 = vmatpush.bf16.msrb.mxu1 %v5024_v27  ;;  %v2294_v54 = vadd.f32 %v5422_v8, %v5445_v12  ;;  %v2313_v27 = vadd.f32 %v5424_v35, %v5447_v34 }
 0x48f   : > { %2978 = vmatpush.bf16.msrb.mxu2 %v5026_v48  ;;  %2991 = vmatpush.bf16.msrb.mxu3 %v5035_v32 }
 0x492   : > { %2953 = vmatpush.bf16.msrb.mxu0 %v5051_v62  ;;  %2966 = vmatpush.bf16.msrb.mxu1 %v5061_v19 }
 0x493   : > { %2979 = vmatpush.bf16.msrb.mxu2 %v5080_v44  ;;  %2992 = vmatpush.bf16.msrb.mxu3 %v5082_v45 }
 0x496   : > { %2954 = vmatpush.bf16.msrb.mxu0 %v5100_v13  ;;  %2967 = vmatpush.bf16.msrb.mxu1 %v5102_v22  ;;  %v2351_v13 = vadd.f32 %v5428_v36, %v5455_v25 }
 0x497   : > { %2980 = vmatpush.bf16.msrb.mxu2 %v5116_v29  ;;  %2993 = vmatpush.bf16.msrb.mxu3 %v5118_v39 }
 0x49a   : > { %2955 = vmatpush.bf16.msrb.mxu0 %v5130_v47  ;;  %2968 = vmatpush.bf16.msrb.mxu1 %v5162_v49 }
 0x49b   : > { %2981 = vmatpush.bf16.msrb.mxu2 %v5164_v2  ;;  %2994 = vmatpush.bf16.msrb.mxu3 %v5166_v4 }
 0x49e   : > { %2956 = vmatpush.bf16.msrb.mxu0 %v5203_v24  ;;  %2969 = vmatpush.bf16.msrb.mxu1 %v5205_v31 }
 0x49f   : > { %2982 = vmatpush.bf16.msrb.mxu2 %v5219_v50  ;;  %2995 = vmatpush.bf16.msrb.mxu3 %v5221_v56 }
 0x4a2   : > { %2957 = vmatpush.bf16.msrb.mxu0 %v5237_v30  ;;  %2970 = vmatpush.bf16.msrb.mxu1 %v5258_v52 }
 0x4a3   : > { %2983 = vmatpush.bf16.msrb.mxu2 %v5260_v53  ;;  %2996 = vmatpush.bf16.msrb.mxu3 %v5275_v1  ;;  %v5604_v53 = vld [vmem:[#allocation26_spill] sm:$0xff] }
 0x4a4   : > { %v5605_v1 = vld [vmem:[#allocation18_spill] sm:$0xff] }
 0x4a6   : > { %2958 = vmatpush.bf16.msrb.mxu0 %v5295_v60  ;;  %2971 = vmatpush.bf16.msrb.mxu1 %v5304_v37  ;;  %v2332_v60 = vadd.f32 %v5605_v1, %v5604_v53 }
 0x4a7   : > { %2984 = vmatpush.bf16.msrb.mxu2 %v5314_v11  ;;  %2997 = vmatpush.bf16.msrb.mxu3 %v5316_v20 }
 0x4aa   : > { %2959 = vmatpush.bf16.msrb.mxu0 %v5340_v7  ;;  %2972 = vmatpush.bf16.msrb.mxu1 %v5345_v28 }
 0x4ab   : > { %2985 = vmatpush.bf16.msrb.mxu2 %v5349_v23  ;;  %2998 = vmatpush.bf16.msrb.mxu3 %v5351_v15 }
 0x509   : > { %v2709_v48 = vpop.f32.mrf.mxu0  ;;  %v2722_v32 = vpop.f32.mrf.mxu1 }
 0x50a   : > { %v2752_v62 = vadd.f32 %v2709_v48, %v2294_v54  ;;  %v2753_v19 = vadd.f32 %v2722_v32, %v2313_v27 }
 0x50c   : > { %v3947_v44 = vmul.f32 -1.442695, %v2752_v62  ;;  %v3948_v45 = vmul.f32 -1.442695, %v2753_v19  ;;  %v5607_v19 = vld [vmem:[#allocation19_spill] sm:$0xff] }
 0x50e   : > { %4277 = vpow2.f32 %v3947_v44  ;;  %v2316_v44 = vadd.f32 %v5607_v19, %v5447_v34 }
 0x50f   : > { %4279 = vpow2.f32 %v3948_v45 }
 0x510   : > { %v2735_v22 = vpop.f32.mrf.mxu2  ;;  %v2748_v29 = vpop.f32.mrf.mxu3 }
 0x511   : > { %v2755_v39 = vadd.f32 %v2748_v29, %v2351_v13  ;;  %v2711_v47 = vpop.f32.mrf.mxu0  ;;  %v2724_v49 = vpop.f32.mrf.mxu1  ;;  %v2754_v20 = vadd.f32 %v2735_v22, %v2332_v60 }
 0x512   : > { %v5608_v49 = vld [vmem:[#allocation22_spill] sm:$0xff] }
 0x513   : > { %v3949_v2 = vmul.f32 -1.442695, %v2755_v39 }
 0x514   : > { %v4278_v4 = vpop.eup %4277 }
 0x515   : > { %v4280_v24 = vpop.eup %4279  ;;  %v2759_v31 = vadd.f32 1.0, %v4278_v4  ;;  %4281 = vpow2.f32 %v3949_v2  ;;  %v2354_v2 = vadd.f32 %v5608_v49, %v5455_v25 }
 0x516   : > { %v2778_v50 = vadd.f32 1.0, %v4280_v24 }
 0x517   : > { %4283 = vrcp.f32 %v2759_v31  ;;  %v2771_v35 = vand.u32 2147483648, %v2759_v31  ;;  %v2769_v17 = vand.u32 2147483647, %v2759_v31  ;;  %vm2765_vm15 = vweird.f32 %v2759_v31 }
 0x518   : > { %4285 = vrcp.f32 %v2778_v50  ;;  %v2737_v56 = vpop.f32.mrf.mxu2  ;;  %v2750_v30 = vpop.f32.mrf.mxu3  ;;  %v2790_v55 = vand.u32 2147483648, %v2778_v50  ;;  %v2788_v58 = vand.u32 2147483647, %v2778_v50  ;;  %vm2784_vm0 = vweird.f32 %v2778_v50 }
 0x519   : > { %v2772_v51 = vor.u32 1.1754944e-38, %v2771_v35  ;;  %vm2770_vm3 = vcmp.eq.f32.partialorder %v2769_v17, 8.507059e+37 }
 0x51a   : > { %v2791_v18 = vor.u32 1.1754944e-38, %v2790_v55  ;;  %vm2789_vm4 = vcmp.eq.f32.partialorder %v2788_v58, 8.507059e+37 }
 0x51b   : > { %v4282_v52 = vpop.eup %4281 }
 0x51c   : > { %v2798_v37 = vadd.f32 1.0, %v4282_v52 }
 0x51d   : > { %v4284_v11 = vpop.eup %4283 }
 0x51e   : > { %v4286_v7 = vpop.eup %4285  ;;  %v2761_v28 = vmul.f32 %v4284_v11, %v2759_v31  ;;  %4287 = vrcp.f32 %v2798_v37  ;;  %vm2766_vm13 = vweird.f32 %v4284_v11  ;;  %v2810_v38 = vand.u32 2147483648, %v2798_v37 }
 0x51f   : > { %v2780_v23 = vmul.f32 %v4286_v7, %v2778_v50  ;;  %4289 = vtanh.f32 %v2754_v20  ;;  %vm2785_vm14 = vweird.f32 %v4286_v7  ;;  %vm2767_vm1 = vmor %vm2765_vm15, %vm2766_vm13  ;;  %vm2804_vm6 = vweird.f32 %v2798_v37 }
 0x520   : > { %v2762_v15 = vsub.f32 1.0, %v2761_v28  ;;  %vm2786_vm2 = vmor %vm2784_vm0, %vm2785_vm14  ;;  %v2808_v42 = vand.u32 2147483647, %v2798_v37  ;;  %v2811_v6 = vor.u32 1.1754944e-38, %v2810_v38  ;;  %v5609_v28 = vld [vmem:[#allocation20_spill] sm:$0xff] }
 0x521   : > { %v2781_v8 = vsub.f32 1.0, %v2780_v23  ;;  %v2335_v23 = vadd.f32 %v5609_v28, %v5604_v53 }
 0x522   : > { %v2763_v36 = vmul.f32 %v4284_v11, %v2762_v15  ;;  %vm2809_vm8 = vcmp.eq.f32.partialorder %v2808_v42, 8.507059e+37 }
 0x523   : > { %v2782_v61 = vmul.f32 %v4286_v7, %v2781_v8 }
 0x524   : > { %v4288_v40 = vpop.eup %4287  ;;  %v2764_v26 = vadd.f32 %v4284_v11, %v2763_v36 }
 0x525   : > { %v2783_v16 = vadd.f32 %v4286_v7, %v2782_v61  ;;  %v2800_v59 = vmul.f32 %v4288_v40, %v2798_v37  ;;  %v4290_v14 = vpop.eup %4289  ;;  %vm2805_vm5 = vweird.f32 %v4288_v40 }
 0x526   : > { %v2768_v41 = vsel %vm2767_vm1, %v4284_v11, %v2764_v26  ;;  %vm2806_vm7 = vmor %vm2804_vm6, %vm2805_vm5 }
 0x527   : > { %v2773_v21 = vsel %vm2770_vm3, %v2772_v51, %v2768_v41  ;;  %v2787_v9 = vsel %vm2786_vm2, %v4286_v7, %v2783_v16  ;;  %v2801_v33 = vsub.f32 1.0, %v2800_v59 }
 0x528   : > { %v2792_v63 = vsel %vm2789_vm4, %v2791_v18, %v2787_v9  ;;  %v2815_v46 = vmul.f32 %v4290_v14, %v2773_v21 }
 0x529   : > { %v2814_v57 = vmul.f32 %v2792_v63, %v5461_v10  ;;  %v2802_v3 = vmul.f32 %v4288_v40, %v2801_v33  ;;  %v5606_v10 = vld [vmem:[#allocation17_spill] sm:$0xff] }
 0x52a   : > { %v2297_v62 = vadd.f32 %v5606_v10, %v5445_v12 }
 0x52b   : > { %v5506_v0 = vadd.f32 %v2815_v46, %v2814_v57  ;;  %v2803_v5 = vadd.f32 %v4288_v40, %v2802_v3 }
 0x52d   : > { %4291 = vtanh.f32 %v5506_v0  ;;  %v2807_v43 = vsel %vm2806_vm7, %v4288_v40, %v2803_v5 }
 0x52e   : > { %v2812_v27 = vsel %vm2809_vm8, %v2811_v6, %v2807_v43 }
 0x533   : > { %v4292_v54 = vpop.eup %4291 }
 0x534   : > { %v2818_v48 = vmul.f32 %v4292_v54, %v2812_v27 }
 0x536   : > { %v2819_v32 = vpack.c.bf16 %v2818_v48, %v2818_v48 }
 0x538   : > { %2834 = vmatmul.bf16.vlgmr.msra.gmra.mxu0 %v2819_v32  ;;  %3950 = vst [vmem:[%s4639_s25 + $0x4] sm:$0xf] %v2819_v32  ;;  %2847 = vmatmul.bf16.vlgmr.msra.gmra.mxu1 %v2819_v32 }
 0x539   : > { %2860 = vmatmul.bf16.vlgmr.msra.gmra.mxu2 %v2819_v32  ;;  %2873 = vmatmul.bf16.vlgmr.msra.gmra.mxu3 %v2819_v32 }
 0x5b5   : > { %v2835_v45 = vpop.f32.mrf.mxu0  ;;  %v2848_v13 = vpop.f32.mrf.mxu1 }
 0x5b6   : > { %v2878_v22 = vadd.f32 %v2835_v45, %v2297_v62  ;;  %v2879_v29 = vadd.f32 %v2848_v13, %v2316_v44 }
 0x5b8   : > { %v3951_v39 = vmul.f32 -1.442695, %v2878_v22  ;;  %v3952_v47 = vmul.f32 -1.442695, %v2879_v29 }
 0x5ba   : > { %4293 = vpow2.f32 %v3951_v39  ;;  %v5611_v39 = vld [vmem:[#allocation23_spill] sm:$0xff] }
 0x5bb   : > { %4295 = vpow2.f32 %v3952_v47  ;;  %v2318_v47 = vadd.f32 %v5611_v39, %v5447_v34 }
 0x5bc   : > { %v2861_v4 = vpop.f32.mrf.mxu2  ;;  %v2874_v24 = vpop.f32.mrf.mxu3 }
 0x5bd   : > { %v2881_v31 = vadd.f32 %v2874_v24, %v2354_v2  ;;  %v2837_v50 = vpop.f32.mrf.mxu0  ;;  %v2850_v56 = vpop.f32.mrf.mxu1  ;;  %v2880_v35 = vadd.f32 %v2861_v4, %v2335_v23 }
 0x5be   : > { %v5612_v56 = vld [vmem:[#allocation25_spill] sm:$0xff] }
 0x5bf   : > { %v3953_v30 = vmul.f32 -1.442695, %v2881_v31 }
 0x5c0   : > { %v4294_v52 = vpop.eup %4293 }
 0x5c1   : > { %v4296_v1 = vpop.eup %4295  ;;  %v2885_v60 = vadd.f32 1.0, %v4294_v52  ;;  %4297 = vpow2.f32 %v3953_v30  ;;  %v2356_v30 = vadd.f32 %v5612_v56, %v5455_v25 }
 0x5c2   : > { %v2904_v37 = vadd.f32 1.0, %v4296_v1 }
 0x5c3   : > { %4299 = vrcp.f32 %v2885_v60  ;;  %v2897_v40 = vand.u32 2147483648, %v2885_v60  ;;  %v2895_v16 = vand.u32 2147483647, %v2885_v60  ;;  %vm2891_vm11 = vweird.f32 %v2885_v60 }
 0x5c4   : > { %4301 = vrcp.f32 %v2904_v37  ;;  %v2863_v11 = vpop.f32.mrf.mxu2  ;;  %v2876_v20 = vpop.f32.mrf.mxu3  ;;  %v2916_v26 = vand.u32 2147483648, %v2904_v37  ;;  %v2914_v18 = vand.u32 2147483647, %v2904_v37  ;;  %vm2910_vm12 = vweird.f32 %v2904_v37 }
 0x5c5   : > { %v2898_v21 = vor.u32 1.1754944e-38, %v2897_v40  ;;  %vm2896_vm15 = vcmp.eq.f32.partialorder %v2895_v16, 8.507059e+37 }
 0x5c6   : > { %v2917_v63 = vor.u32 1.1754944e-38, %v2916_v26  ;;  %vm2915_vm0 = vcmp.eq.f32.partialorder %v2914_v18, 8.507059e+37 }
 0x5c7   : > { %v4298_v7 = vpop.eup %4297 }
 0x5c8   : > { %v2924_v15 = vadd.f32 1.0, %v4298_v7 }
 0x5c9   : > { %v4300_v8 = vpop.eup %4299 }
 0x5ca   : > { %v4302_v55 = vpop.eup %4301  ;;  %v2887_v36 = vmul.f32 %v4300_v8, %v2885_v60  ;;  %4303 = vrcp.f32 %v2924_v15  ;;  %vm2892_vm9 = vweird.f32 %v4300_v8  ;;  %v2936_v32 = vand.u32 2147483648, %v2924_v15 }
 0x5cb   : > { %v2906_v17 = vmul.f32 %v4302_v55, %v2904_v37  ;;  %4305 = vtanh.f32 %v2880_v35  ;;  %vm2911_vm10 = vweird.f32 %v4302_v55  ;;  %vm2893_vm13 = vmor %vm2891_vm11, %vm2892_vm9  ;;  %vm2930_vm2 = vweird.f32 %v2924_v15  ;;  %v5613_v35 = vld [vmem:[#allocation24_spill] sm:$0xff] }
 0x5cc   : > { %v2888_v61 = vsub.f32 1.0, %v2887_v36  ;;  %vm2912_vm14 = vmor %vm2910_vm12, %vm2911_vm10  ;;  %v2934_v10 = vand.u32 2147483647, %v2924_v15  ;;  %v2937_v19 = vor.u32 1.1754944e-38, %v2936_v32  ;;  %v2337_v25 = vadd.f32 %v5613_v35, %v5604_v53 }
 0x5cd   : > { %v2907_v58 = vsub.f32 1.0, %v2906_v17 }
 0x5ce   : > { %v2889_v51 = vmul.f32 %v4300_v8, %v2888_v61  ;;  %vm2935_vm4 = vcmp.eq.f32.partialorder %v2934_v10, 8.507059e+37 }
 0x5cf   : > { %v2908_v59 = vmul.f32 %v4302_v55, %v2907_v58 }
 0x5d0   : > { %v4304_v41 = vpop.eup %4303  ;;  %v2890_v14 = vadd.f32 %v4300_v8, %v2889_v51 }
 0x5d1   : > { %v2909_v9 = vadd.f32 %v4302_v55, %v2908_v59  ;;  %v2926_v33 = vmul.f32 %v4304_v41, %v2924_v15  ;;  %v4306_v57 = vpop.eup %4305  ;;  %vm2931_vm1 = vweird.f32 %v4304_v41 }
 0x5d2   : > { %v2894_v46 = vsel %vm2893_vm13, %v4300_v8, %v2890_v14  ;;  %vm2932_vm3 = vmor %vm2930_vm2, %vm2931_vm1 }
 0x5d3   : > { %v2899_v3 = vsel %vm2896_vm15, %v2898_v21, %v2894_v46  ;;  %v2913_v5 = vsel %vm2912_vm14, %v4302_v55, %v2909_v9  ;;  %v2927_v38 = vsub.f32 1.0, %v2926_v33 }
 0x5d4   : > { %v2918_v42 = vsel %vm2915_vm0, %v2917_v63, %v2913_v5  ;;  %v2941_v43 = vmul.f32 %v4306_v57, %v2899_v3 }
 0x5d5   : > { %v2940_v6 = vmul.f32 %v2918_v42, %v5506_v0  ;;  %v2928_v54 = vmul.f32 %v4304_v41, %v2927_v38  ;;  %v5610_v0 = vld [vmem:[#allocation21_spill] sm:$0xff] }
 0x5d6   : > { %v2299_v29 = vadd.f32 %v5610_v0, %v5445_v12 }
 0x5d7   : > { %v5519_v27 = vadd.f32 %v2941_v43, %v2940_v6  ;;  %v2929_v48 = vadd.f32 %v4304_v41, %v2928_v54 }
 0x5d9   : > { %4307 = vtanh.f32 %v5519_v27  ;;  %v2933_v62 = vsel %vm2932_vm3, %v4304_v41, %v2929_v48 }
 0x5da   : > { %v2938_v45 = vsel %vm2935_vm4, %v2937_v19, %v2933_v62 }
 0x5df   : > { %v4308_v44 = vpop.eup %4307 }
 0x5e0   : > { %v2944_v13 = vmul.f32 %v4308_v44, %v2938_v45 }
 0x5e2   : > { %v2945_v22 = vpack.c.bf16 %v2944_v13, %v2944_v13 }
 0x5e4   : > { %2960 = vmatmul.bf16.vlgmr.msrb.gmra.mxu0 %v2945_v22  ;;  %3954 = vst [vmem:[%s4639_s25 + $0x8] sm:$0xf] %v2945_v22  ;;  %2973 = vmatmul.bf16.vlgmr.msrb.gmra.mxu1 %v2945_v22 }
 0x5e5   : > { %2986 = vmatmul.bf16.vlgmr.msrb.gmra.mxu2 %v2945_v22  ;;  %2999 = vmatmul.bf16.vlgmr.msrb.gmra.mxu3 %v2945_v22 }
 0x661   : > { %v2961_v49 = vpop.f32.mrf.mxu0  ;;  %v2974_v2 = vpop.f32.mrf.mxu1 }
 0x662   : > { %v3004_v4 = vadd.f32 %v2961_v49, %v2299_v29  ;;  %v3005_v24 = vadd.f32 %v2974_v2, %v2318_v47 }
 0x664   : > { %v3955_v31 = vmul.f32 -1.442695, %v3004_v4  ;;  %v3956_v50 = vmul.f32 -1.442695, %v3005_v24 }
 0x666   : > { %4309 = vpow2.f32 %v3955_v31 }
 0x667   : > { %4311 = vpow2.f32 %v3956_v50 }
 0x668   : > { %v2987_v52 = vpop.f32.mrf.mxu2  ;;  %v3000_v1 = vpop.f32.mrf.mxu3 }
 0x669   : > { %v3007_v60 = vadd.f32 %v3000_v1, %v2356_v30  ;;  %v2963_v37 = vpop.f32.mrf.mxu0  ;;  %v2976_v11 = vpop.f32.mrf.mxu1  ;;  %v3006_v17 = vadd.f32 %v2987_v52, %v2337_v25 }
 0x66b   : > { %v3957_v12 = vmul.f32 -1.442695, %v3007_v60 }
 0x66c   : > { %v4310_v20 = vpop.eup %4309 }
 0x66d   : > { %v4312_v7 = vpop.eup %4311  ;;  %v3011_v34 = vadd.f32 1.0, %v4310_v20  ;;  %4313 = vpow2.f32 %v3957_v12 }
 0x66e   : > { %v3030_v28 = vadd.f32 1.0, %v4312_v7 }
 0x66f   : > { %4315 = vrcp.f32 %v3011_v34  ;;  %v3023_v16 = vand.u32 2147483648, %v3011_v34  ;;  %v3021_v41 = vand.u32 2147483647, %v3011_v34  ;;  %vm3017_vm7 = vweird.f32 %v3011_v34 }
 0x670   : > { %4317 = vrcp.f32 %v3030_v28  ;;  %v2989_v23 = vpop.f32.mrf.mxu2  ;;  %v3002_v15 = vpop.f32.mrf.mxu3  ;;  %v3042_v59 = vand.u32 2147483648, %v3030_v28  ;;  %v3040_v21 = vand.u32 2147483647, %v3030_v28  ;;  %vm3036_vm8 = vweird.f32 %v3030_v28 }
 0x671   : > { %v3024_v33 = vor.u32 1.1754944e-38, %v3023_v16  ;;  %vm3022_vm11 = vcmp.eq.f32.partialorder %v3021_v41, 8.507059e+37 }
 0x672   : > { %v3043_v57 = vor.u32 1.1754944e-38, %v3042_v59  ;;  %vm3041_vm12 = vcmp.eq.f32.partialorder %v3040_v21, 8.507059e+37 }
 0x673   : > { %v4314_v8 = vpop.eup %4313 }
 0x674   : > { %v3050_v55 = vadd.f32 1.0, %v4314_v8 }
 0x675   : > { %v4316_v36 = vpop.eup %4315 }
 0x676   : > { %v4318_v61 = vpop.eup %4317  ;;  %v3013_v58 = vmul.f32 %v4316_v36, %v3011_v34  ;;  %4319 = vrcp.f32 %v3050_v55  ;;  %vm3018_vm5 = vweird.f32 %v4316_v36  ;;  %v3062_v19 = vand.u32 2147483648, %v3050_v55 }
 0x677   : > { %v3032_v40 = vmul.f32 %v4318_v61, %v3030_v28  ;;  %4321 = vtanh.f32 %v3006_v17  ;;  %vm3037_vm6 = vweird.f32 %v4318_v61  ;;  %vm3019_vm9 = vmor %vm3017_vm7, %vm3018_vm5  ;;  %vm3056_vm14 = vweird.f32 %v3050_v55 }
 0x678   : > { %v3014_v26 = vsub.f32 1.0, %v3013_v58  ;;  %vm3038_vm10 = vmor %vm3036_vm8, %vm3037_vm6  ;;  %v3060_v44 = vand.u32 2147483647, %v3050_v55  ;;  %v3063_v45 = vor.u32 1.1754944e-38, %v3062_v19 }
 0x679   : > { %v3033_v51 = vsub.f32 1.0, %v3032_v40 }
 0x67a   : > { %v3015_v18 = vmul.f32 %v4316_v36, %v3014_v26  ;;  %vm3061_vm0 = vcmp.eq.f32.partialorder %v3060_v44, 8.507059e+37 }
 0x67b   : > { %v3034_v14 = vmul.f32 %v4318_v61, %v3033_v51 }
 0x67c   : > { %v4320_v9 = vpop.eup %4319  ;;  %v3016_v53 = vadd.f32 %v4316_v36, %v3015_v18 }
 0x67d   : > { %v3035_v63 = vadd.f32 %v4318_v61, %v3034_v14  ;;  %v3052_v46 = vmul.f32 %v4320_v9, %v3050_v55  ;;  %v4322_v5 = vpop.eup %4321  ;;  %vm3057_vm13 = vweird.f32 %v4320_v9 }
 0x67e   : > { %v3020_v3 = vsel %vm3019_vm9, %v4316_v36, %v3016_v53  ;;  %vm3058_vm15 = vmor %vm3056_vm14, %vm3057_vm13 }
 0x67f   : > { %v3025_v38 = vsel %vm3022_vm11, %v3024_v33, %v3020_v3  ;;  %v3039_v42 = vsel %vm3038_vm10, %v4318_v61, %v3035_v63  ;;  %v3053_v43 = vsub.f32 1.0, %v3052_v46 }
 0x680   : > { %v3044_v6 = vsel %vm3041_vm12, %v3043_v57, %v3039_v42  ;;  %v3067_v54 = vmul.f32 %v4322_v5, %v3025_v38 }
 0x681   : > { %v3066_v48 = vmul.f32 %v3044_v6, %v5519_v27  ;;  %v3054_v32 = vmul.f32 %v4320_v9, %v3053_v43 }
 0x683   : > { %v3068_v10 = vadd.f32 %v3067_v54, %v3066_v48  ;;  %v3055_v62 = vadd.f32 %v4320_v9, %v3054_v32 }
 0x685   : > { %4323 = vtanh.f32 %v3068_v10  ;;  %3075 = vst [vmem:[#allocation11 + $0x8] sm:$0xff] %v3068_v10  ;;  %v3059_v27 = vsel %vm3058_vm15, %v4320_v9, %v3055_v62 }
 0x686   : > { %4152 = dma.vmem_to_hbm [thread:$0]  (%p4173_p8), %s3105_s23, 256, %s3107_s26, [#allocation12], %s4503_s27, %s4503_s27, %s4504_s28   ;;  %v3064_v22 = vsel %vm3061_vm0, %v3063_v45, %v3059_v27 }
 0x68b   : > { %v4324_v13 = vpop.eup %4323 }
 0x68c   : > { %v3070_v0 = vmul.f32 %v4324_v13, %v3064_v22 }
 0x68e   : > { %v3071_v29 = vpack.c.bf16 %v3070_v0, %v3070_v0  ;;  %3074 = vst [vmem:[#allocation10 + $0x8] sm:$0xff] %v3070_v0 }
 0x68f   : > { %4150 = dma.vmem_to_hbm [thread:$0]  (%p4173_p8), %s3091_s11, 256, %s3093_s20, [#allocation6], %s4503_s27, %s4503_s27, %s4504_s28  }
 0x690   : > { %3958 = vst [vmem:[%s4639_s25 + $0xc] sm:$0xf] %v3071_v29 }
 0x691   : > { %4484 = dma.done.wait (%p4173_p8), [#allocation6], 256  }
 0x692   : > { %4486 = vsyncadd (%p4173_p8), [#allocation6], 4294967040 }
 0x693   : > { %4488 = dma.done.wait (%p4173_p8), [#allocation12], 256  }
 0x694   : > { %4490 = vsyncadd (%p4173_p8), [#allocation12], 4294967040 }
 0x695 PF: > { %s29_s29 = sadd.s32 1, %s4493_s29  }
 0x696   : > { %p26_p9 = scmp.ge.s32.totalorder %s29_s29, 4  }
 0x698   :  { %28 = sbr.rel (!%p26_p9) target bundleno = 4 (0x4), region = 146 }
 0x69d   :  { %3136 = vsyncpa [#allocation5], 1 }
 0x69e   :  { %3138 = vsyncpa [#allocation5 + $0x1], 1 }
 0x69f   :  { %3139 = vsyncpa [#allocation8], 1 }
 0x6a0   :  { %3140 = vsyncpa [#allocation6], 1 }
 0x6a1   :  { %3142 = vsyncpa [#allocation6 + $0x1], 1 }
 0x6a2   :  { %3143 = vsyncpa [#allocation12], 1 }

</bundles_post_ra>
